<compile_context>
chip_gen: v7x
topology: tpu7x:2x2x1
jax: 0.10.0
libtpu: 0.0.40
codegen_flags: <defaults>
</compile_context>

<pallas_src>
import jax
import jax.numpy as jnp
from jax.experimental import pallas as pl
from jax.experimental.pallas import tpu as pltpu

# ------------------------- configuration (synthetic) -------------------------
NUM_CHANNELS = 4      # in_channels of the detector
NUM_KP       = 8      # number of keypoints
OUT_FILTERS  = 32     # predictor.out_filters (stand-in)
TEMPERATURE  = 0.1
SPATIAL      = 16     # H = W of the input
ESTIMATE_JACOBIAN = True
SINGLE_JACOBIAN_MAP = False
NUM_JAC_MAPS = 1 if SINGLE_JACOBIAN_MAP else NUM_KP
HEAD_COUT = NUM_KP + 4 * NUM_JAC_MAPS          # fused kp + jacobian Cout = 40

KS1 = 3                      # stage-1 (hourglass stand-in) kernel size
KS7 = 7                      # kp / jacobian head kernel size
H = W = SPATIAL
HW = H * W                   # 256
HO = H - KS7 + 1             # 10
WO = W - KS7 + 1             # 10
NQ = HO * W                  # 160: heads computed on W-stride columns, xo>=WO masked
FEAT_COLS = 384              # >= NQ + (KS7-1)*(W+1) = 262, rounded to a lane multiple


# ------------------------------ Pallas kernel ---------------------------------
def _kpdet_fused_kernel(p3_ref, w1_ref, b1_ref, wh_ref, bh_ref, wm_ref, bm_ref,
                        grid_ref, stats_ref, mot_ref, feat_scr, slab_scr):
    """Whole KPDetector_2branch forward for one batch element.

    p3_ref:   (9*Cin, HW)        3x3 im2col of the padded input (tap-major, Cin)
    w1_ref:   (2F, 9*Cin) f32    fused feature+mask conv weights, b1_ref: (2F, 1)
    wh_ref:   (40, 49*F) bf16    fused kp + jacobian(component-major) weights
    bh_ref:   (40, 1) f32
    wm_ref:   (K+1, F) f32       motion-mask 1x1 conv weights, bm_ref: (K+1, 1)
    grid_ref: (2, NQ) f32        lane-dense coordinate grid (row0=x, row1=y)
    Outputs:  stats (K, 8) = [x, y, j00, j01, j10, j11, 0, 0];  motion (K+1, HW)
    Scratch:  feat_scr (F, FEAT_COLS) f32, slab_scr (49*F, NQ) bf16."""
    F = OUT_FILTERS
    K = NUM_KP

    # ---- stage 1: fused feature+mask 3x3 SAME conv -> ONE MXU matmul --------
    fm = jnp.dot(w1_ref[...], p3_ref[...],
                 preferred_element_type=jnp.float32) + b1_ref[...]        # (2F, HW)

    # ---- motion-mask head: 1x1 conv on the mask branch (lane-dense store) ---
    mot_ref[...] = jnp.dot(wm_ref[...], fm[F:, :],
                           preferred_element_type=jnp.float32) + bm_ref[...]

    # feature branch -> flat scratch with zeroed tail so the shifted 7x7 tap
    # slices below stay in-bounds (the affected columns are masked later).
    feat_scr[...] = jnp.zeros((F, FEAT_COLS), jnp.float32)
    feat_scr[:, :HW] = fm[:F, :]

    # ---- in-VMEM 7x7 im2col: 49 shifted flat slices -> bf16 patch slab ------
    # output column q = yo*W + xo (valid iff xo < WO); tap (ky,kx) reads
    # feature at flat index q + ky*W + kx.
    for t in range(KS7 * KS7):
        ky, kx = divmod(t, KS7)
        off = ky * W + kx
        slab_scr[t * F:(t + 1) * F, :] = \
            feat_scr[:, off:off + NQ].astype(jnp.bfloat16)

    # ---- fused kp(7x7) + jacobian(7x7) heads: single bf16 MXU matmul --------
    heads = jnp.dot(wh_ref[...], slab_scr[...],
                    preferred_element_type=jnp.float32) + bh_ref[...]     # (40, NQ)

    # valid output columns of the W-stride layout
    cols = jax.lax.broadcasted_iota(jnp.int32, (1, NQ), 1)
    valid = (cols % W) < WO                                               # (1, NQ)

    # temperature softmax over spatial (lane axis); normalization deferred
    s = jnp.where(valid, heads[:K, :] * (1.0 / TEMPERATURE), -1e30)
    m = jnp.max(s, axis=-1, keepdims=True)
    e = jnp.exp(s - m)                                                    # 0 at invalid cols
    se = jnp.sum(e, axis=-1, keepdims=True)                               # (K, 1)

    # gaussian2kp + jacobian reduction: VPU multiply + XLU lane reduce
    gx = grid_ref[0:1, :]
    gy = grid_ref[1:2, :]
    vx = jnp.sum(e * gx, axis=-1, keepdims=True)                          # (K, 1)
    vy = jnp.sum(e * gy, axis=-1, keepdims=True)
    jac_cols = [jnp.sum(e * heads[K + c * K:K + (c + 1) * K, :],
                        axis=-1, keepdims=True)
                for c in range(4)]                                        # c-major rows

    # packed (K, 8) output: one store / one DMA, exact normalization
    stats = jnp.concatenate([vx, vy] + jac_cols +
                            [jnp.zeros((K, 2), jnp.float32)], axis=-1)
    stats_ref[...] = stats / se


# ------------------------------ pallas wrapper --------------------------------
def kp_detector_pallas(p3, w1t, b1, wht, bh, wmt, bm, grid_ext):
    """p3: (B, 9*Cin, HW), weights folded channel-major, grid_ext: (2, NQ)."""
    B = p3.shape[0]
    K = NUM_KP
    R3 = KS1 * KS1 * NUM_CHANNELS
    R7 = KS7 * KS7 * OUT_FILTERS
    stats, motion = pl.pallas_call(
        _kpdet_fused_kernel,
        out_shape=(jax.ShapeDtypeStruct((B, K, 8), jnp.float32),
                   jax.ShapeDtypeStruct((B, K + 1, HW), jnp.float32)),
        grid_spec=pltpu.PrefetchScalarGridSpec(
            num_scalar_prefetch=0,
            grid=(B,),
            in_specs=[
                pl.BlockSpec((None, R3, HW), lambda b: (b, 0, 0)),
                pl.BlockSpec((2 * OUT_FILTERS, R3), lambda b: (0, 0)),
                pl.BlockSpec((2 * OUT_FILTERS, 1), lambda b: (0, 0)),
                pl.BlockSpec((HEAD_COUT, R7), lambda b: (0, 0)),
                pl.BlockSpec((HEAD_COUT, 1), lambda b: (0, 0)),
                pl.BlockSpec((K + 1, OUT_FILTERS), lambda b: (0, 0)),
                pl.BlockSpec((K + 1, 1), lambda b: (0, 0)),
                pl.BlockSpec((2, NQ), lambda b: (0, 0)),
            ],
            out_specs=(
                pl.BlockSpec((None, K, 8), lambda b: (b, 0, 0)),
                pl.BlockSpec((None, K + 1, HW), lambda b: (b, 0, 0)),
            ),
            scratch_shapes=[
                pltpu.VMEM((OUT_FILTERS, FEAT_COLS), jnp.float32),
                pltpu.VMEM((KS7 * KS7 * OUT_FILTERS, NQ), jnp.bfloat16),
            ]),
        compiler_params=pltpu.CompilerParams(
            # batch axis is parallel: both v7x TensorCores get work at B>=2.
            dimension_semantics=("parallel",)),
    )(p3, w1t, b1, wht, bh, wmt, bm, grid_ext)
    return stats, motion


# ------------------------------ glue / forward --------------------------------
def make_coordinate_grid(h, w):
    """Same convention as FOMM make_coordinate_grid: [...,0]=x (width), [...,1]=y."""
    x = 2.0 * (jnp.arange(w, dtype=jnp.float32) / (w - 1)) - 1.0
    y = 2.0 * (jnp.arange(h, dtype=jnp.float32) / (h - 1)) - 1.0
    xx = jnp.tile(x[None, :], (h, 1))
    yy = jnp.tile(y[:, None], (1, w))
    return jnp.stack([xx, yy], axis=-1)        # (h, w, 2)


def _im2col_cm(x_nchw, kh, kw):
    """Channel-major im2col, VALID windows, rows ordered (tap-major, then Cin).
    x_nchw: (B, C, H, W) -> (B, kh*kw*C, Ho*Wo).  Only used for the tiny 3x3
    stage (36 rows, ~36 KB/batch); the 49x 7x7 expansion is built in VMEM."""
    B, C, Hh, Ww = x_nchw.shape
    Ho, Wo = Hh - kh + 1, Ww - kw + 1
    return jnp.concatenate(
        [x_nchw[:, :, ky:ky + Ho, kx:kx + Wo].reshape(B, C, Ho * Wo)
         for ky in range(kh) for kx in range(kw)], axis=1)


def kp_detector_forward(x_nchw, params):
    """Pallas forward of KPDetector_2branch (scale_factor=1, pad=0)."""
    x = x_nchw.astype(jnp.float32)
    B, Cin, Hin, Win = x.shape
    F = OUT_FILTERS
    K = NUM_KP

    # ---- fold per-head HWIO params into fused, channel-major weights ---------
    # (constant-foldable glue; in production these would be pre-folded once).
    w1t = jnp.concatenate([params["feat_w"], params["mask_w"]], axis=-1) \
             .reshape(KS1 * KS1 * Cin, 2 * F).T                          # (64, 36) f32
    b1 = jnp.concatenate([params["feat_b"], params["mask_b"]]).reshape(-1, 1)

    # jacobian weights/bias reordered component-major: new out-channel = c*K + k
    jw = params["jac_w"].reshape(KS7, KS7, F, NUM_JAC_MAPS, 4)
    jw_cm = jnp.transpose(jw, (0, 1, 2, 4, 3)).reshape(KS7, KS7, F, 4 * NUM_JAC_MAPS)
    jb_cm = params["jac_b"].reshape(NUM_JAC_MAPS, 4).T.reshape(-1)
    w_heads = jnp.concatenate([params["kp_w"], jw_cm], axis=-1)          # (7,7,F,40)
    wht = w_heads.reshape(KS7 * KS7 * F, HEAD_COUT).T.astype(jnp.bfloat16)  # (40, 1568)
    bh = jnp.concatenate([params["kp_b"], jb_cm]).reshape(-1, 1)

    wmt = params["mm_w"].reshape(F, K + 1).T                             # (9, 32) f32
    bm = params["mm_b"].reshape(-1, 1)

    # ---- tiny XLA glue: zero-pad + 3x3 im2col + lane-dense coordinate grid --
    xpad = jnp.pad(x, ((0, 0), (0, 0), (1, 1), (1, 1)))
    p3 = _im2col_cm(xpad, KS1, KS1)                                      # (B, 36, HW)

    g = make_coordinate_grid(HO, WO)                                     # (10,10,2)
    g_ext = jnp.zeros((HO, W, 2), jnp.float32).at[:, :WO, :].set(g)
    grid_ext = g_ext.reshape(NQ, 2).T                                    # (2, NQ)

    # ---- single fused kernel -------------------------------------------------
    stats, motion = kp_detector_pallas(p3, w1t, b1, wht, bh, wmt, bm, grid_ext)

    value = stats[:, :, 0:2]
    jacobian = stats[:, :, 2:6].reshape(B, K, 2, 2)
    return {"value": value,
            "jacobian": jacobian,
            "motion_map": motion.reshape(B, K + 1, H, W)}                # NCHW


# ------------------------- pure-JAX reference (check) -------------------------
def _ref_forward(x_nchw, params):
    dn = ("NHWC", "HWIO", "NHWC")
    hi = jax.lax.Precision.HIGHEST

    def conv(x, w, b, pad):
        y = jax.lax.conv_general_dilated(x, w, (1, 1), pad,
                                         dimension_numbers=dn, precision=hi)
        return y + b.reshape(1, 1, 1, -1)

    x = jnp.transpose(x_nchw, (0, 2, 3, 1)).astype(jnp.float32)
    fm = conv(x, params["feat_w"], params["feat_b"], "SAME")
    mm = conv(x, params["mask_w"], params["mask_b"], "SAME")
    pred = conv(fm, params["kp_w"], params["kp_b"], "VALID")
    motion = conv(mm, params["mm_w"], params["mm_b"], "VALID")
    jmap = conv(fm, params["jac_w"], params["jac_b"], "VALID")

    B, Ho, Wo, K = pred.shape
    pred_n = jnp.transpose(pred, (0, 3, 1, 2)).reshape(B, K, -1)
    hm = jax.nn.softmax(pred_n / TEMPERATURE, axis=-1)
    grid = make_coordinate_grid(Ho, Wo).reshape(-1, 2)
    value = jnp.matmul(hm, grid, precision=hi)
    jm = jnp.transpose(jmap, (0, 3, 1, 2)).reshape(B, K, 4, -1)
    jac = jnp.sum(hm[:, :, None, :] * jm, axis=-1).reshape(B, K, 2, 2)
    return {"value": value, "jacobian": jac,
            "motion_map": jnp.transpose(motion, (0, 3, 1, 2))}


# ------------------------------ param init ------------------------------------
def _init_conv(key, kh, kw, cin, cout):
    kw_, kb_ = jax.random.split(key)
    scale = 0.5 / jnp.sqrt(float(kh * kw * cin))
    w = scale * jax.random.normal(kw_, (kh, kw, cin, cout), jnp.float32)
    b = 0.05 * jax.random.normal(kb_, (cout,), jnp.float32)
    return w, b


def init_params(key):
    k = jax.random.split(key, 5)
    p = {}
    p["feat_w"], p["feat_b"] = _init_conv(k[0], 3, 3, NUM_CHANNELS, OUT_FILTERS)
    p["mask_w"], p["mask_b"] = _init_conv(k[1], 3, 3, NUM_CHANNELS, OUT_FILTERS)
    p["kp_w"], p["kp_b"]     = _init_conv(k[2], 7, 7, OUT_FILTERS, NUM_KP)
    p["mm_w"], p["mm_b"]     = _init_conv(k[3], 1, 1, OUT_FILTERS, NUM_KP + 1)
    # NOTE: the module zero-inits jacobian weights; we use small NONZERO weights
    # here so the test actually exercises the fused component-major jacobian
    # path (per review).  Forward semantics are identical for any weights.
    p["jac_w"], _ = _init_conv(k[4], 7, 7, OUT_FILTERS, 4 * NUM_JAC_MAPS)
    p["jac_b"] = jnp.tile(jnp.array([1.0, 0.0, 0.0, 1.0], jnp.float32), NUM_JAC_MAPS)
    return p


# --------------------------------- main ---------------------------------------
if __name__ == "__main__":
    key = jax.random.PRNGKey(0)
    kx, kp_ = jax.random.split(key)
    x = jax.random.normal(kx, (2, NUM_CHANNELS, SPATIAL, SPATIAL), jnp.float32)  # NCHW
    params = init_params(kp_)

    fwd = jax.jit(kp_detector_forward)
    out = fwd(x, params)
    jax.block_until_ready(out)

    # sanity: shapes
    assert out["value"].shape == (2, NUM_KP, 2)
    assert out["jacobian"].shape == (2, NUM_KP, 2, 2)
    assert out["motion_map"].shape == (2, NUM_KP + 1, SPATIAL, SPATIAL)

    # sanity: numerics vs. pure-JAX f32/HIGHEST reference.
    # motion path is f32 end-to-end -> tight tolerance; value/jacobian go
    # through the bf16 heads matmul and temperature=0.1 amplifies logit error
    # ~10x, so use 2e-2 there.
    ref = _ref_forward(x, params)
    assert bool(jnp.allclose(out["motion_map"], ref["motion_map"],
                             rtol=5e-3, atol=5e-3)), "motion_map"
    assert bool(jnp.allclose(out["value"], ref["value"],
                             rtol=2e-2, atol=2e-2)), "value"
    assert bool(jnp.allclose(out["jacobian"], ref["jacobian"],
                             rtol=2e-2, atol=2e-2)), "jacobian"

    print("KERNEL_OK")
</pallas_src>

<mosaic_0001>
module attributes {stable_mosaic.version = 11 : i64} {
  func.func @_kpdet_fused_kernel(%arg0: i32, %arg1: memref<1x36x256xf32, #tpu.memory_space<vmem>>, %arg2: memref<64x36xf32, #tpu.memory_space<vmem>>, %arg3: memref<64x1xf32, #tpu.memory_space<vmem>>, %arg4: memref<40x1568xbf16, #tpu.memory_space<vmem>>, %arg5: memref<40x1xf32, #tpu.memory_space<vmem>>, %arg6: memref<9x32xf32, #tpu.memory_space<vmem>>, %arg7: memref<9x1xf32, #tpu.memory_space<vmem>>, %arg8: memref<2x160xf32, #tpu.memory_space<vmem>>, %arg9: memref<1x8x8xf32, #tpu.memory_space<vmem>>, %arg10: memref<1x9x256xf32, #tpu.memory_space<vmem>>, %arg11: memref<32x384xf32, #tpu.memory_space<vmem>>, %arg12: memref<1568x160xbf16, #tpu.memory_space<vmem>>) attributes {dimension_semantics = [#tpu.dimension_semantics<parallel>], iteration_bounds = array<i64: 2>, scalar_prefetch = 0 : i64, scratch_operands = 2 : i64, tpu.core_type = #tpu.core_type<tc>, window_params = [{transform_indices = @transform_0, window_bounds = array<i64: 1, 36, 256>}, {pipeline_mode = #tpu.pipeline_mode<synchronous>, transform_indices = @transform_1, window_bounds = array<i64: 64, 36>}, {pipeline_mode = #tpu.pipeline_mode<synchronous>, transform_indices = @transform_2, window_bounds = array<i64: 64, 1>}, {pipeline_mode = #tpu.pipeline_mode<synchronous>, transform_indices = @transform_3, window_bounds = array<i64: 40, 1568>}, {pipeline_mode = #tpu.pipeline_mode<synchronous>, transform_indices = @transform_4, window_bounds = array<i64: 40, 1>}, {pipeline_mode = #tpu.pipeline_mode<synchronous>, transform_indices = @transform_5, window_bounds = array<i64: 9, 32>}, {pipeline_mode = #tpu.pipeline_mode<synchronous>, transform_indices = @transform_6, window_bounds = array<i64: 9, 1>}, {pipeline_mode = #tpu.pipeline_mode<synchronous>, transform_indices = @transform_7, window_bounds = array<i64: 2, 160>}, {transform_indices = @transform_8, window_bounds = array<i64: 1, 8, 8>}, {transform_indices = @transform_9, window_bounds = array<i64: 1, 9, 256>}]} {
    %c0 = arith.constant 0 : index
    %c0_0 = arith.constant 0 : index
    %0 = vector.load %arg2[%c0, %c0_0] : memref<64x36xf32, #tpu.memory_space<vmem>>, vector<64x36xf32>
    %c0_1 = arith.constant 0 : index
    %c0_2 = arith.constant 0 : index
    %c0_3 = arith.constant 0 : index
    %1 = vector.load %arg1[%c0_1, %c0_2, %c0_3] : memref<1x36x256xf32, #tpu.memory_space<vmem>>, vector<1x36x256xf32>
    %2 = vector.shape_cast %1 : vector<1x36x256xf32> to vector<36x256xf32>
    %cst = arith.constant dense<0.000000e+00> : vector<64x256xf32>
    %3 = tpu.matmul %0, %2, %cst {dimension_numbers = #tpu.dot_dimension_numbers<[1], [0], [0], [1], [0, 0, 1, 1], [], []>} : vector<64x36xf32>, vector<36x256xf32>, vector<64x256xf32> -> vector<64x256xf32>
    %c0_4 = arith.constant 0 : index
    %c0_5 = arith.constant 0 : index
    %4 = vector.load %arg3[%c0_4, %c0_5] : memref<64x1xf32, #tpu.memory_space<vmem>>, vector<64x1xf32>
    %5 = vector.broadcast %4 : vector<64x1xf32> to vector<64x256xf32>
    %6 = arith.addf %3, %5 : vector<64x256xf32>
    %c0_6 = arith.constant 0 : index
    %c0_7 = arith.constant 0 : index
    %7 = vector.load %arg6[%c0_6, %c0_7] : memref<9x32xf32, #tpu.memory_space<vmem>>, vector<9x32xf32>
    %8 = vector.extract_strided_slice %6 {offsets = [32, 0], sizes = [32, 256], strides = [1, 1]} : vector<64x256xf32> to vector<32x256xf32>
    %cst_8 = arith.constant dense<0.000000e+00> : vector<9x256xf32>
    %9 = tpu.matmul %7, %8, %cst_8 {dimension_numbers = #tpu.dot_dimension_numbers<[1], [0], [0], [1], [0, 0, 1, 1], [], []>} : vector<9x32xf32>, vector<32x256xf32>, vector<9x256xf32> -> vector<9x256xf32>
    %c0_9 = arith.constant 0 : index
    %c0_10 = arith.constant 0 : index
    %10 = vector.load %arg7[%c0_9, %c0_10] : memref<9x1xf32, #tpu.memory_space<vmem>>, vector<9x1xf32>
    %11 = vector.broadcast %10 : vector<9x1xf32> to vector<9x256xf32>
    %12 = arith.addf %9, %11 : vector<9x256xf32>
    %c0_11 = arith.constant 0 : index
    %c0_12 = arith.constant 0 : index
    %c0_13 = arith.constant 0 : index
    %13 = vector.load %arg10[%c0_11, %c0_12, %c0_13] : memref<1x9x256xf32, #tpu.memory_space<vmem>>, vector<1x9x256xf32>
    %14 = vector.shape_cast %13 : vector<1x9x256xf32> to vector<9x256xf32>
    %15 = vector.shape_cast %12 : vector<9x256xf32> to vector<1x9x256xf32>
    tpu.vector_store %arg10[%c0_11, %c0_12, %c0_13], %15 {strides = array<i32>} : memref<1x9x256xf32, #tpu.memory_space<vmem>>, vector<1x9x256xf32>,
    %cst_14 = arith.constant 0.000000e+00 : f32
    %16 = vector.broadcast %cst_14 : f32 to vector<32x384xf32>
    %c0_15 = arith.constant 0 : index
    %c0_16 = arith.constant 0 : index
    %17 = vector.load %arg11[%c0_15, %c0_16] : memref<32x384xf32, #tpu.memory_space<vmem>>, vector<32x384xf32>
    tpu.vector_store %arg11[%c0_15, %c0_16], %16 {strides = array<i32>} : memref<32x384xf32, #tpu.memory_space<vmem>>, vector<32x384xf32>,
    %18 = vector.extract_strided_slice %6 {offsets = [0, 0], sizes = [32, 256], strides = [1, 1]} : vector<64x256xf32> to vector<32x256xf32>
    %c0_17 = arith.constant 0 : index
    %c0_18 = arith.constant 0 : index
    %19 = vector.load %arg11[%c0_17, %c0_18] : memref<32x384xf32, #tpu.memory_space<vmem>>, vector<32x256xf32>
    tpu.vector_store %arg11[%c0_17, %c0_18], %18 {strides = array<i32>} : memref<32x384xf32, #tpu.memory_space<vmem>>, vector<32x256xf32>,
    %c0_19 = arith.constant 0 : index
    %c0_20 = arith.constant 0 : index
    %20 = vector.load %arg11[%c0_19, %c0_20] : memref<32x384xf32, #tpu.memory_space<vmem>>, vector<32x160xf32>
    %21 = arith.truncf %20 : vector<32x160xf32> to vector<32x160xbf16>
    %c0_21 = arith.constant 0 : index
    %c0_22 = arith.constant 0 : index
    %22 = vector.load %arg12[%c0_21, %c0_22] : memref<1568x160xbf16, #tpu.memory_space<vmem>>, vector<32x160xbf16>
    tpu.vector_store %arg12[%c0_21, %c0_22], %21 {strides = array<i32>} : memref<1568x160xbf16, #tpu.memory_space<vmem>>, vector<32x160xbf16>,
    %c0_23 = arith.constant 0 : index
    %c1 = arith.constant 1 : index
    %23 = vector.load %arg11[%c0_23, %c1] : memref<32x384xf32, #tpu.memory_space<vmem>>, vector<32x160xf32>
    %24 = arith.truncf %23 : vector<32x160xf32> to vector<32x160xbf16>
    %c32 = arith.constant 32 : index
    %c0_24 = arith.constant 0 : index
    %25 = vector.load %arg12[%c32, %c0_24] : memref<1568x160xbf16, #tpu.memory_space<vmem>>, vector<32x160xbf16>
    tpu.vector_store %arg12[%c32, %c0_24], %24 {strides = array<i32>} : memref<1568x160xbf16, #tpu.memory_space<vmem>>, vector<32x160xbf16>,
    %c0_25 = arith.constant 0 : index
    %c2 = arith.constant 2 : index
    %26 = vector.load %arg11[%c0_25, %c2] : memref<32x384xf32, #tpu.memory_space<vmem>>, vector<32x160xf32>
    %27 = arith.truncf %26 : vector<32x160xf32> to vector<32x160xbf16>
    %c64 = arith.constant 64 : index
    %c0_26 = arith.constant 0 : index
    %28 = vector.load %arg12[%c64, %c0_26] : memref<1568x160xbf16, #tpu.memory_space<vmem>>, vector<32x160xbf16>
    tpu.vector_store %arg12[%c64, %c0_26], %27 {strides = array<i32>} : memref<1568x160xbf16, #tpu.memory_space<vmem>>, vector<32x160xbf16>,
    %c0_27 = arith.constant 0 : index
    %c3 = arith.constant 3 : index
    %29 = vector.load %arg11[%c0_27, %c3] : memref<32x384xf32, #tpu.memory_space<vmem>>, vector<32x160xf32>
    %30 = arith.truncf %29 : vector<32x160xf32> to vector<32x160xbf16>
    %c96 = arith.constant 96 : index
    %c0_28 = arith.constant 0 : index
    %31 = vector.load %arg12[%c96, %c0_28] : memref<1568x160xbf16, #tpu.memory_space<vmem>>, vector<32x160xbf16>
    tpu.vector_store %arg12[%c96, %c0_28], %30 {strides = array<i32>} : memref<1568x160xbf16, #tpu.memory_space<vmem>>, vector<32x160xbf16>,
    %c0_29 = arith.constant 0 : index
    %c4 = arith.constant 4 : index
    %32 = vector.load %arg11[%c0_29, %c4] : memref<32x384xf32, #tpu.memory_space<vmem>>, vector<32x160xf32>
    %33 = arith.truncf %32 : vector<32x160xf32> to vector<32x160xbf16>
    %c128 = arith.constant 128 : index
    %c0_30 = arith.constant 0 : index
    %34 = vector.load %arg12[%c128, %c0_30] : memref<1568x160xbf16, #tpu.memory_space<vmem>>, vector<32x160xbf16>
    tpu.vector_store %arg12[%c128, %c0_30], %33 {strides = array<i32>} : memref<1568x160xbf16, #tpu.memory_space<vmem>>, vector<32x160xbf16>,
    %c0_31 = arith.constant 0 : index
    %c5 = arith.constant 5 : index
    %35 = vector.load %arg11[%c0_31, %c5] : memref<32x384xf32, #tpu.memory_space<vmem>>, vector<32x160xf32>
    %36 = arith.truncf %35 : vector<32x160xf32> to vector<32x160xbf16>
    %c160 = arith.constant 160 : index
    %c0_32 = arith.constant 0 : index
    %37 = vector.load %arg12[%c160, %c0_32] : memref<1568x160xbf16, #tpu.memory_space<vmem>>, vector<32x160xbf16>
    tpu.vector_store %arg12[%c160, %c0_32], %36 {strides = array<i32>} : memref<1568x160xbf16, #tpu.memory_space<vmem>>, vector<32x160xbf16>,
    %c0_33 = arith.constant 0 : index
    %c6 = arith.constant 6 : index
    %38 = vector.load %arg11[%c0_33, %c6] : memref<32x384xf32, #tpu.memory_space<vmem>>, vector<32x160xf32>
    %39 = arith.truncf %38 : vector<32x160xf32> to vector<32x160xbf16>
    %c192 = arith.constant 192 : index
    %c0_34 = arith.constant 0 : index
    %40 = vector.load %arg12[%c192, %c0_34] : memref<1568x160xbf16, #tpu.memory_space<vmem>>, vector<32x160xbf16>
    tpu.vector_store %arg12[%c192, %c0_34], %39 {strides = array<i32>} : memref<1568x160xbf16, #tpu.memory_space<vmem>>, vector<32x160xbf16>,
    %c0_35 = arith.constant 0 : index
    %c16 = arith.constant 16 : index
    %41 = vector.load %arg11[%c0_35, %c16] : memref<32x384xf32, #tpu.memory_space<vmem>>, vector<32x160xf32>
    %42 = arith.truncf %41 : vector<32x160xf32> to vector<32x160xbf16>
    %c224 = arith.constant 224 : index
    %c0_36 = arith.constant 0 : index
    %43 = vector.load %arg12[%c224, %c0_36] : memref<1568x160xbf16, #tpu.memory_space<vmem>>, vector<32x160xbf16>
    tpu.vector_store %arg12[%c224, %c0_36], %42 {strides = array<i32>} : memref<1568x160xbf16, #tpu.memory_space<vmem>>, vector<32x160xbf16>,
    %c0_37 = arith.constant 0 : index
    %c17 = arith.constant 17 : index
    %44 = vector.load %arg11[%c0_37, %c17] : memref<32x384xf32, #tpu.memory_space<vmem>>, vector<32x160xf32>
    %45 = arith.truncf %44 : vector<32x160xf32> to vector<32x160xbf16>
    %c256 = arith.constant 256 : index
    %c0_38 = arith.constant 0 : index
    %46 = vector.load %arg12[%c256, %c0_38] : memref<1568x160xbf16, #tpu.memory_space<vmem>>, vector<32x160xbf16>
    tpu.vector_store %arg12[%c256, %c0_38], %45 {strides = array<i32>} : memref<1568x160xbf16, #tpu.memory_space<vmem>>, vector<32x160xbf16>,
    %c0_39 = arith.constant 0 : index
    %c18 = arith.constant 18 : index
    %47 = vector.load %arg11[%c0_39, %c18] : memref<32x384xf32, #tpu.memory_space<vmem>>, vector<32x160xf32>
    %48 = arith.truncf %47 : vector<32x160xf32> to vector<32x160xbf16>
    %c288 = arith.constant 288 : index
    %c0_40 = arith.constant 0 : index
    %49 = vector.load %arg12[%c288, %c0_40] : memref<1568x160xbf16, #tpu.memory_space<vmem>>, vector<32x160xbf16>
    tpu.vector_store %arg12[%c288, %c0_40], %48 {strides = array<i32>} : memref<1568x160xbf16, #tpu.memory_space<vmem>>, vector<32x160xbf16>,
    %c0_41 = arith.constant 0 : index
    %c19 = arith.constant 19 : index
    %50 = vector.load %arg11[%c0_41, %c19] : memref<32x384xf32, #tpu.memory_space<vmem>>, vector<32x160xf32>
    %51 = arith.truncf %50 : vector<32x160xf32> to vector<32x160xbf16>
    %c320 = arith.constant 320 : index
    %c0_42 = arith.constant 0 : index
    %52 = vector.load %arg12[%c320, %c0_42] : memref<1568x160xbf16, #tpu.memory_space<vmem>>, vector<32x160xbf16>
    tpu.vector_store %arg12[%c320, %c0_42], %51 {strides = array<i32>} : memref<1568x160xbf16, #tpu.memory_space<vmem>>, vector<32x160xbf16>,
    %c0_43 = arith.constant 0 : index
    %c20 = arith.constant 20 : index
    %53 = vector.load %arg11[%c0_43, %c20] : memref<32x384xf32, #tpu.memory_space<vmem>>, vector<32x160xf32>
    %54 = arith.truncf %53 : vector<32x160xf32> to vector<32x160xbf16>
    %c352 = arith.constant 352 : index
    %c0_44 = arith.constant 0 : index
    %55 = vector.load %arg12[%c352, %c0_44] : memref<1568x160xbf16, #tpu.memory_space<vmem>>, vector<32x160xbf16>
    tpu.vector_store %arg12[%c352, %c0_44], %54 {strides = array<i32>} : memref<1568x160xbf16, #tpu.memory_space<vmem>>, vector<32x160xbf16>,
    %c0_45 = arith.constant 0 : index
    %c21 = arith.constant 21 : index
    %56 = vector.load %arg11[%c0_45, %c21] : memref<32x384xf32, #tpu.memory_space<vmem>>, vector<32x160xf32>
    %57 = arith.truncf %56 : vector<32x160xf32> to vector<32x160xbf16>
    %c384 = arith.constant 384 : index
    %c0_46 = arith.constant 0 : index
    %58 = vector.load %arg12[%c384, %c0_46] : memref<1568x160xbf16, #tpu.memory_space<vmem>>, vector<32x160xbf16>
    tpu.vector_store %arg12[%c384, %c0_46], %57 {strides = array<i32>} : memref<1568x160xbf16, #tpu.memory_space<vmem>>, vector<32x160xbf16>,
    %c0_47 = arith.constant 0 : index
    %c22 = arith.constant 22 : index
    %59 = vector.load %arg11[%c0_47, %c22] : memref<32x384xf32, #tpu.memory_space<vmem>>, vector<32x160xf32>
    %60 = arith.truncf %59 : vector<32x160xf32> to vector<32x160xbf16>
    %c416 = arith.constant 416 : index
    %c0_48 = arith.constant 0 : index
    %61 = vector.load %arg12[%c416, %c0_48] : memref<1568x160xbf16, #tpu.memory_space<vmem>>, vector<32x160xbf16>
    tpu.vector_store %arg12[%c416, %c0_48], %60 {strides = array<i32>} : memref<1568x160xbf16, #tpu.memory_space<vmem>>, vector<32x160xbf16>,
    %c0_49 = arith.constant 0 : index
    %c32_50 = arith.constant 32 : index
    %62 = vector.load %arg11[%c0_49, %c32_50] : memref<32x384xf32, #tpu.memory_space<vmem>>, vector<32x160xf32>
    %63 = arith.truncf %62 : vector<32x160xf32> to vector<32x160xbf16>
    %c448 = arith.constant 448 : index
    %c0_51 = arith.constant 0 : index
    %64 = vector.load %arg12[%c448, %c0_51] : memref<1568x160xbf16, #tpu.memory_space<vmem>>, vector<32x160xbf16>
    tpu.vector_store %arg12[%c448, %c0_51], %63 {strides = array<i32>} : memref<1568x160xbf16, #tpu.memory_space<vmem>>, vector<32x160xbf16>,
    %c0_52 = arith.constant 0 : index
    %c33 = arith.constant 33 : index
    %65 = vector.load %arg11[%c0_52, %c33] : memref<32x384xf32, #tpu.memory_space<vmem>>, vector<32x160xf32>
    %66 = arith.truncf %65 : vector<32x160xf32> to vector<32x160xbf16>
    %c480 = arith.constant 480 : index
    %c0_53 = arith.constant 0 : index
    %67 = vector.load %arg12[%c480, %c0_53] : memref<1568x160xbf16, #tpu.memory_space<vmem>>, vector<32x160xbf16>
    tpu.vector_store %arg12[%c480, %c0_53], %66 {strides = array<i32>} : memref<1568x160xbf16, #tpu.memory_space<vmem>>, vector<32x160xbf16>,
    %c0_54 = arith.constant 0 : index
    %c34 = arith.constant 34 : index
    %68 = vector.load %arg11[%c0_54, %c34] : memref<32x384xf32, #tpu.memory_space<vmem>>, vector<32x160xf32>
    %69 = arith.truncf %68 : vector<32x160xf32> to vector<32x160xbf16>
    %c512 = arith.constant 512 : index
    %c0_55 = arith.constant 0 : index
    %70 = vector.load %arg12[%c512, %c0_55] : memref<1568x160xbf16, #tpu.memory_space<vmem>>, vector<32x160xbf16>
    tpu.vector_store %arg12[%c512, %c0_55], %69 {strides = array<i32>} : memref<1568x160xbf16, #tpu.memory_space<vmem>>, vector<32x160xbf16>,
    %c0_56 = arith.constant 0 : index
    %c35 = arith.constant 35 : index
    %71 = vector.load %arg11[%c0_56, %c35] : memref<32x384xf32, #tpu.memory_space<vmem>>, vector<32x160xf32>
    %72 = arith.truncf %71 : vector<32x160xf32> to vector<32x160xbf16>
    %c544 = arith.constant 544 : index
    %c0_57 = arith.constant 0 : index
    %73 = vector.load %arg12[%c544, %c0_57] : memref<1568x160xbf16, #tpu.memory_space<vmem>>, vector<32x160xbf16>
    tpu.vector_store %arg12[%c544, %c0_57], %72 {strides = array<i32>} : memref<1568x160xbf16, #tpu.memory_space<vmem>>, vector<32x160xbf16>,
    %c0_58 = arith.constant 0 : index
    %c36 = arith.constant 36 : index
    %74 = vector.load %arg11[%c0_58, %c36] : memref<32x384xf32, #tpu.memory_space<vmem>>, vector<32x160xf32>
    %75 = arith.truncf %74 : vector<32x160xf32> to vector<32x160xbf16>
    %c576 = arith.constant 576 : index
    %c0_59 = arith.constant 0 : index
    %76 = vector.load %arg12[%c576, %c0_59] : memref<1568x160xbf16, #tpu.memory_space<vmem>>, vector<32x160xbf16>
    tpu.vector_store %arg12[%c576, %c0_59], %75 {strides = array<i32>} : memref<1568x160xbf16, #tpu.memory_space<vmem>>, vector<32x160xbf16>,
    %c0_60 = arith.constant 0 : index
    %c37 = arith.constant 37 : index
    %77 = vector.load %arg11[%c0_60, %c37] : memref<32x384xf32, #tpu.memory_space<vmem>>, vector<32x160xf32>
    %78 = arith.truncf %77 : vector<32x160xf32> to vector<32x160xbf16>
    %c608 = arith.constant 608 : index
    %c0_61 = arith.constant 0 : index
    %79 = vector.load %arg12[%c608, %c0_61] : memref<1568x160xbf16, #tpu.memory_space<vmem>>, vector<32x160xbf16>
    tpu.vector_store %arg12[%c608, %c0_61], %78 {strides = array<i32>} : memref<1568x160xbf16, #tpu.memory_space<vmem>>, vector<32x160xbf16>,
    %c0_62 = arith.constant 0 : index
    %c38 = arith.constant 38 : index
    %80 = vector.load %arg11[%c0_62, %c38] : memref<32x384xf32, #tpu.memory_space<vmem>>, vector<32x160xf32>
    %81 = arith.truncf %80 : vector<32x160xf32> to vector<32x160xbf16>
    %c640 = arith.constant 640 : index
    %c0_63 = arith.constant 0 : index
    %82 = vector.load %arg12[%c640, %c0_63] : memref<1568x160xbf16, #tpu.memory_space<vmem>>, vector<32x160xbf16>
    tpu.vector_store %arg12[%c640, %c0_63], %81 {strides = array<i32>} : memref<1568x160xbf16, #tpu.memory_space<vmem>>, vector<32x160xbf16>,
    %c0_64 = arith.constant 0 : index
    %c48 = arith.constant 48 : index
    %83 = vector.load %arg11[%c0_64, %c48] : memref<32x384xf32, #tpu.memory_space<vmem>>, vector<32x160xf32>
    %84 = arith.truncf %83 : vector<32x160xf32> to vector<32x160xbf16>
    %c672 = arith.constant 672 : index
    %c0_65 = arith.constant 0 : index
    %85 = vector.load %arg12[%c672, %c0_65] : memref<1568x160xbf16, #tpu.memory_space<vmem>>, vector<32x160xbf16>
    tpu.vector_store %arg12[%c672, %c0_65], %84 {strides = array<i32>} : memref<1568x160xbf16, #tpu.memory_space<vmem>>, vector<32x160xbf16>,
    %c0_66 = arith.constant 0 : index
    %c49 = arith.constant 49 : index
    %86 = vector.load %arg11[%c0_66, %c49] : memref<32x384xf32, #tpu.memory_space<vmem>>, vector<32x160xf32>
    %87 = arith.truncf %86 : vector<32x160xf32> to vector<32x160xbf16>
    %c704 = arith.constant 704 : index
    %c0_67 = arith.constant 0 : index
    %88 = vector.load %arg12[%c704, %c0_67] : memref<1568x160xbf16, #tpu.memory_space<vmem>>, vector<32x160xbf16>
    tpu.vector_store %arg12[%c704, %c0_67], %87 {strides = array<i32>} : memref<1568x160xbf16, #tpu.memory_space<vmem>>, vector<32x160xbf16>,
    %c0_68 = arith.constant 0 : index
    %c50 = arith.constant 50 : index
    %89 = vector.load %arg11[%c0_68, %c50] : memref<32x384xf32, #tpu.memory_space<vmem>>, vector<32x160xf32>
    %90 = arith.truncf %89 : vector<32x160xf32> to vector<32x160xbf16>
    %c736 = arith.constant 736 : index
    %c0_69 = arith.constant 0 : index
    %91 = vector.load %arg12[%c736, %c0_69] : memref<1568x160xbf16, #tpu.memory_space<vmem>>, vector<32x160xbf16>
    tpu.vector_store %arg12[%c736, %c0_69], %90 {strides = array<i32>} : memref<1568x160xbf16, #tpu.memory_space<vmem>>, vector<32x160xbf16>,
    %c0_70 = arith.constant 0 : index
    %c51 = arith.constant 51 : index
    %92 = vector.load %arg11[%c0_70, %c51] : memref<32x384xf32, #tpu.memory_space<vmem>>, vector<32x160xf32>
    %93 = arith.truncf %92 : vector<32x160xf32> to vector<32x160xbf16>
    %c768 = arith.constant 768 : index
    %c0_71 = arith.constant 0 : index
    %94 = vector.load %arg12[%c768, %c0_71] : memref<1568x160xbf16, #tpu.memory_space<vmem>>, vector<32x160xbf16>
    tpu.vector_store %arg12[%c768, %c0_71], %93 {strides = array<i32>} : memref<1568x160xbf16, #tpu.memory_space<vmem>>, vector<32x160xbf16>,
    %c0_72 = arith.constant 0 : index
    %c52 = arith.constant 52 : index
    %95 = vector.load %arg11[%c0_72, %c52] : memref<32x384xf32, #tpu.memory_space<vmem>>, vector<32x160xf32>
    %96 = arith.truncf %95 : vector<32x160xf32> to vector<32x160xbf16>
    %c800 = arith.constant 800 : index
    %c0_73 = arith.constant 0 : index
    %97 = vector.load %arg12[%c800, %c0_73] : memref<1568x160xbf16, #tpu.memory_space<vmem>>, vector<32x160xbf16>
    tpu.vector_store %arg12[%c800, %c0_73], %96 {strides = array<i32>} : memref<1568x160xbf16, #tpu.memory_space<vmem>>, vector<32x160xbf16>,
    %c0_74 = arith.constant 0 : index
    %c53 = arith.constant 53 : index
    %98 = vector.load %arg11[%c0_74, %c53] : memref<32x384xf32, #tpu.memory_space<vmem>>, vector<32x160xf32>
    %99 = arith.truncf %98 : vector<32x160xf32> to vector<32x160xbf16>
    %c832 = arith.constant 832 : index
    %c0_75 = arith.constant 0 : index
    %100 = vector.load %arg12[%c832, %c0_75] : memref<1568x160xbf16, #tpu.memory_space<vmem>>, vector<32x160xbf16>
    tpu.vector_store %arg12[%c832, %c0_75], %99 {strides = array<i32>} : memref<1568x160xbf16, #tpu.memory_space<vmem>>, vector<32x160xbf16>,
    %c0_76 = arith.constant 0 : index
    %c54 = arith.constant 54 : index
    %101 = vector.load %arg11[%c0_76, %c54] : memref<32x384xf32, #tpu.memory_space<vmem>>, vector<32x160xf32>
    %102 = arith.truncf %101 : vector<32x160xf32> to vector<32x160xbf16>
    %c864 = arith.constant 864 : index
    %c0_77 = arith.constant 0 : index
    %103 = vector.load %arg12[%c864, %c0_77] : memref<1568x160xbf16, #tpu.memory_space<vmem>>, vector<32x160xbf16>
    tpu.vector_store %arg12[%c864, %c0_77], %102 {strides = array<i32>} : memref<1568x160xbf16, #tpu.memory_space<vmem>>, vector<32x160xbf16>,
    %c0_78 = arith.constant 0 : index
    %c64_79 = arith.constant 64 : index
    %104 = vector.load %arg11[%c0_78, %c64_79] : memref<32x384xf32, #tpu.memory_space<vmem>>, vector<32x160xf32>
    %105 = arith.truncf %104 : vector<32x160xf32> to vector<32x160xbf16>
    %c896 = arith.constant 896 : index
    %c0_80 = arith.constant 0 : index
    %106 = vector.load %arg12[%c896, %c0_80] : memref<1568x160xbf16, #tpu.memory_space<vmem>>, vector<32x160xbf16>
    tpu.vector_store %arg12[%c896, %c0_80], %105 {strides = array<i32>} : memref<1568x160xbf16, #tpu.memory_space<vmem>>, vector<32x160xbf16>,
    %c0_81 = arith.constant 0 : index
    %c65 = arith.constant 65 : index
    %107 = vector.load %arg11[%c0_81, %c65] : memref<32x384xf32, #tpu.memory_space<vmem>>, vector<32x160xf32>
    %108 = arith.truncf %107 : vector<32x160xf32> to vector<32x160xbf16>
    %c928 = arith.constant 928 : index
    %c0_82 = arith.constant 0 : index
    %109 = vector.load %arg12[%c928, %c0_82] : memref<1568x160xbf16, #tpu.memory_space<vmem>>, vector<32x160xbf16>
    tpu.vector_store %arg12[%c928, %c0_82], %108 {strides = array<i32>} : memref<1568x160xbf16, #tpu.memory_space<vmem>>, vector<32x160xbf16>,
    %c0_83 = arith.constant 0 : index
    %c66 = arith.constant 66 : index
    %110 = vector.load %arg11[%c0_83, %c66] : memref<32x384xf32, #tpu.memory_space<vmem>>, vector<32x160xf32>
    %111 = arith.truncf %110 : vector<32x160xf32> to vector<32x160xbf16>
    %c960 = arith.constant 960 : index
    %c0_84 = arith.constant 0 : index
    %112 = vector.load %arg12[%c960, %c0_84] : memref<1568x160xbf16, #tpu.memory_space<vmem>>, vector<32x160xbf16>
    tpu.vector_store %arg12[%c960, %c0_84], %111 {strides = array<i32>} : memref<1568x160xbf16, #tpu.memory_space<vmem>>, vector<32x160xbf16>,
    %c0_85 = arith.constant 0 : index
    %c67 = arith.constant 67 : index
    %113 = vector.load %arg11[%c0_85, %c67] : memref<32x384xf32, #tpu.memory_space<vmem>>, vector<32x160xf32>
    %114 = arith.truncf %113 : vector<32x160xf32> to vector<32x160xbf16>
    %c992 = arith.constant 992 : index
    %c0_86 = arith.constant 0 : index
    %115 = vector.load %arg12[%c992, %c0_86] : memref<1568x160xbf16, #tpu.memory_space<vmem>>, vector<32x160xbf16>
    tpu.vector_store %arg12[%c992, %c0_86], %114 {strides = array<i32>} : memref<1568x160xbf16, #tpu.memory_space<vmem>>, vector<32x160xbf16>,
    %c0_87 = arith.constant 0 : index
    %c68 = arith.constant 68 : index
    %116 = vector.load %arg11[%c0_87, %c68] : memref<32x384xf32, #tpu.memory_space<vmem>>, vector<32x160xf32>
    %117 = arith.truncf %116 : vector<32x160xf32> to vector<32x160xbf16>
    %c1024 = arith.constant 1024 : index
    %c0_88 = arith.constant 0 : index
    %118 = vector.load %arg12[%c1024, %c0_88] : memref<1568x160xbf16, #tpu.memory_space<vmem>>, vector<32x160xbf16>
    tpu.vector_store %arg12[%c1024, %c0_88], %117 {strides = array<i32>} : memref<1568x160xbf16, #tpu.memory_space<vmem>>, vector<32x160xbf16>,
    %c0_89 = arith.constant 0 : index
    %c69 = arith.constant 69 : index
    %119 = vector.load %arg11[%c0_89, %c69] : memref<32x384xf32, #tpu.memory_space<vmem>>, vector<32x160xf32>
    %120 = arith.truncf %119 : vector<32x160xf32> to vector<32x160xbf16>
    %c1056 = arith.constant 1056 : index
    %c0_90 = arith.constant 0 : index
    %121 = vector.load %arg12[%c1056, %c0_90] : memref<1568x160xbf16, #tpu.memory_space<vmem>>, vector<32x160xbf16>
    tpu.vector_store %arg12[%c1056, %c0_90], %120 {strides = array<i32>} : memref<1568x160xbf16, #tpu.memory_space<vmem>>, vector<32x160xbf16>,
    %c0_91 = arith.constant 0 : index
    %c70 = arith.constant 70 : index
    %122 = vector.load %arg11[%c0_91, %c70] : memref<32x384xf32, #tpu.memory_space<vmem>>, vector<32x160xf32>
    %123 = arith.truncf %122 : vector<32x160xf32> to vector<32x160xbf16>
    %c1088 = arith.constant 1088 : index
    %c0_92 = arith.constant 0 : index
    %124 = vector.load %arg12[%c1088, %c0_92] : memref<1568x160xbf16, #tpu.memory_space<vmem>>, vector<32x160xbf16>
    tpu.vector_store %arg12[%c1088, %c0_92], %123 {strides = array<i32>} : memref<1568x160xbf16, #tpu.memory_space<vmem>>, vector<32x160xbf16>,
    %c0_93 = arith.constant 0 : index
    %c80 = arith.constant 80 : index
    %125 = vector.load %arg11[%c0_93, %c80] : memref<32x384xf32, #tpu.memory_space<vmem>>, vector<32x160xf32>
    %126 = arith.truncf %125 : vector<32x160xf32> to vector<32x160xbf16>
    %c1120 = arith.constant 1120 : index
    %c0_94 = arith.constant 0 : index
    %127 = vector.load %arg12[%c1120, %c0_94] : memref<1568x160xbf16, #tpu.memory_space<vmem>>, vector<32x160xbf16>
    tpu.vector_store %arg12[%c1120, %c0_94], %126 {strides = array<i32>} : memref<1568x160xbf16, #tpu.memory_space<vmem>>, vector<32x160xbf16>,
    %c0_95 = arith.constant 0 : index
    %c81 = arith.constant 81 : index
    %128 = vector.load %arg11[%c0_95, %c81] : memref<32x384xf32, #tpu.memory_space<vmem>>, vector<32x160xf32>
    %129 = arith.truncf %128 : vector<32x160xf32> to vector<32x160xbf16>
    %c1152 = arith.constant 1152 : index
    %c0_96 = arith.constant 0 : index
    %130 = vector.load %arg12[%c1152, %c0_96] : memref<1568x160xbf16, #tpu.memory_space<vmem>>, vector<32x160xbf16>
    tpu.vector_store %arg12[%c1152, %c0_96], %129 {strides = array<i32>} : memref<1568x160xbf16, #tpu.memory_space<vmem>>, vector<32x160xbf16>,
    %c0_97 = arith.constant 0 : index
    %c82 = arith.constant 82 : index
    %131 = vector.load %arg11[%c0_97, %c82] : memref<32x384xf32, #tpu.memory_space<vmem>>, vector<32x160xf32>
    %132 = arith.truncf %131 : vector<32x160xf32> to vector<32x160xbf16>
    %c1184 = arith.constant 1184 : index
    %c0_98 = arith.constant 0 : index
    %133 = vector.load %arg12[%c1184, %c0_98] : memref<1568x160xbf16, #tpu.memory_space<vmem>>, vector<32x160xbf16>
    tpu.vector_store %arg12[%c1184, %c0_98], %132 {strides = array<i32>} : memref<1568x160xbf16, #tpu.memory_space<vmem>>, vector<32x160xbf16>,
    %c0_99 = arith.constant 0 : index
    %c83 = arith.constant 83 : index
    %134 = vector.load %arg11[%c0_99, %c83] : memref<32x384xf32, #tpu.memory_space<vmem>>, vector<32x160xf32>
    %135 = arith.truncf %134 : vector<32x160xf32> to vector<32x160xbf16>
    %c1216 = arith.constant 1216 : index
    %c0_100 = arith.constant 0 : index
    %136 = vector.load %arg12[%c1216, %c0_100] : memref<1568x160xbf16, #tpu.memory_space<vmem>>, vector<32x160xbf16>
    tpu.vector_store %arg12[%c1216, %c0_100], %135 {strides = array<i32>} : memref<1568x160xbf16, #tpu.memory_space<vmem>>, vector<32x160xbf16>,
    %c0_101 = arith.constant 0 : index
    %c84 = arith.constant 84 : index
    %137 = vector.load %arg11[%c0_101, %c84] : memref<32x384xf32, #tpu.memory_space<vmem>>, vector<32x160xf32>
    %138 = arith.truncf %137 : vector<32x160xf32> to vector<32x160xbf16>
    %c1248 = arith.constant 1248 : index
    %c0_102 = arith.constant 0 : index
    %139 = vector.load %arg12[%c1248, %c0_102] : memref<1568x160xbf16, #tpu.memory_space<vmem>>, vector<32x160xbf16>
    tpu.vector_store %arg12[%c1248, %c0_102], %138 {strides = array<i32>} : memref<1568x160xbf16, #tpu.memory_space<vmem>>, vector<32x160xbf16>,
    %c0_103 = arith.constant 0 : index
    %c85 = arith.constant 85 : index
    %140 = vector.load %arg11[%c0_103, %c85] : memref<32x384xf32, #tpu.memory_space<vmem>>, vector<32x160xf32>
    %141 = arith.truncf %140 : vector<32x160xf32> to vector<32x160xbf16>
    %c1280 = arith.constant 1280 : index
    %c0_104 = arith.constant 0 : index
    %142 = vector.load %arg12[%c1280, %c0_104] : memref<1568x160xbf16, #tpu.memory_space<vmem>>, vector<32x160xbf16>
    tpu.vector_store %arg12[%c1280, %c0_104], %141 {strides = array<i32>} : memref<1568x160xbf16, #tpu.memory_space<vmem>>, vector<32x160xbf16>,
    %c0_105 = arith.constant 0 : index
    %c86 = arith.constant 86 : index
    %143 = vector.load %arg11[%c0_105, %c86] : memref<32x384xf32, #tpu.memory_space<vmem>>, vector<32x160xf32>
    %144 = arith.truncf %143 : vector<32x160xf32> to vector<32x160xbf16>
    %c1312 = arith.constant 1312 : index
    %c0_106 = arith.constant 0 : index
    %145 = vector.load %arg12[%c1312, %c0_106] : memref<1568x160xbf16, #tpu.memory_space<vmem>>, vector<32x160xbf16>
    tpu.vector_store %arg12[%c1312, %c0_106], %144 {strides = array<i32>} : memref<1568x160xbf16, #tpu.memory_space<vmem>>, vector<32x160xbf16>,
    %c0_107 = arith.constant 0 : index
    %c96_108 = arith.constant 96 : index
    %146 = vector.load %arg11[%c0_107, %c96_108] : memref<32x384xf32, #tpu.memory_space<vmem>>, vector<32x160xf32>
    %147 = arith.truncf %146 : vector<32x160xf32> to vector<32x160xbf16>
    %c1344 = arith.constant 1344 : index
    %c0_109 = arith.constant 0 : index
    %148 = vector.load %arg12[%c1344, %c0_109] : memref<1568x160xbf16, #tpu.memory_space<vmem>>, vector<32x160xbf16>
    tpu.vector_store %arg12[%c1344, %c0_109], %147 {strides = array<i32>} : memref<1568x160xbf16, #tpu.memory_space<vmem>>, vector<32x160xbf16>,
    %c0_110 = arith.constant 0 : index
    %c97 = arith.constant 97 : index
    %149 = vector.load %arg11[%c0_110, %c97] : memref<32x384xf32, #tpu.memory_space<vmem>>, vector<32x160xf32>
    %150 = arith.truncf %149 : vector<32x160xf32> to vector<32x160xbf16>
    %c1376 = arith.constant 1376 : index
    %c0_111 = arith.constant 0 : index
    %151 = vector.load %arg12[%c1376, %c0_111] : memref<1568x160xbf16, #tpu.memory_space<vmem>>, vector<32x160xbf16>
    tpu.vector_store %arg12[%c1376, %c0_111], %150 {strides = array<i32>} : memref<1568x160xbf16, #tpu.memory_space<vmem>>, vector<32x160xbf16>,
    %c0_112 = arith.constant 0 : index
    %c98 = arith.constant 98 : index
    %152 = vector.load %arg11[%c0_112, %c98] : memref<32x384xf32, #tpu.memory_space<vmem>>, vector<32x160xf32>
    %153 = arith.truncf %152 : vector<32x160xf32> to vector<32x160xbf16>
    %c1408 = arith.constant 1408 : index
    %c0_113 = arith.constant 0 : index
    %154 = vector.load %arg12[%c1408, %c0_113] : memref<1568x160xbf16, #tpu.memory_space<vmem>>, vector<32x160xbf16>
    tpu.vector_store %arg12[%c1408, %c0_113], %153 {strides = array<i32>} : memref<1568x160xbf16, #tpu.memory_space<vmem>>, vector<32x160xbf16>,
    %c0_114 = arith.constant 0 : index
    %c99 = arith.constant 99 : index
    %155 = vector.load %arg11[%c0_114, %c99] : memref<32x384xf32, #tpu.memory_space<vmem>>, vector<32x160xf32>
    %156 = arith.truncf %155 : vector<32x160xf32> to vector<32x160xbf16>
    %c1440 = arith.constant 1440 : index
    %c0_115 = arith.constant 0 : index
    %157 = vector.load %arg12[%c1440, %c0_115] : memref<1568x160xbf16, #tpu.memory_space<vmem>>, vector<32x160xbf16>
    tpu.vector_store %arg12[%c1440, %c0_115], %156 {strides = array<i32>} : memref<1568x160xbf16, #tpu.memory_space<vmem>>, vector<32x160xbf16>,
    %c0_116 = arith.constant 0 : index
    %c100 = arith.constant 100 : index
    %158 = vector.load %arg11[%c0_116, %c100] : memref<32x384xf32, #tpu.memory_space<vmem>>, vector<32x160xf32>
    %159 = arith.truncf %158 : vector<32x160xf32> to vector<32x160xbf16>
    %c1472 = arith.constant 1472 : index
    %c0_117 = arith.constant 0 : index
    %160 = vector.load %arg12[%c1472, %c0_117] : memref<1568x160xbf16, #tpu.memory_space<vmem>>, vector<32x160xbf16>
    tpu.vector_store %arg12[%c1472, %c0_117], %159 {strides = array<i32>} : memref<1568x160xbf16, #tpu.memory_space<vmem>>, vector<32x160xbf16>,
    %c0_118 = arith.constant 0 : index
    %c101 = arith.constant 101 : index
    %161 = vector.load %arg11[%c0_118, %c101] : memref<32x384xf32, #tpu.memory_space<vmem>>, vector<32x160xf32>
    %162 = arith.truncf %161 : vector<32x160xf32> to vector<32x160xbf16>
    %c1504 = arith.constant 1504 : index
    %c0_119 = arith.constant 0 : index
    %163 = vector.load %arg12[%c1504, %c0_119] : memref<1568x160xbf16, #tpu.memory_space<vmem>>, vector<32x160xbf16>
    tpu.vector_store %arg12[%c1504, %c0_119], %162 {strides = array<i32>} : memref<1568x160xbf16, #tpu.memory_space<vmem>>, vector<32x160xbf16>,
    %c0_120 = arith.constant 0 : index
    %c102 = arith.constant 102 : index
    %164 = vector.load %arg11[%c0_120, %c102] : memref<32x384xf32, #tpu.memory_space<vmem>>, vector<32x160xf32>
    %165 = arith.truncf %164 : vector<32x160xf32> to vector<32x160xbf16>
    %c1536 = arith.constant 1536 : index
    %c0_121 = arith.constant 0 : index
    %166 = vector.load %arg12[%c1536, %c0_121] : memref<1568x160xbf16, #tpu.memory_space<vmem>>, vector<32x160xbf16>
    tpu.vector_store %arg12[%c1536, %c0_121], %165 {strides = array<i32>} : memref<1568x160xbf16, #tpu.memory_space<vmem>>, vector<32x160xbf16>,
    %c0_122 = arith.constant 0 : index
    %c0_123 = arith.constant 0 : index
    %167 = vector.load %arg4[%c0_122, %c0_123] : memref<40x1568xbf16, #tpu.memory_space<vmem>>, vector<40x1568xbf16>
    %c0_124 = arith.constant 0 : index
    %c0_125 = arith.constant 0 : index
    %168 = vector.load %arg12[%c0_124, %c0_125] : memref<1568x160xbf16, #tpu.memory_space<vmem>>, vector<1568x160xbf16>
    %cst_126 = arith.constant dense<0.000000e+00> : vector<40x160xf32>
    %169 = tpu.matmul %167, %168, %cst_126 {dimension_numbers = #tpu.dot_dimension_numbers<[1], [0], [0], [1], [0, 0, 1, 1], [], []>} : vector<40x1568xbf16>, vector<1568x160xbf16>, vector<40x160xf32> -> vector<40x160xf32>
    %c0_127 = arith.constant 0 : index
    %c0_128 = arith.constant 0 : index
    %170 = vector.load %arg5[%c0_127, %c0_128] : memref<40x1xf32, #tpu.memory_space<vmem>>, vector<40x1xf32>
    %171 = vector.broadcast %170 : vector<40x1xf32> to vector<40x160xf32>
    %172 = arith.addf %169, %171 : vector<40x160xf32>
    %173 = tpu.iota {dimensions = array<i32: 1>} : vector<1x160xi32>
    %c16_i32 = arith.constant 16 : i32
    %c0_i32 = arith.constant 0 : i32
    %174 = arith.cmpi eq, %c16_i32, %c0_i32 : i32
    %c1_i32 = arith.constant 1 : i32
    %175 = arith.select %174, %c1_i32, %c16_i32 : i32
    %176 = vector.broadcast %175 : i32 to vector<1x160xi32>
    %177 = arith.remsi %173, %176 : vector<1x160xi32>
    %c0_i32_129 = arith.constant 0 : i32
    %178 = vector.broadcast %c0_i32_129 : i32 to vector<1x160xi32>
    %179 = arith.cmpi ne, %177, %178 : vector<1x160xi32>
    %c0_i32_130 = arith.constant 0 : i32
    %180 = vector.broadcast %c0_i32_130 : i32 to vector<1x160xi32>
    %181 = arith.cmpi slt, %177, %180 : vector<1x160xi32>
    %c0_i32_131 = arith.constant 0 : i32
    %182 = arith.cmpi slt, %175, %c0_i32_131 : i32
    %183 = vector.broadcast %182 : i1 to vector<1x160xi1>
    %184 = vector.broadcast %183 : vector<1x160xi1> to vector<1x160xi1>
    %185 = arith.xori %181, %184 : vector<1x160xi1>
    %186 = arith.andi %185, %179 : vector<1x160xi1>
    %187 = vector.broadcast %175 : i32 to vector<1x160xi32>
    %188 = arith.addi %177, %187 : vector<1x160xi32>
    %189 = arith.select %186, %188, %177 : vector<1x160xi1>, vector<1x160xi32>
    %c10_i32 = arith.constant 10 : i32
    %190 = vector.broadcast %c10_i32 : i32 to vector<1x160xi32>
    %191 = arith.cmpi slt, %189, %190 : vector<1x160xi32>
    %192 = vector.extract_strided_slice %172 {offsets = [0, 0], sizes = [8, 160], strides = [1, 1]} : vector<40x160xf32> to vector<8x160xf32>
    %cst_132 = arith.constant 1.000000e+01 : f32
    %193 = vector.broadcast %cst_132 : f32 to vector<8x160xf32>
    %194 = arith.mulf %192, %193 : vector<8x160xf32>
    %cst_133 = arith.constant -1.000000e+30 : f32
    %195 = vector.shape_cast %191 : vector<1x160xi1> to vector<1x160xi1>
    %196 = vector.broadcast %195 : vector<1x160xi1> to vector<8x160xi1>
    %197 = vector.broadcast %cst_133 : f32 to vector<8x160xf32>
    %198 = arith.select %196, %194, %197 : vector<8x160xi1>, vector<8x160xf32>
    %cst_134 = arith.constant dense<0xFF800000> : vector<8xf32>
    %199 = vector.multi_reduction <maximumf>, %198, %cst_134 [1] : vector<8x160xf32> to vector<8xf32>
    %200 = vector.shape_cast %199 : vector<8xf32> to vector<8x1xf32>
    %201 = vector.broadcast %200 : vector<8x1xf32> to vector<8x160xf32>
    %202 = arith.subf %198, %201 : vector<8x160xf32>
    %203 = math.exp %202 : vector<8x160xf32>
    %cst_135 = arith.constant dense<0.000000e+00> : vector<8xf32>
    %204 = vector.multi_reduction <add>, %203, %cst_135 [1] : vector<8x160xf32> to vector<8xf32>
    %205 = vector.shape_cast %204 : vector<8xf32> to vector<8x1xf32>
    %c0_136 = arith.constant 0 : index
    %c0_137 = arith.constant 0 : index
    %206 = vector.load %arg8[%c0_136, %c0_137] : memref<2x160xf32, #tpu.memory_space<vmem>>, vector<1x160xf32>
    %c1_138 = arith.constant 1 : index
    %c0_139 = arith.constant 0 : index
    %207 = vector.load %arg8[%c1_138, %c0_139] : memref<2x160xf32, #tpu.memory_space<vmem>>, vector<1x160xf32>
    %208 = vector.broadcast %206 : vector<1x160xf32> to vector<8x160xf32>
    %209 = arith.mulf %203, %208 : vector<8x160xf32>
    %cst_140 = arith.constant dense<0.000000e+00> : vector<8xf32>
    %210 = vector.multi_reduction <add>, %209, %cst_140 [1] : vector<8x160xf32> to vector<8xf32>
    %211 = vector.shape_cast %210 : vector<8xf32> to vector<8x1xf32>
    %212 = vector.broadcast %207 : vector<1x160xf32> to vector<8x160xf32>
    %213 = arith.mulf %203, %212 : vector<8x160xf32>
    %cst_141 = arith.constant dense<0.000000e+00> : vector<8xf32>
    %214 = vector.multi_reduction <add>, %213, %cst_141 [1] : vector<8x160xf32> to vector<8xf32>
    %215 = vector.shape_cast %214 : vector<8xf32> to vector<8x1xf32>
    %216 = vector.extract_strided_slice %172 {offsets = [8, 0], sizes = [8, 160], strides = [1, 1]} : vector<40x160xf32> to vector<8x160xf32>
    %217 = arith.mulf %203, %216 : vector<8x160xf32>
    %cst_142 = arith.constant dense<0.000000e+00> : vector<8xf32>
    %218 = vector.multi_reduction <add>, %217, %cst_142 [1] : vector<8x160xf32> to vector<8xf32>
    %219 = vector.shape_cast %218 : vector<8xf32> to vector<8x1xf32>
    %220 = vector.extract_strided_slice %172 {offsets = [16, 0], sizes = [8, 160], strides = [1, 1]} : vector<40x160xf32> to vector<8x160xf32>
    %221 = arith.mulf %203, %220 : vector<8x160xf32>
    %cst_143 = arith.constant dense<0.000000e+00> : vector<8xf32>
    %222 = vector.multi_reduction <add>, %221, %cst_143 [1] : vector<8x160xf32> to vector<8xf32>
    %223 = vector.shape_cast %222 : vector<8xf32> to vector<8x1xf32>
    %224 = vector.extract_strided_slice %172 {offsets = [24, 0], sizes = [8, 160], strides = [1, 1]} : vector<40x160xf32> to vector<8x160xf32>
    %225 = arith.mulf %203, %224 : vector<8x160xf32>
    %cst_144 = arith.constant dense<0.000000e+00> : vector<8xf32>
    %226 = vector.multi_reduction <add>, %225, %cst_144 [1] : vector<8x160xf32> to vector<8xf32>
    %227 = vector.shape_cast %226 : vector<8xf32> to vector<8x1xf32>
    %228 = vector.extract_strided_slice %172 {offsets = [32, 0], sizes = [8, 160], strides = [1, 1]} : vector<40x160xf32> to vector<8x160xf32>
    %229 = arith.mulf %203, %228 : vector<8x160xf32>
    %cst_145 = arith.constant dense<0.000000e+00> : vector<8xf32>
    %230 = vector.multi_reduction <add>, %229, %cst_145 [1] : vector<8x160xf32> to vector<8xf32>
    %231 = vector.shape_cast %230 : vector<8xf32> to vector<8x1xf32>
    %cst_146 = arith.constant 0.000000e+00 : f32
    %232 = vector.broadcast %cst_146 : f32 to vector<8x2xf32>
    %233 = tpu.concatenate %211, %215, %219, %223, %227, %231, %232 in 1 : vector<8x1xf32>, vector<8x1xf32>, vector<8x1xf32>, vector<8x1xf32>, vector<8x1xf32>, vector<8x1xf32>, vector<8x2xf32> -> vector<8x8xf32>
    %234 = vector.broadcast %205 : vector<8x1xf32> to vector<8x8xf32>
    %235 = arith.divf %233, %234 : vector<8x8xf32>
    %c0_147 = arith.constant 0 : index
    %c0_148 = arith.constant 0 : index
    %c0_149 = arith.constant 0 : index
    %236 = vector.load %arg9[%c0_147, %c0_148, %c0_149] : memref<1x8x8xf32, #tpu.memory_space<vmem>>, vector<1x8x8xf32>
    %237 = vector.shape_cast %236 : vector<1x8x8xf32> to vector<8x8xf32>
    %238 = vector.shape_cast %235 : vector<8x8xf32> to vector<1x8x8xf32>
    tpu.vector_store %arg9[%c0_147, %c0_148, %c0_149], %238 {strides = array<i32>} : memref<1x8x8xf32, #tpu.memory_space<vmem>>, vector<1x8x8xf32>,
    return
  }
  func.func @transform_0(%arg0: i32) -> (i32, i32, i32) {
    %c0_i32 = arith.constant 0 : i32
    %c0_i32_0 = arith.constant 0 : i32
    %c0_i32_1 = arith.constant 0 : i32
    return %arg0, %c0_i32, %c0_i32_0 : i32, i32, i32
  }
  func.func @transform_1(%arg0: i32) -> (i32, i32) {
    %c0_i32 = arith.constant 0 : i32
    %c0_i32_0 = arith.constant 0 : i32
    %c0_i32_1 = arith.constant 0 : i32
    return %c0_i32, %c0_i32_0 : i32, i32
  }
  func.func @transform_2(%arg0: i32) -> (i32, i32) {
    %c0_i32 = arith.constant 0 : i32
    %c0_i32_0 = arith.constant 0 : i32
    %c0_i32_1 = arith.constant 0 : i32
    return %c0_i32, %c0_i32_0 : i32, i32
  }
  func.func @transform_3(%arg0: i32) -> (i32, i32) {
    %c0_i32 = arith.constant 0 : i32
    %c0_i32_0 = arith.constant 0 : i32
    %c0_i32_1 = arith.constant 0 : i32
    return %c0_i32, %c0_i32_0 : i32, i32
  }
  func.func @transform_4(%arg0: i32) -> (i32, i32) {
    %c0_i32 = arith.constant 0 : i32
    %c0_i32_0 = arith.constant 0 : i32
    %c0_i32_1 = arith.constant 0 : i32
    return %c0_i32, %c0_i32_0 : i32, i32
  }
  func.func @transform_5(%arg0: i32) -> (i32, i32) {
    %c0_i32 = arith.constant 0 : i32
    %c0_i32_0 = arith.constant 0 : i32
    %c0_i32_1 = arith.constant 0 : i32
    return %c0_i32, %c0_i32_0 : i32, i32
  }
  func.func @transform_6(%arg0: i32) -> (i32, i32) {
    %c0_i32 = arith.constant 0 : i32
    %c0_i32_0 = arith.constant 0 : i32
    %c0_i32_1 = arith.constant 0 : i32
    return %c0_i32, %c0_i32_0 : i32, i32
  }
  func.func @transform_7(%arg0: i32) -> (i32, i32) {
    %c0_i32 = arith.constant 0 : i32
    %c0_i32_0 = arith.constant 0 : i32
    %c0_i32_1 = arith.constant 0 : i32
    return %c0_i32, %c0_i32_0 : i32, i32
  }
  func.func @transform_8(%arg0: i32) -> (i32, i32, i32) {
    %c0_i32 = arith.constant 0 : i32
    %c0_i32_0 = arith.constant 0 : i32
    %c0_i32_1 = arith.constant 0 : i32
    return %arg0, %c0_i32, %c0_i32_0 : i32, i32, i32
  }
  func.func @transform_9(%arg0: i32) -> (i32, i32, i32) {
    %c0_i32 = arith.constant 0 : i32
    %c0_i32_0 = arith.constant 0 : i32
    %c0_i32_1 = arith.constant 0 : i32
    return %arg0, %c0_i32, %c0_i32_0 : i32, i32, i32
  }
}

</mosaic_0001>

<bundles_post_ra>
// kernel: kp_detector_forward.1
= control target key start
LH: loop header
LB: loop body
LE: loop exit
PB: predicated region body
PF: predicated region fallthrough
CT: control target
= control target key end

     0   :  { %s3939_s30 = smov 0   ;;  %s4871_s0 = inlined_call_operand.vmem [shape: f32[2,36,256], index: 0, kind: input, shape index: {}]   ;;  %s4872_s1 = inlined_call_operand.vmem [shape: f32[64,36], index: 1, kind: input, shape index: {}]   ;;  %s4873_s2 = inlined_call_operand.vmem [shape: f32[64,1], index: 2, kind: input, shape index: {}]   ;;  %s4874_s3 = inlined_call_operand.vmem [shape: bf16[40,1568], index: 3, kind: input, shape index: {}]   ;;  %s4875_s4 = inlined_call_operand.vmem [shape: f32[40,1], index: 4, kind: input, shape index: {}]   ;;  %s4876_s5 = inlined_call_operand.vmem [shape: f32[9,32], index: 5, kind: input, shape index: {}]   ;;  %s4877_s6 = inlined_call_operand.vmem [shape: f32[9,1], index: 6, kind: input, shape index: {}]   ;;  %s4878_s7 = inlined_call_operand.vmem [shape: f32[2,160], index: 7, kind: input, shape index: {}]   ;;  %s4879_s8 = inlined_call_operand.vmem [shape: f32[2,8,8], index: 8, kind: output, shape index: {0}]   ;;  %s4880_s9 = inlined_call_operand.vmem [shape: f32[2,9,256], index: 9, kind: output, shape index: {1}]  }
   0x1 LB: > { %s3544_s10 = sadd.s32 4294967295, %s3836_s30   ;;  %p3548_p0 = scmp.ge.s32.totalorder %s3836_s30, 1  ;;  %s3836_s30 = sphi %s3939_s30, %s20_s30  }
   0x2   : > { %p290_p1 = scmp.lt.s32.totalorder %s3836_s30, 3 }
   0x4   : > { %p291_p2 = pnand %p3548_p0, %p290_p1 }
   0x5   : > { %p330_p3 = scmp.lt.s32.totalorder (!%p291_p2), %s3544_s10, 1  ;;  %v3838_v0 = vmov (!%p291_p2), 0.0   ;;  %v3839_v1 = vmov (!%p291_p2), 0   ;;  %v363_v2 = vld [vmem:[%s4873_s2] sm:$0xff] (!%p291_p2)  ;;  %v365_v3 = vld [vmem:[%s4873_s2 + $0x10] sm:$0xff] (!%p291_p2)  ;;  %v364_v4 = vld [vmem:[%s4873_s2 + $0x8] sm:$0xff] (!%p291_p2) }
   0x6   : > { %294 = sbr.rel (%p291_p2) target bundleno = 1331 (0x533), region = 52  ;;  %507 = vmatprep.mubr.f32.mxu0 (!%p291_p2), %v3838_v0  ;;  %641 = vmatprep.mubr.f32.mxu1 (!%p291_p2), %v3838_v0  ;;  %v366_v5 = vld [vmem:[%s4873_s2 + $0x18] sm:$0xff] (!%p291_p2)  ;;  %v367_v17 = vld [vmem:[%s4873_s2 + $0x20] sm:$0xff] (!%p291_p2)  ;;  %v368_v18 = vld [vmem:[%s4873_s2 + $0x28] sm:$0xff] (!%p291_p2)  ;;  %vm436_vm0 = vcmask (!%p291_p2), 1043456   ;;  %vm411_vm1 = vcmask (!%p291_p2), 293888  }
   0x7   : > { %3771 = vset.pattern.permute.xlu0 (!%p291_p2), %v3839_v1  ;;  %3772 = vset.pattern.permute.xlu1 (!%p291_p2), %v3839_v1  ;;  %v369_v21 = vld [vmem:[%s4873_s2 + $0x30] sm:$0xff] (!%p291_p2)  ;;  %v370_v22 = vld [vmem:[%s4873_s2 + $0x38] sm:$0xff] (!%p291_p2)  ;;  %v345_v24 = vld [vmem:[%s4872_s1] sm:$0xff] (!%p291_p2)  ;;  %vm570_vm2 = vcmask (!%p291_p2), 261120   ;;  %s3840_s28 = smov (!%p291_p2), 127   ;;  %s3841_s29 = smov (!%p291_p2), 126  }
   0x8   : > { %373 = vperm.xlu0 (!%p291_p2), %3771, %v363_v2   ;;  %383 = vperm.xlu1 (!%p291_p2), %3772, %v365_v3   ;;  %v346_v25 = vld [vmem:[%s4872_s1 + $0x8] sm:$0xff] (!%p291_p2)  ;;  %v347_v26 = vld [vmem:[%s4872_s1 + $0x10] sm:$0xff] (!%p291_p2)  ;;  %v348_v27 = vld [vmem:[%s4872_s1 + $0x18] sm:$0xff] (!%p291_p2)  ;;  %s3842_s11 = smov (!%p291_p2), 77   ;;  %s3843_s12 = smov (!%p291_p2), 125   ;;  %vm718_vm3 = vcmask (!%p291_p2), 1039360  }
   0x9   : > { %v349_v28 = vld [vmem:[%s4872_s1 + $0x20] sm:$0xff] (!%p291_p2)  ;;  %v350_v29 = vld [vmem:[%s4872_s1 + $0x28] sm:$0xff] (!%p291_p2)  ;;  %v351_v30 = vld [vmem:[%s4872_s1 + $0x30] sm:$0xff] (!%p291_p2)  ;;  %s3845_s14 = smov (!%p291_p2), 124   ;;  %s3846_s15 = smov (!%p291_p2), 75   ;;  %vm753_vm4 = vcmask (!%p291_p2), 1031168  }
   0xa   : > { %v352_v31 = vld [vmem:[%s4872_s1 + $0x38] sm:$0xff] (!%p291_p2)  ;;  %s3847_s18 = smov (!%p291_p2), 123   ;;  %s3848_s19 = smov (!%p291_p2), 74   ;;  %vm1523_vm5 = vcmask (!%p291_p2), 629760   ;;  %vm788_vm6 = vcmask (!%p291_p2), 1022976   ;;  %vm1558_vm7 = vcmask (!%p291_p2), 621568  }
   0xb   : > { %s3849_s20 = smov (!%p291_p2), 122   ;;  %s3850_s21 = smov (!%p291_p2), 64   ;;  %vm823_vm8 = vcmask (!%p291_p2), 1014784   ;;  %vm1593_vm9 = vcmask (!%p291_p2), 613376   ;;  %vm858_vm10 = vcmask (!%p291_p2), 1006592   ;;  %vm1628_vm11 = vcmask (!%p291_p2), 605184  }
   0xc   : > { %378 = vperm.xlu0 (!%p291_p2), %3771, %v364_v4   ;;  %388 = vperm.xlu1 (!%p291_p2), %3772, %v366_v5   ;;  %s3852_s23 = smov (!%p291_p2), 63   ;;  %s3853_s24 = smov (!%p291_p2), 111   ;;  %vm893_vm12 = vcmask (!%p291_p2), 998400   ;;  %vm1663_vm13 = vcmask (!%p291_p2), 523264   ;;  %vm928_vm14 = vcmask (!%p291_p2), 916480   ;;  %vm1698_vm15 = vcmask (!%p291_p2), 515072  }
   0xd   : > { %s4945_s10 = smov (!%p330_p3, %s3544_s10), 1  ;;  %s3854_s25 = smov 62  }
   0xe   : > { %s3711_s13 = smul.u32 80, %s4945_s10  ;;  %s4881_s26 = smov 110  }
   0xf   : > { %s4883_s27 = smov 61   ;;  %s4885_s16 = smov 109  }
  0x10   : > { %s334_s22 = scalar_lea.vmem %s4871_s0, %s3711_s13  ;;  %393 = vperm.xlu0 %3771, %v367_v17   ;;  %398 = vperm.xlu1 %3772, %v368_v18   ;;  %s3844_s13 = smov 76  }
  0x11   : > { %v354_v6 = vld [vmem:[%s334_s22 + $0x8] sm:$0xff]  ;;  %v356_v7 = vld [vmem:[%s334_s22 + $0x18] sm:$0xff]  ;;  %v353_v8 = vld [vmem:[%s334_s22] sm:$0xff]  ;;  %s4887_s17 = smov 60  }
  0x12   : > { %v3611_v9 = vpack.c.bf16 %v356_v7, %v354_v6  ;;  %v355_v10 = vld [vmem:[%s334_s22 + $0x10] sm:$0xff]  ;;  %v358_v11 = vld [vmem:[%s334_s22 + $0x28] sm:$0xff]  ;;  %v360_v12 = vld [vmem:[%s334_s22 + $0x38] sm:$0xff] }
  0x13   : > { %v3613_v13 = vpack.c.bf16 %v355_v10, %v353_v8  ;;  %v3615_v14 = vpack.c.bf16 %v360_v12, %v358_v11  ;;  %v357_v15 = vld [vmem:[%s334_s22 + $0x20] sm:$0xff]  ;;  %v359_v16 = vld [vmem:[%s334_s22 + $0x30] sm:$0xff]  ;;  %v362_v20 = vld [vmem:[%s334_s22 + $0x48] sm:$0xf] }
  0x14   : > { %3612 = vmatprep.subr.bf16.mxu0 %v3611_v9  ;;  %v3617_v19 = vpack.c.bf16 %v359_v16, %v357_v15  ;;  %v361_v23 = vld [vmem:[%s334_s22 + $0x40] sm:$0xf]  ;;  %403 = vperm.xlu0 %3771, %v369_v21   ;;  %s3851_s22 = smov 112  }
  0x15   : > { %3614 = vmatpush1.bf16.msra.mxu0 %v3613_v13  ;;  %408 = vperm.xlu1 %3772, %v370_v22  }
  0x16   : > { %3616 = vmatprep.subr.bf16.mxu0 %v3615_v14 }
  0x19   : > { %3618 = vmatpush1.bf16.msra.mxu0 %v3617_v19 }
  0x1a   : > { %3553 = vmatprep.subr.msk.mxu0 %vm436_vm0, %v362_v20  ;;  %v556_v20 = vld [vmem:[%s4876_s5] sm:$0xff] }
  0x1d   : > { %3554 = vmatpush1.msk.msra.mxu0 %vm436_vm0, %v361_v23  ;;  %vm4903_vm0 = vcmask 908288  }
  0x1e   : > { %3555 = vmatmul.mubr.msk.f32.vlgmr.msra.gmra.mrb[0].mxu0 %vm411_vm1, %v345_v24 }
  0x1f   : > { %513 = vmatprep.mubr.f32.mxu0 %v3838_v0 }
  0x22   : > { %3556 = vmatmul.mubr.msk.f32.gmra.mrb[2].mxu0 %vm411_vm1, %v346_v25 }
  0x23   : > { %519 = vmatprep.mubr.f32.mxu0 %v3838_v0 }
  0x26   : > { %3557 = vmatmul.mubr.msk.f32.gmra.mrb[4].mxu0 %vm411_vm1, %v347_v26 }
  0x27   : > { %525 = vmatprep.mubr.f32.mxu0 %v3838_v0 }
  0x2a   : > { %3558 = vmatmul.mubr.msk.f32.gmra.mrb[6].mxu0 %vm411_vm1, %v348_v27 }
  0x2b   : > { %531 = vmatprep.mubr.f32.mxu0 %v3838_v0 }
  0x2e   : > { %3559 = vmatmul.mubr.msk.f32.gmra.mrb[8].mxu0 %vm411_vm1, %v349_v28 }
  0x2f   : > { %537 = vmatprep.mubr.f32.mxu0 %v3838_v0 }
  0x32   : > { %3560 = vmatmul.mubr.msk.f32.gmra.mrb[10].mxu0 %vm411_vm1, %v350_v29 }
  0x33   : > { %543 = vmatprep.mubr.f32.mxu0 %v3838_v0 }
  0x36   : > { %3561 = vmatmul.mubr.msk.f32.gmra.mrb[12].mxu0 %vm411_vm1, %v351_v30 }
  0x37   : > { %549 = vmatprep.mubr.f32.mxu0 %v3838_v0 }
  0x3a   : > { %3562 = vmatmul.mubr.msk.f32.gmra.mrb[14].mxu0 %vm411_vm1, %v352_v31  ;;  %vm4904_vm1 = vcmask 506880  }
  0x87   : > { %v374_v32 = vpop.permute.xlu0 %373  ;;  %v384_v42 = vpop.permute.xlu1 %383 }
  0x8b   : > { %v379_v35 = vpop.permute.xlu0 %378  ;;  %v389_v50 = vpop.permute.xlu1 %388 }
  0x8f   : > { %v399_v59 = vpop.permute.xlu1 %398  ;;  %v394_v60 = vpop.permute.xlu0 %393 }
  0x93   : > { %v404_v11 = vpop.permute.xlu0 %403 }
  0x94   : > { %v409_v10 = vpop.permute.xlu1 %408 }
  0xf1   : > { %v509_v33 = vpop.f32.mrb[0].mxu0 }
  0xf2   : > { %v511_v34 = vpop.f32.mrb[1].mxu0  ;;  %v510_v37 = vadd.f32 %v509_v33, %v374_v32 }
  0xf3   : > { %v512_v40 = vadd.f32 %v511_v34, %v374_v32 }
  0xf5   : > { %v515_v36 = vpop.f32.mrb[2].mxu0 }
  0xf6   : > { %v516_v38 = vadd.f32 %v515_v36, %v379_v35  ;;  %v517_v39 = vpop.f32.mrb[3].mxu0 }
  0xf7   : > { %v518_v41 = vadd.f32 %v517_v39, %v379_v35 }
  0xf8   : > { %v4020_v43 = vpack.c.bf16 %v516_v38, %v510_v37 }
  0xf9   : > { %v4022_v44 = vpack.c.bf16 %v518_v41, %v512_v40  ;;  %v521_v45 = vpop.f32.mrb[4].mxu0 }
  0xfa   : > { %690 = vst [vmem:[#allocation3] sm:$0xff] %v4020_v43  ;;  %710 = vrot.lane.b32.xlu0 %v4020_v43, %s3840_s28  ;;  %v523_v46 = vpop.f32.mrb[5].mxu0  ;;  %v522_v47 = vadd.f32 %v521_v45, %v384_v42 }
  0xfb   : > { %712 = vrot.lane.b32.xlu1 %v4022_v44, %s3840_s28  ;;  %691 = vst.msk [vmem:[#allocation3 + $0x8] sm:$0xff] %vm570_vm2, %v4022_v44  ;;  %v524_v48 = vadd.f32 %v523_v46, %v384_v42 }
  0xfd   : > { %v527_v49 = vpop.f32.mrb[6].mxu0 }
  0xfe   : > { %745 = vrot.lane.b32.xlu0 %v4020_v43, %s3841_s29  ;;  %v529_v51 = vpop.f32.mrb[7].mxu0  ;;  %v528_v52 = vadd.f32 %v527_v49, %v389_v50 }
  0xff   : > { %747 = vrot.lane.b32.xlu1 %v4022_v44, %s3841_s29  ;;  %v530_v53 = vadd.f32 %v529_v51, %v389_v50 }
 0x100   : > { %v4035_v54 = vpack.c.bf16 %v528_v52, %v522_v47 }
 0x101   : > { %v4037_v55 = vpack.c.bf16 %v530_v53, %v524_v48  ;;  %v533_v56 = vpop.f32.mrb[8].mxu0 }
 0x102   : > { %692 = vst [vmem:[#allocation3 + $0x10] sm:$0xff] %v4035_v54  ;;  %v535_v57 = vpop.f32.mrb[9].mxu0  ;;  %1515 = vrot.lane.b32.xlu0 %v4020_v43, %s3842_s11  ;;  %v2494_v58 = vld [vmem:[#allocation3 + $0x8] sm:$0xff]  ;;  %v534_v62 = vadd.f32 %v533_v56, %v394_v60 }
 0x103   : > { %1517 = vrot.lane.b32.xlu1 %v4022_v44, %s3842_s11  ;;  %2903 = vmatprep.subr.bf16.mxu0 %v2494_v58  ;;  %693 = vst.msk [vmem:[#allocation3 + $0x18] sm:$0xff] %vm570_vm2, %v4037_v55  ;;  %v536_v3 = vadd.f32 %v535_v57, %v394_v60 }
 0x104   : > { %2904 = vmatpush1.bf16.msra.mxu0 %v4020_v43 }
 0x105   : > { %v539_v61 = vpop.f32.mrb[10].mxu0 }
 0x106   : > { %v540_v63 = vadd.f32 %v539_v61, %v399_v59  ;;  %v541_v2 = vpop.f32.mrb[11].mxu0  ;;  %780 = vrot.lane.b32.xlu0 %v4020_v43, %s3843_s12 }
 0x107   : > { %v542_v4 = vadd.f32 %v541_v2, %v399_v59  ;;  %782 = vrot.lane.b32.xlu1 %v4022_v44, %s3843_s12 }
 0x108   : > { %v3621_v5 = vpack.c.bf16 %v540_v63, %v534_v62 }
 0x109   : > { %v545_v6 = vpop.f32.mrb[12].mxu0  ;;  %v3619_v7 = vpack.c.bf16 %v542_v4, %v536_v3 }
 0x10a   : > { %v547_v8 = vpop.f32.mrb[13].mxu0  ;;  %1550 = vrot.lane.b32.xlu0 %v4020_v43, %s3844_s13  ;;  %v2496_v9 = vld [vmem:[#allocation3 + $0x18] sm:$0xff]  ;;  %v546_v13 = vadd.f32 %v545_v6, %v404_v11 }
 0x10b   : > { %3620 = vmatprep.subr.bf16.mxu1 %v3619_v7  ;;  %1552 = vrot.lane.b32.xlu1 %v4022_v44, %s3844_s13  ;;  %v548_v16 = vadd.f32 %v547_v8, %v404_v11 }
 0x10c   : > { %3622 = vmatpush1.bf16.msra.mxu1 %v3621_v5  ;;  %2905 = vmatprep.subr.bf16.mxu0 %v2496_v9  ;;  %v3775_v5 = vld [vmem:[%s4874_s3 + $0x4] ss:$52 sps:$4 sm:$0xff]  }
 0x10d   : > { %v551_v12 = vpop.f32.mrb[14].mxu0  ;;  %2906 = vmatpush1.bf16.msra.mxu0 %v4035_v54  ;;  %2935 = vmatprep.mubr.bf16.mxu0 %v3775_v5 }
 0x10e   : > { %v552_v14 = vadd.f32 %v551_v12, %v409_v10  ;;  %v553_v15 = vpop.f32.mrb[15].mxu0  ;;  %815 = vrot.lane.b32.xlu0 %v4020_v43, %s3845_s14 }
 0x10f   : > { %v554_v17 = vadd.f32 %v553_v15, %v409_v10  ;;  %817 = vrot.lane.b32.xlu1 %v4022_v44, %s3845_s14 }
 0x110   : > { %v3625_v18 = vpack.c.bf16 %v552_v14, %v546_v13 }
 0x111   : > { %v3623_v19 = vpack.c.bf16 %v554_v17, %v548_v16  ;;  %v557_v16 = vld [vmem:[%s4876_s5 + $0x8] sm:$0x1] }
 0x112   : > { %1585 = vrot.lane.b32.xlu0 %v4020_v43, %s3846_s15 }
 0x113   : > { %3624 = vmatprep.subr.bf16.mxu1 %v3623_v19  ;;  %1587 = vrot.lane.b32.xlu1 %v4022_v44, %s3846_s15  ;;  %v3778_v19 = vld [vmem:[%s4874_s3 + $0x1c] ss:$52 sps:$4 sm:$0xff]  }
 0x114   : > { %3626 = vmatpush1.bf16.msra.mxu1 %v3625_v18 }
 0x116   : > { %850 = vrot.lane.b32.xlu0 %v4020_v43, %s3847_s18 }
 0x117   : > { %852 = vrot.lane.b32.xlu1 %v4022_v44, %s3847_s18  ;;  %3563 = vmatmul.mubr.msk.f32.vlgmr.msra.gmra.mrb[0].mxu1 %vm570_vm2, %v556_v20 }
 0x118   : > { %647 = vmatprep.mubr.f32.mxu1 %v3838_v0 }
 0x11a   : > { %1620 = vrot.lane.b32.xlu0 %v4020_v43, %s3848_s19 }
 0x11b   : > { %1622 = vrot.lane.b32.xlu1 %v4022_v44, %s3848_s19  ;;  %3564 = vmatmul.mubr.msk.f32.gmra.mrb[2].mxu1 %vm570_vm2, %v557_v16 }
 0x11c   : > { %3118 = vmatprep.mubr.bf16.mxu1 %v3778_v19 }
 0x11e   : > { %885 = vrot.lane.b32.xlu0 %v4020_v43, %s3849_s20 }
 0x11f   : > { %887 = vrot.lane.b32.xlu1 %v4022_v44, %s3849_s20 }
 0x122   : > { %1655 = vrot.lane.b32.xlu0 %v4020_v43, %s3850_s21 }
 0x123   : > { %1657 = vrot.lane.b32.xlu1 %v4022_v44, %s3850_s21 }
 0x126   : > { %920 = vrot.lane.b32.xlu0 %v4020_v43, %s3851_s22 }
 0x127   : > { %922 = vrot.lane.b32.xlu1 %v4022_v44, %s3851_s22 }
 0x12a   : > { %1690 = vrot.lane.b32.xlu0 %v4020_v43, %s3852_s23 }
 0x12b   : > { %1692 = vrot.lane.b32.xlu1 %v4022_v44, %s3852_s23 }
 0x12e   : > { %955 = vrot.lane.b32.xlu0 %v4020_v43, %s3853_s24 }
 0x12f   : > { %957 = vrot.lane.b32.xlu1 %v4022_v44, %s3853_s24 }
 0x132   : > { %1725 = vrot.lane.b32.xlu0 %v4020_v43, %s3854_s25 }
 0x133   : > { %1727 = vrot.lane.b32.xlu1 %v4022_v44, %s3854_s25 }
 0x136   : > { %990 = vrot.lane.b32.xlu0 %v4020_v43, %s4881_s26 }
 0x137   : > { %992 = vrot.lane.b32.xlu1 %v4022_v44, %s4881_s26  ;;  %s4889_s26 = smov 108  }
 0x13a   : > { %1760 = vrot.lane.b32.xlu0 %v4020_v43, %s4883_s27 }
 0x13b   : > { %1762 = vrot.lane.b32.xlu1 %v4022_v44, %s4883_s27  ;;  %s4891_s27 = smov 59  }
 0x13e   : > { %1025 = vrot.lane.b32.xlu0 %v4020_v43, %s4885_s16 }
 0x13f   : > { %1027 = vrot.lane.b32.xlu1 %v4022_v44, %s4885_s16  ;;  %s4893_s16 = smov 107  }
 0x142   : > { %1795 = vrot.lane.b32.xlu0 %v4020_v43, %s4887_s17 }
 0x143   : > { %1797 = vrot.lane.b32.xlu1 %v4022_v44, %s4887_s17  ;;  %s4895_s17 = smov 58  }
 0x146   : > { %1060 = vrot.lane.b32.xlu0 %v4020_v43, %s4889_s26 }
 0x147   : > { %1062 = vrot.lane.b32.xlu1 %v4022_v44, %s4889_s26  ;;  %s4897_s26 = smov 106  }
 0x14a   : > { %1830 = vrot.lane.b32.xlu0 %v4020_v43, %s4891_s27 }
 0x14b   : > { %1832 = vrot.lane.b32.xlu1 %v4022_v44, %s4891_s27  ;;  %s4899_s27 = smov 48  }
 0x14e   : > { %1095 = vrot.lane.b32.xlu0 %v4020_v43, %s4893_s16 }
 0x14f   : > { %1097 = vrot.lane.b32.xlu1 %v4022_v44, %s4893_s16  ;;  %s3865_s16 = smov 96  }
 0x152   : > { %1865 = vrot.lane.b32.xlu0 %v4020_v43, %s4895_s17 }
 0x153   : > { %1867 = vrot.lane.b32.xlu1 %v4022_v44, %s4895_s17  ;;  %s4901_s17 = smov 47  }
 0x156   : > { %1130 = vrot.lane.b32.xlu0 %v4020_v43, %s4897_s26 }
 0x157   : > { %1132 = vrot.lane.b32.xlu1 %v4022_v44, %s4897_s26  ;;  %s3867_s26 = smov 95  }
 0x15a   : > { %1900 = vrot.lane.b32.xlu0 %v4020_v43, %s4899_s27 }
 0x15b   : > { %1902 = vrot.lane.b32.xlu1 %v4022_v44, %s4899_s27  ;;  %s3868_s27 = smov 46  }
 0x15e   : > { %1165 = vrot.lane.b32.xlu0 %v4020_v43, %s3865_s16 }
 0x15f   : > { %1167 = vrot.lane.b32.xlu1 %v4022_v44, %s3865_s16 }
 0x162   : > { %1935 = vrot.lane.b32.xlu0 %v4020_v43, %s4901_s17 }
 0x163   : > { %1937 = vrot.lane.b32.xlu1 %v4022_v44, %s4901_s17  ;;  %s3869_s17 = smov 94  }
 0x166   : > { %1200 = vrot.lane.b32.xlu0 %v4020_v43, %s3867_s26 }
 0x167   : > { %1202 = vrot.lane.b32.xlu1 %v4022_v44, %s3867_s26 }
 0x16a   : > { %1970 = vrot.lane.b32.xlu0 %v4020_v43, %s3868_s27 }
 0x16b   : > { %1972 = vrot.lane.b32.xlu1 %v4022_v44, %s3868_s27 }
 0x16c   : > { %v711_v0 = vpop.permute.xlu0 %710 }
 0x16d   : > { %v713_v21 = vpop.permute.xlu1 %712 }
 0x16e   : > { %v719_v22 = vsel %vm718_vm3, %v711_v0, %v713_v21  ;;  %726 = vst.msk [vmem:[#allocation3 + $0x28] sm:$0xff] %vm570_vm2, %v713_v21  ;;  %1235 = vrot.lane.b32.xlu0 %v4020_v43, %s3869_s17 }
 0x16f   : > { %1237 = vrot.lane.b32.xlu1 %v4022_v44, %s3869_s17 }
 0x170   : > { %v746_v23 = vpop.permute.xlu0 %745 }
 0x171   : > { %v748_v24 = vpop.permute.xlu1 %747 }
 0x172   : > { %v4164_v25 = vsel %vm753_vm4, %v746_v23, %v748_v24  ;;  %761 = vst.msk [vmem:[#allocation3 + $0x48] sm:$0xff] %vm570_vm2, %v748_v24  ;;  %714 = vrot.lane.b32.xlu0 %v4035_v54, %s3840_s28 }
 0x173   : > { %716 = vrot.lane.b32.xlu1 %v4037_v55, %s3840_s28  ;;  %s4927_s28 = smov 48  }
 0x174   : > { %v1516_v26 = vpop.permute.xlu0 %1515 }
 0x175   : > { %v1518_v27 = vpop.permute.xlu1 %1517  ;;  %v2498_v28 = vld [vmem:[#allocation3 + $0x28] sm:$0xff] }
 0x176   : > { %v1524_v29 = vsel %vm1523_vm5, %v1516_v26, %v1518_v27  ;;  %1531 = vst.msk [vmem:[#allocation3 + $0x308] sm:$0xff] %vm570_vm2, %v1518_v27  ;;  %749 = vrot.lane.b32.xlu0 %v4035_v54, %s3841_s29  ;;  %2907 = vmatprep.subr.bf16.mxu0 %v2498_v28 }
 0x177   : > { %751 = vrot.lane.b32.xlu1 %v4037_v55, %s3841_s29  ;;  %2908 = vmatpush1.bf16.msra.mxu0 %v719_v22  ;;  %s4928_s29 = smov 47  }
 0x178   : > { %v781_v30 = vpop.permute.xlu0 %780 }
 0x179   : > { %v783_v31 = vpop.permute.xlu1 %782 }
 0x17a   : > { %v4178_v32 = vsel %vm788_vm6, %v781_v30, %v783_v31  ;;  %796 = vst.msk [vmem:[#allocation3 + $0x68] sm:$0xff] %vm570_vm2, %v783_v31  ;;  %1519 = vrot.lane.b32.xlu0 %v4035_v54, %s3842_s11 }
 0x17b   : > { %1521 = vrot.lane.b32.xlu1 %v4037_v55, %s3842_s11  ;;  %s4918_s11 = smov 110  }
 0x17c   : > { %v1551_v33 = vpop.permute.xlu0 %1550 }
 0x17d   : > { %v1553_v34 = vpop.permute.xlu1 %1552  ;;  %v2590_v35 = vld [vmem:[#allocation3 + $0x308] sm:$0xff] }
 0x17e   : > { %v4186_v36 = vsel %vm1558_vm7, %v1551_v33, %v1553_v34  ;;  %1566 = vst.msk [vmem:[#allocation3 + $0x328] sm:$0xff] %vm570_vm2, %v1553_v34  ;;  %3086 = vmatprep.subr.bf16.mxu1 %v2590_v35  ;;  %784 = vrot.lane.b32.xlu0 %v4035_v54, %s3843_s12 }
 0x17f   : > { %786 = vrot.lane.b32.xlu1 %v4037_v55, %s3843_s12  ;;  %3087 = vmatpush1.bf16.msra.mxu1 %v1524_v29  ;;  %s3875_s12 = smov 91  }
 0x180   : > { %v816_v37 = vpop.permute.xlu0 %815 }
 0x181   : > { %v818_v38 = vpop.permute.xlu1 %817 }
 0x182   : > { %v4194_v39 = vsel %vm823_vm8, %v816_v37, %v818_v38  ;;  %831 = vst.msk [vmem:[#allocation3 + $0x88] sm:$0xff] %vm570_vm2, %v818_v38  ;;  %1554 = vrot.lane.b32.xlu0 %v4035_v54, %s3844_s13 }
 0x183   : > { %1556 = vrot.lane.b32.xlu1 %v4037_v55, %s3844_s13  ;;  %s3876_s13 = smov 42  }
 0x184   : > { %v1586_v40 = vpop.permute.xlu0 %1585 }
 0x185   : > { %v1588_v41 = vpop.permute.xlu1 %1587 }
 0x186   : > { %v4202_v42 = vsel %vm1593_vm9, %v1586_v40, %v1588_v41  ;;  %1601 = vst.msk [vmem:[#allocation3 + $0x348] sm:$0xff] %vm570_vm2, %v1588_v41  ;;  %819 = vrot.lane.b32.xlu0 %v4035_v54, %s3845_s14 }
 0x187   : > { %821 = vrot.lane.b32.xlu1 %v4037_v55, %s3845_s14  ;;  %s3877_s14 = smov 90  }
 0x188   : > { %v851_v45 = vpop.permute.xlu0 %850 }
 0x189   : > { %v853_v46 = vpop.permute.xlu1 %852 }
 0x18a   : > { %v4210_v47 = vsel %vm858_vm10, %v851_v45, %v853_v46  ;;  %866 = vst.msk [vmem:[#allocation3 + $0xa8] sm:$0xff] %vm570_vm2, %v853_v46  ;;  %1589 = vrot.lane.b32.xlu0 %v4035_v54, %s3846_s15 }
 0x18b   : > { %1591 = vrot.lane.b32.xlu1 %v4037_v55, %s3846_s15  ;;  %s3887_s15 = smov 27  }
 0x18c   : > { %v1621_v48 = vpop.permute.xlu0 %1620 }
 0x18d   : > { %v1623_v49 = vpop.permute.xlu1 %1622 }
 0x18e   : > { %v4218_v50 = vsel %vm1628_vm11, %v1621_v48, %v1623_v49  ;;  %1636 = vst.msk [vmem:[#allocation3 + $0x368] sm:$0xff] %vm570_vm2, %v1623_v49  ;;  %854 = vrot.lane.b32.xlu0 %v4035_v54, %s3847_s18 }
 0x18f   : > { %856 = vrot.lane.b32.xlu1 %v4037_v55, %s3847_s18  ;;  %s4919_s18 = smov 61  }
 0x190   : > { %v886_v51 = vpop.permute.xlu0 %885 }
 0x191   : > { %v888_v52 = vpop.permute.xlu1 %887 }
 0x192   : > { %v4226_v53 = vsel %vm893_vm12, %v886_v51, %v888_v52  ;;  %901 = vst.msk [vmem:[#allocation3 + $0xc8] sm:$0xff] %vm570_vm2, %v888_v52  ;;  %1624 = vrot.lane.b32.xlu0 %v4035_v54, %s3848_s19 }
 0x193   : > { %1626 = vrot.lane.b32.xlu1 %v4037_v55, %s3848_s19  ;;  %s4920_s19 = smov 109  }
 0x194   : > { %v1656_v56 = vpop.permute.xlu0 %1655 }
 0x195   : > { %v1658_v57 = vpop.permute.xlu1 %1657 }
 0x196   : > { %v4234_v58 = vsel %vm1663_vm13, %v1656_v56, %v1658_v57  ;;  %1671 = vst.msk [vmem:[#allocation3 + $0x388] sm:$0xff] %vm570_vm2, %v1658_v57  ;;  %889 = vrot.lane.b32.xlu0 %v4035_v54, %s3849_s20 }
 0x197   : > { %891 = vrot.lane.b32.xlu1 %v4037_v55, %s3849_s20  ;;  %s4921_s20 = smov 60  }
 0x198   : > { %v921_v59 = vpop.permute.xlu0 %920 }
 0x199   : > { %v923_v60 = vpop.permute.xlu1 %922 }
 0x19a   : > { %v4242_v61 = vsel %vm928_vm14, %v921_v59, %v923_v60  ;;  %936 = vst.msk [vmem:[#allocation3 + $0xe8] sm:$0xff] %vm570_vm2, %v923_v60  ;;  %1659 = vrot.lane.b32.xlu0 %v4035_v54, %s3850_s21 }
 0x19b   : > { %1661 = vrot.lane.b32.xlu1 %v4037_v55, %s3850_s21  ;;  %s4922_s21 = smov 108  }
 0x19c   : > { %v1691_v62 = vpop.permute.xlu0 %1690 }
 0x19d   : > { %v1693_v63 = vpop.permute.xlu1 %1692 }
 0x19e   : > { %v4250_v2 = vsel %vm1698_vm15, %v1691_v62, %v1693_v63  ;;  %1706 = vst.msk [vmem:[#allocation3 + $0x3a8] sm:$0xff] %vm570_vm2, %v1693_v63  ;;  %924 = vrot.lane.b32.xlu0 %v4035_v54, %s3851_s22 }
 0x19f   : > { %926 = vrot.lane.b32.xlu1 %v4037_v55, %s3851_s22  ;;  %s4923_s22 = smov 59  }
 0x1a0   : > { %v956_v3 = vpop.permute.xlu0 %955 }
 0x1a1   : > { %v958_v4 = vpop.permute.xlu1 %957 }
 0x1a2   : > { %v4261_v6 = vsel %vm4903_vm0, %v956_v3, %v958_v4  ;;  %971 = vst.msk [vmem:[#allocation3 + $0x108] sm:$0xff] %vm570_vm2, %v958_v4  ;;  %1694 = vrot.lane.b32.xlu0 %v4035_v54, %s3852_s23  ;;  %vm4905_vm0 = vcmask 900096  }
 0x1a3   : > { %1696 = vrot.lane.b32.xlu1 %v4037_v55, %s3852_s23  ;;  %s4924_s23 = smov 107  }
 0x1a4   : > { %v1726_v7 = vpop.permute.xlu0 %1725 }
 0x1a5   : > { %v1728_v8 = vpop.permute.xlu1 %1727 }
 0x1a6   : > { %v4269_v9 = vsel %vm4904_vm1, %v1726_v7, %v1728_v8  ;;  %1741 = vst.msk [vmem:[#allocation3 + $0x3c8] sm:$0xff] %vm570_vm2, %v1728_v8  ;;  %959 = vrot.lane.b32.xlu0 %v4035_v54, %s3853_s24  ;;  %vm4906_vm1 = vcmask 498688  }
 0x1a7   : > { %961 = vrot.lane.b32.xlu1 %v4037_v55, %s3853_s24  ;;  %s4925_s24 = smov 58  }
 0x1a8   : > { %v991_v10 = vpop.permute.xlu0 %990 }
 0x1a9   : > { %v993_v11 = vpop.permute.xlu1 %992 }
 0x1aa   : > { %v4277_v12 = vsel %vm4905_vm0, %v991_v10, %v993_v11  ;;  %1006 = vst.msk [vmem:[#allocation3 + $0x128] sm:$0xff] %vm570_vm2, %v993_v11  ;;  %1729 = vrot.lane.b32.xlu0 %v4035_v54, %s3854_s25  ;;  %vm4907_vm0 = vcmask 891904  }
 0x1ab   : > { %1731 = vrot.lane.b32.xlu1 %v4037_v55, %s3854_s25  ;;  %s4926_s25 = smov 106  }
 0x1ac   : > { %v1761_v13 = vpop.permute.xlu0 %1760 }
 0x1ad   : > { %v1763_v14 = vpop.permute.xlu1 %1762 }
 0x1ae   : > { %v4285_v15 = vsel %vm4906_vm1, %v1761_v13, %v1763_v14  ;;  %1776 = vst.msk [vmem:[#allocation3 + $0x3e8] sm:$0xff] %vm570_vm2, %v1763_v14  ;;  %994 = vrot.lane.b32.xlu0 %v4035_v54, %s4918_s11  ;;  %vm4908_vm1 = vcmask 490496  }
 0x1af   : > { %996 = vrot.lane.b32.xlu1 %v4037_v55, %s4918_s11  ;;  %s3874_s11 = smov 43  }
 0x1b0   : > { %v1026_v17 = vpop.permute.xlu0 %1025 }
 0x1b1   : > { %v1028_v18 = vpop.permute.xlu1 %1027 }
 0x1b2   : > { %v4300_v20 = vsel %vm4907_vm0, %v1026_v17, %v1028_v18  ;;  %1041 = vst.msk [vmem:[#allocation3 + $0x148] sm:$0xff] %vm570_vm2, %v1028_v18  ;;  %1764 = vrot.lane.b32.xlu0 %v4035_v54, %s4919_s18  ;;  %vm4909_vm0 = vcmask 883712  }
 0x1b3   : > { %1766 = vrot.lane.b32.xlu1 %v4037_v55, %s4919_s18  ;;  %s3880_s18 = smov 31  }
 0x1b4   : > { %v1796_v0 = vpop.permute.xlu0 %1795 }
 0x1b5   : > { %v1798_v21 = vpop.permute.xlu1 %1797 }
 0x1b6   : > { %v4308_v22 = vsel %vm4908_vm1, %v1796_v0, %v1798_v21  ;;  %1811 = vst.msk [vmem:[#allocation3 + $0x408] sm:$0xff] %vm570_vm2, %v1798_v21  ;;  %1029 = vrot.lane.b32.xlu0 %v4035_v54, %s4920_s19  ;;  %vm4910_vm1 = vcmask 482304  }
 0x1b7   : > { %1031 = vrot.lane.b32.xlu1 %v4037_v55, %s4920_s19  ;;  %s3882_s19 = smov 79  }
 0x1b8   : > { %v1061_v23 = vpop.permute.xlu0 %1060 }
 0x1b9   : > { %v1063_v24 = vpop.permute.xlu1 %1062 }
 0x1ba   : > { %v4316_v26 = vsel %vm4909_vm0, %v1061_v23, %v1063_v24  ;;  %1076 = vst.msk [vmem:[#allocation3 + $0x168] sm:$0xff] %vm570_vm2, %v1063_v24  ;;  %1799 = vrot.lane.b32.xlu0 %v4035_v54, %s4921_s20  ;;  %vm4911_vm0 = vcmask 875520   ;;  %v2502_v24 = vld [vmem:[#allocation3 + $0x48] sm:$0xff] }
 0x1bb   : > { %1801 = vrot.lane.b32.xlu1 %v4037_v55, %s4921_s20 }
 0x1bc   : > { %v1831_v27 = vpop.permute.xlu0 %1830 }
 0x1bd   : > { %v1833_v28 = vpop.permute.xlu1 %1832 }
 0x1be   : > { %v4324_v29 = vsel %vm4910_vm1, %v1831_v27, %v1833_v28  ;;  %1846 = vst.msk [vmem:[#allocation3 + $0x428] sm:$0xff] %vm570_vm2, %v1833_v28  ;;  %1064 = vrot.lane.b32.xlu0 %v4035_v54, %s4922_s21  ;;  %vm4912_vm1 = vcmask 474112  }
 0x1bf   : > { %1066 = vrot.lane.b32.xlu1 %v4037_v55, %s4922_s21 }
 0x1c0   : > { %v1096_v30 = vpop.permute.xlu0 %1095 }
 0x1c1   : > { %v1098_v31 = vpop.permute.xlu1 %1097 }
 0x1c2   : > { %v4332_v33 = vsel %vm4911_vm0, %v1096_v30, %v1098_v31  ;;  %1111 = vst.msk [vmem:[#allocation3 + $0x188] sm:$0xff] %vm570_vm2, %v1098_v31  ;;  %1834 = vrot.lane.b32.xlu0 %v4035_v54, %s4923_s22  ;;  %vm4913_vm0 = vcmask 867328  }
 0x1c3   : > { %1836 = vrot.lane.b32.xlu1 %v4037_v55, %s4923_s22  ;;  %s3883_s22 = smov 30  }
 0x1c4   : > { %v1866_v34 = vpop.permute.xlu0 %1865 }
 0x1c5   : > { %v1868_v35 = vpop.permute.xlu1 %1867 }
 0x1c6   : > { %v4340_v37 = vsel %vm4912_vm1, %v1866_v34, %v1868_v35  ;;  %1881 = vst.msk [vmem:[#allocation3 + $0x448] sm:$0xff] %vm570_vm2, %v1868_v35  ;;  %1099 = vrot.lane.b32.xlu0 %v4035_v54, %s4924_s23  ;;  %vm4914_vm1 = vcmask 392192  }
 0x1c7   : > { %1101 = vrot.lane.b32.xlu1 %v4037_v55, %s4924_s23  ;;  %s3884_s23 = smov 78  }
 0x1c8   : > { %v1131_v38 = vpop.permute.xlu0 %1130 }
 0x1c9   : > { %v1133_v40 = vpop.permute.xlu1 %1132 }
 0x1ca   : > { %v4348_v41 = vsel %vm4913_vm0, %v1131_v38, %v1133_v40  ;;  %1146 = vst.msk [vmem:[#allocation3 + $0x1a8] sm:$0xff] %vm570_vm2, %v1133_v40  ;;  %1869 = vrot.lane.b32.xlu0 %v4035_v54, %s4925_s24  ;;  %vm4915_vm0 = vcmask 785408  }
 0x1cb   : > { %1871 = vrot.lane.b32.xlu1 %v4037_v55, %s4925_s24 }
 0x1cc   : > { %v1901_v45 = vpop.permute.xlu0 %1900 }
 0x1cd   : > { %v1903_v46 = vpop.permute.xlu1 %1902 }
 0x1ce   : > { %v4356_v48 = vsel %vm4914_vm1, %v1901_v45, %v1903_v46  ;;  %1916 = vst.msk [vmem:[#allocation3 + $0x468] sm:$0xff] %vm570_vm2, %v1903_v46  ;;  %1134 = vrot.lane.b32.xlu0 %v4035_v54, %s4926_s25  ;;  %vm4916_vm1 = vcmask 384000   ;;  %v2506_v45 = vld [vmem:[#allocation3 + $0x68] sm:$0xff] }
 0x1cf   : > { %1136 = vrot.lane.b32.xlu1 %v4037_v55, %s4926_s25  ;;  %v2594_v46 = vld [vmem:[#allocation3 + $0x328] sm:$0xff]  ;;  %s3878_s25 = smov 32  }
 0x1d0   : > { %v1166_v49 = vpop.permute.xlu0 %1165 }
 0x1d1   : > { %v1168_v51 = vpop.permute.xlu1 %1167 }
 0x1d2   : > { %v4364_v52 = vsel %vm4915_vm0, %v1166_v49, %v1168_v51  ;;  %1181 = vst.msk [vmem:[#allocation3 + $0x1c8] sm:$0xff] %vm570_vm2, %v1168_v51  ;;  %1904 = vrot.lane.b32.xlu0 %v4035_v54, %s4927_s28  ;;  %vm4917_vm0 = vcmask 777216  }
 0x1d3   : > { %1906 = vrot.lane.b32.xlu1 %v4037_v55, %s4927_s28  ;;  %s3879_s28 = smov 80  }
 0x1d4   : > { %v1936_v56 = vpop.permute.xlu0 %1935 }
 0x1d5   : > { %v1938_v57 = vpop.permute.xlu1 %1937 }
 0x1d6   : > { %v4372_v59 = vsel %vm4916_vm1, %v1936_v56, %v1938_v57  ;;  %1951 = vst.msk [vmem:[#allocation3 + $0x488] sm:$0xff] %vm570_vm2, %v1938_v57  ;;  %1169 = vrot.lane.b32.xlu0 %v4035_v54, %s3865_s16  ;;  %vm1978_vm1 = vcmask 375808  }
 0x1d7   : > { %1171 = vrot.lane.b32.xlu1 %v4037_v55, %s3865_s16  ;;  %s3872_s16 = smov 44  }
 0x1d8   : > { %v1201_v60 = vpop.permute.xlu0 %1200 }
 0x1d9   : > { %v1203_v62 = vpop.permute.xlu1 %1202 }
 0x1da   : > { %v4380_v63 = vsel %vm4917_vm0, %v1201_v60, %v1203_v62  ;;  %1216 = vst.msk [vmem:[#allocation3 + $0x1e8] sm:$0xff] %vm570_vm2, %v1203_v62  ;;  %1939 = vrot.lane.b32.xlu0 %v4035_v54, %s4928_s29  ;;  %vm1243_vm0 = vcmask 769024  }
 0x1db   : > { %1941 = vrot.lane.b32.xlu1 %v4037_v55, %s4928_s29 }
 0x1dc   : > { %v1971_v3 = vpop.permute.xlu0 %1970 }
 0x1dd   : > { %v1973_v4 = vpop.permute.xlu1 %1972 }
 0x1de   : > { %v4388_v5 = vsel %vm1978_vm1, %v1971_v3, %v1973_v4  ;;  %1986 = vst.msk [vmem:[#allocation3 + $0x4a8] sm:$0xff] %vm570_vm2, %v1973_v4  ;;  %1204 = vrot.lane.b32.xlu0 %v4035_v54, %s3867_s26  ;;  %v2510_v4 = vld [vmem:[#allocation3 + $0x88] sm:$0xff] }
 0x1df   : > { %1206 = vrot.lane.b32.xlu1 %v4037_v55, %s3867_s26  ;;  %s3870_s26 = smov 45  }
 0x1e0   : > { %v1236_v7 = vpop.permute.xlu0 %1235 }
 0x1e1   : > { %v1238_v8 = vpop.permute.xlu1 %1237 }
 0x1e2   : > { %v4396_v10 = vsel %vm1243_vm0, %v1236_v7, %v1238_v8  ;;  %1251 = vst.msk [vmem:[#allocation3 + $0x208] sm:$0xff] %vm570_vm2, %v1238_v8  ;;  %1974 = vrot.lane.b32.xlu0 %v4035_v54, %s3868_s27 }
 0x1e3   : > { %1976 = vrot.lane.b32.xlu1 %v4037_v55, %s3868_s27  ;;  %s3871_s27 = smov 93  }
 0x1e4   : > { %v715_v11 = vpop.permute.xlu0 %714 }
 0x1e5   : > { %v717_v13 = vpop.permute.xlu1 %716 }
 0x1e6   : > { %v720_v14 = vsel %vm718_vm3, %v715_v11, %v717_v13  ;;  %728 = vst.msk [vmem:[#allocation3 + $0x38] sm:$0xff] %vm570_vm2, %v717_v13  ;;  %1239 = vrot.lane.b32.xlu0 %v4035_v54, %s3869_s17  ;;  %vm4929_vm3 = vcmask 908288  }
 0x1e7   : > { %1241 = vrot.lane.b32.xlu1 %v4037_v55, %s3869_s17  ;;  %s3873_s17 = smov 92  }
 0x1e8   : > { %v750_v16 = vpop.permute.xlu0 %749 }
 0x1e9   : > { %v752_v17 = vpop.permute.xlu1 %751 }
 0x1ea   : > { %v755_v18 = vsel %vm753_vm4, %v750_v16, %v752_v17  ;;  %763 = vst.msk [vmem:[#allocation3 + $0x58] sm:$0xff] %vm570_vm2, %v752_v17  ;;  %2005 = vrot.lane.b32.xlu0 %v4020_v43, %s3870_s26  ;;  %vm4930_vm4 = vcmask 506880  }
 0x1eb   : > { %2007 = vrot.lane.b32.xlu1 %v4022_v44, %s3870_s26 }
 0x1ec   : > { %v1520_v19 = vpop.permute.xlu0 %1519 }
 0x1ed   : > { %v1522_v0 = vpop.permute.xlu1 %1521  ;;  %v2500_v21 = vld [vmem:[#allocation3 + $0x38] sm:$0xff] }
 0x1ee   : > { %v1525_v23 = vsel %vm1523_vm5, %v1520_v19, %v1522_v0  ;;  %1533 = vst.msk [vmem:[#allocation3 + $0x318] sm:$0xff] %vm570_vm2, %v1522_v0  ;;  %1270 = vrot.lane.b32.xlu0 %v4020_v43, %s3871_s27  ;;  %2909 = vmatprep.subr.bf16.mxu0 %v2500_v21  ;;  %vm4931_vm5 = vcmask 900096  }
 0x1ef   : > { %1272 = vrot.lane.b32.xlu1 %v4022_v44, %s3871_s27  ;;  %2910 = vmatpush1.bf16.msra.mxu0 %v720_v14 }
 0x1f0   : > { %v785_v27 = vpop.permute.xlu0 %784  ;;  %2911 = vmatprep.subr.bf16.mxu0 %v2502_v24 }
 0x1f1   : > { %v787_v28 = vpop.permute.xlu1 %786  ;;  %v2504_v31 = vld [vmem:[#allocation3 + $0x58] sm:$0xff] }
 0x1f2   : > { %v790_v30 = vsel %vm788_vm6, %v785_v27, %v787_v28  ;;  %798 = vst.msk [vmem:[#allocation3 + $0x78] sm:$0xff] %vm570_vm2, %v787_v28  ;;  %2009 = vrot.lane.b32.xlu0 %v4035_v54, %s3870_s26  ;;  %vm4932_vm6 = vcmask 498688  }
 0x1f3   : > { %2011 = vrot.lane.b32.xlu1 %v4037_v55, %s3870_s26  ;;  %2912 = vmatpush1.bf16.msra.mxu0 %v4164_v25  ;;  %s3885_s26 = smov 29  }
 0x1f4   : > { %v1555_v34 = vpop.permute.xlu0 %1554  ;;  %2913 = vmatprep.subr.bf16.mxu0 %v2504_v31 }
 0x1f5   : > { %v1557_v35 = vpop.permute.xlu1 %1556  ;;  %v2592_v38 = vld [vmem:[#allocation3 + $0x318] sm:$0xff] }
 0x1f6   : > { %v1560_v40 = vsel %vm1558_vm7, %v1555_v34, %v1557_v35  ;;  %1568 = vst.msk [vmem:[#allocation3 + $0x338] sm:$0xff] %vm570_vm2, %v1557_v35  ;;  %3088 = vmatprep.subr.bf16.mxu1 %v2592_v38  ;;  %1274 = vrot.lane.b32.xlu0 %v4035_v54, %s3871_s27  ;;  %vm4933_vm7 = vcmask 891904  }
 0x1f7   : > { %1276 = vrot.lane.b32.xlu1 %v4037_v55, %s3871_s27  ;;  %2914 = vmatpush1.bf16.msra.mxu0 %v755_v18  ;;  %v2514_v18 = vld [vmem:[#allocation3 + $0xa8] sm:$0xff] }
 0x1f8   : > { %3089 = vmatpush1.bf16.msra.mxu1 %v1525_v23  ;;  %v820_v49 = vpop.permute.xlu0 %819  ;;  %2915 = vmatprep.subr.bf16.mxu0 %v2506_v45 }
 0x1f9   : > { %3090 = vmatprep.subr.bf16.mxu1 %v2594_v46  ;;  %v822_v25 = vpop.permute.xlu1 %821  ;;  %v2508_v56 = vld [vmem:[#allocation3 + $0x78] sm:$0xff] }
 0x1fa   : > { %v825_v51 = vsel %vm823_vm8, %v820_v49, %v822_v25  ;;  %833 = vst.msk [vmem:[#allocation3 + $0x98] sm:$0xff] %vm570_vm2, %v822_v25  ;;  %2040 = vrot.lane.b32.xlu0 %v4020_v43, %s3872_s16  ;;  %v4466_v49 = vld [vmem:[#allocation3 + $0x10] sm:$0xff]  ;;  %vm4934_vm8 = vcmask 490496  }
 0x1fb   : > { %2042 = vrot.lane.b32.xlu1 %v4022_v44, %s3872_s16  ;;  %2916 = vmatpush1.bf16.msra.mxu0 %v4178_v32  ;;  %v2598_v32 = vld [vmem:[#allocation3 + $0x348] sm:$0xff] }
 0x1fc   : > { %3091 = vmatpush1.bf16.msra.mxu1 %v4186_v36  ;;  %v1590_v57 = vpop.permute.xlu0 %1589  ;;  %2917 = vmatprep.subr.bf16.mxu0 %v2508_v56 }
 0x1fd   : > { %v1592_v60 = vpop.permute.xlu1 %1591  ;;  %v2596_v62 = vld [vmem:[#allocation3 + $0x338] sm:$0xff] }
 0x1fe   : > { %v1595_v3 = vsel %vm1593_vm9, %v1590_v57, %v1592_v60  ;;  %1603 = vst.msk [vmem:[#allocation3 + $0x358] sm:$0xff] %vm570_vm2, %v1592_v60  ;;  %1305 = vrot.lane.b32.xlu0 %v4020_v43, %s3873_s17  ;;  %3092 = vmatprep.subr.bf16.mxu1 %v2596_v62  ;;  %vm4935_vm9 = vcmask 883712  }
 0x1ff   : > { %1307 = vrot.lane.b32.xlu1 %v4022_v44, %s3873_s17  ;;  %2918 = vmatpush1.bf16.msra.mxu0 %v790_v30  ;;  %v4454_v30 = vld [vmem:[#allocation3] sm:$0xff] }
 0x200   : > { %3093 = vmatpush1.bf16.msra.mxu1 %v1560_v40  ;;  %v855_v7 = vpop.permute.xlu0 %854  ;;  %2919 = vmatprep.subr.bf16.mxu0 %v2510_v4  ;;  %v2614_v4 = vld [vmem:[#allocation3 + $0x3c8] sm:$0xff] }
 0x201   : > { %3094 = vmatprep.subr.bf16.mxu1 %v2598_v32  ;;  %v857_v36 = vpop.permute.xlu1 %856  ;;  %v2512_v11 = vld [vmem:[#allocation3 + $0x98] sm:$0xff] }
 0x202   : > { %v860_v8 = vsel %vm858_vm10, %v855_v7, %v857_v36  ;;  %868 = vst.msk [vmem:[#allocation3 + $0xb8] sm:$0xff] %vm570_vm2, %v857_v36  ;;  %2044 = vrot.lane.b32.xlu0 %v4035_v54, %s3872_s16  ;;  %v3779_v36 = vld [vmem:[%s4874_s3 + $0x6c] ss:$52 sps:$4 sm:$0xff]   ;;  %vm4936_vm10 = vcmask 482304  }
 0x203   : > { %2046 = vrot.lane.b32.xlu1 %v4037_v55, %s3872_s16  ;;  %2920 = vmatpush1.bf16.msra.mxu0 %v4194_v39  ;;  %v2602_v39 = vld [vmem:[#allocation3 + $0x368] sm:$0xff] }
 0x204   : > { %3095 = vmatpush1.bf16.msra.mxu1 %v4202_v42  ;;  %v1625_v13 = vpop.permute.xlu0 %1624  ;;  %2921 = vmatprep.subr.bf16.mxu0 %v2512_v11 }
 0x205   : > { %v1627_v14 = vpop.permute.xlu1 %1626  ;;  %v2600_v16 = vld [vmem:[#allocation3 + $0x358] sm:$0xff] }
 0x206   : > { %v1630_v17 = vsel %vm1628_vm11, %v1625_v13, %v1627_v14  ;;  %1638 = vst.msk [vmem:[#allocation3 + $0x378] sm:$0xff] %vm570_vm2, %v1627_v14  ;;  %1309 = vrot.lane.b32.xlu0 %v4035_v54, %s3873_s17  ;;  %3096 = vmatprep.subr.bf16.mxu1 %v2600_v16  ;;  %vm4937_vm11 = vcmask 875520  }
 0x207   : > { %1311 = vrot.lane.b32.xlu1 %v4037_v55, %s3873_s17  ;;  %2922 = vmatpush1.bf16.msra.mxu0 %v825_v51 }
 0x208   : > { %3097 = vmatpush1.bf16.msra.mxu1 %v1595_v3  ;;  %v890_v19 = vpop.permute.xlu0 %889  ;;  %2923 = vmatprep.subr.bf16.mxu0 %v2514_v18  ;;  %v2530_v18 = vld [vmem:[#allocation3 + $0x128] sm:$0xff] }
 0x209   : > { %3098 = vmatprep.subr.bf16.mxu1 %v2602_v39  ;;  %v892_v42 = vpop.permute.xlu1 %891  ;;  %v2516_v21 = vld [vmem:[#allocation3 + $0xb8] sm:$0xff]  ;;  %v2618_v39 = vld [vmem:[#allocation3 + $0x3e8] sm:$0xff] }
 0x20a   : > { %v895_v0 = vsel %vm893_vm12, %v890_v19, %v892_v42  ;;  %903 = vst.msk [vmem:[#allocation3 + $0xd8] sm:$0xff] %vm570_vm2, %v892_v42  ;;  %2075 = vrot.lane.b32.xlu0 %v4020_v43, %s3874_s11  ;;  %v2518_v43 = vld [vmem:[#allocation3 + $0xc8] sm:$0xff]  ;;  %vm4938_vm12 = vcmask 474112  }
 0x20b   : > { %2077 = vrot.lane.b32.xlu1 %v4022_v44, %s3874_s11  ;;  %2924 = vmatpush1.bf16.msra.mxu0 %v4210_v47  ;;  %v2606_v47 = vld [vmem:[#allocation3 + $0x388] sm:$0xff] }
 0x20c   : > { %3099 = vmatpush1.bf16.msra.mxu1 %v4218_v50  ;;  %v1660_v23 = vpop.permute.xlu0 %1659  ;;  %2925 = vmatprep.subr.bf16.mxu0 %v2516_v21 }
 0x20d   : > { %v1662_v24 = vpop.permute.xlu1 %1661  ;;  %v2604_v27 = vld [vmem:[#allocation3 + $0x378] sm:$0xff] }
 0x20e   : > { %v1665_v28 = vsel %vm1663_vm13, %v1660_v23, %v1662_v24  ;;  %1673 = vst.msk [vmem:[#allocation3 + $0x398] sm:$0xff] %vm570_vm2, %v1662_v24  ;;  %1340 = vrot.lane.b32.xlu0 %v4454_v30, %s3875_s12  ;;  %3100 = vmatprep.subr.bf16.mxu1 %v2604_v27  ;;  %vm4939_vm13 = vcmask 867328  }
 0x20f   : > { %1342 = vrot.lane.b32.xlu1 %v4022_v44, %s3875_s12  ;;  %2926 = vmatpush1.bf16.msra.mxu0 %v860_v8 }
 0x210   : > { %3101 = vmatpush1.bf16.msra.mxu1 %v1630_v17  ;;  %v925_v50 = vpop.permute.xlu0 %924  ;;  %2927 = vmatprep.subr.bf16.mxu0 %v2518_v43 }
 0x211   : > { %3102 = vmatprep.subr.bf16.mxu1 %v2606_v47  ;;  %v927_v31 = vpop.permute.xlu1 %926  ;;  %v2520_v35 = vld [vmem:[#allocation3 + $0xd8] sm:$0xff] }
 0x212   : > { %v930_v34 = vsel %vm928_vm14, %v925_v50, %v927_v31  ;;  %938 = vst.msk [vmem:[#allocation3 + $0xf8] sm:$0xff] %vm570_vm2, %v927_v31  ;;  %2079 = vrot.lane.b32.xlu0 %v4035_v54, %s3874_s11  ;;  %v2522_v54 = vld [vmem:[#allocation3 + $0xe8] sm:$0xff]  ;;  %vm4940_vm14 = vcmask 392192  }
 0x213   : > { %2081 = vrot.lane.b32.xlu1 %v4037_v55, %s3874_s11  ;;  %2928 = vmatpush1.bf16.msra.mxu0 %v4226_v53  ;;  %v2610_v53 = vld [vmem:[#allocation3 + $0x3a8] sm:$0xff] }
 0x214   : > { %3103 = vmatpush1.bf16.msra.mxu1 %v4234_v58  ;;  %v1695_v38 = vpop.permute.xlu0 %1694  ;;  %2929 = vmatprep.subr.bf16.mxu0 %v2520_v35  ;;  %v3776_v31 = vld [vmem:[%s4874_s3 + $0x18] ss:$52 sps:$4 sm:$0xff]  }
 0x215   : > { %v1697_v40 = vpop.permute.xlu1 %1696  ;;  %v2608_v45 = vld [vmem:[#allocation3 + $0x398] sm:$0xff]  ;;  %v3786_v35 = vld [vmem:[%s4874_s3 + $0xc] ss:$52 sps:$4 sm:$0xff]  }
 0x216   : > { %v1700_v46 = vsel %vm1698_vm15, %v1695_v38, %v1697_v40  ;;  %1708 = vst.msk [vmem:[#allocation3 + $0x3b8] sm:$0xff] %vm570_vm2, %v1697_v40  ;;  %1344 = vrot.lane.b32.xlu0 %v4466_v49, %s3875_s12  ;;  %3104 = vmatprep.subr.bf16.mxu1 %v2608_v45  ;;  %vm4941_vm15 = vcmask 785408  }
 0x217   : > { %1346 = vrot.lane.b32.xlu1 %v4037_v55, %s3875_s12  ;;  %2930 = vmatpush1.bf16.msra.mxu0 %v895_v0  ;;  %s3886_s12 = smov 28  }
 0x218   : > { %3105 = vmatpush1.bf16.msra.mxu1 %v1665_v28  ;;  %v960_v58 = vpop.permute.xlu0 %959  ;;  %2931 = vmatprep.subr.bf16.mxu0 %v2522_v54 }
 0x219   : > { %3106 = vmatprep.subr.bf16.mxu1 %v2610_v53  ;;  %v962_v25 = vpop.permute.xlu1 %961  ;;  %v2524_v56 = vld [vmem:[#allocation3 + $0xf8] sm:$0xff] }
 0x21a   : > { %v965_v51 = vsel %vm4929_vm3, %v960_v58, %v962_v25  ;;  %973 = vst.msk [vmem:[#allocation3 + $0x118] sm:$0xff] %vm570_vm2, %v962_v25  ;;  %2110 = vrot.lane.b32.xlu0 %v4454_v30, %s3876_s13  ;;  %vm4942_vm3 = vcmask 384000  }
 0x21b   : > { %2112 = vrot.lane.b32.xlu1 %v4022_v44, %s3876_s13  ;;  %2932 = vmatpush1.bf16.msra.mxu0 %v4242_v61  ;;  %v3773_v61 = vld [vmem:[%s4874_s3] ss:$52 sps:$4 sm:$0xff]  }
 0x21c   : > { %3107 = vmatpush1.bf16.msra.mxu1 %v4250_v2  ;;  %v1730_v57 = vpop.permute.xlu0 %1729  ;;  %2933 = vmatprep.subr.bf16.mxu0 %v2524_v56  ;;  %v2526_v2 = vld [vmem:[#allocation3 + $0x108] sm:$0xff] }
 0x21d   : > { %v1732_v60 = vpop.permute.xlu1 %1731  ;;  %v2612_v62 = vld [vmem:[#allocation3 + $0x3b8] sm:$0xff]  ;;  %v2626_v56 = vld [vmem:[#allocation3 + $0x428] sm:$0xff] }
 0x21e   : > { %v1735_v3 = vsel %vm4930_vm4, %v1730_v57, %v1732_v60  ;;  %1743 = vst.msk [vmem:[#allocation3 + $0x3d8] sm:$0xff] %vm570_vm2, %v1732_v60  ;;  %1375 = vrot.lane.b32.xlu0 %v4454_v30, %s3877_s14  ;;  %3108 = vmatprep.subr.bf16.mxu1 %v2612_v62  ;;  %vm4943_vm4 = vcmask 777216  }
 0x21f   : > { %1377 = vrot.lane.b32.xlu1 %v4022_v44, %s3877_s14  ;;  %2934 = vmatpush1.bf16.msra.mxu0 %v930_v34 }
 0x220   : > { %3109 = vmatpush1.bf16.msra.mxu1 %v1700_v46  ;;  %v995_v32 = vpop.permute.xlu0 %994  ;;  %2964 = vmatprep.subr.bf16.mxu0 %v2526_v2  ;;  %v3787_v46 = vld [vmem:[%s4874_s3 + $0x84] ss:$52 sps:$4 sm:$0xff]  }
 0x221   : > { %3110 = vmatprep.subr.bf16.mxu1 %v2614_v4  ;;  %v997_v7 = vpop.permute.xlu1 %996  ;;  %v2528_v11 = vld [vmem:[#allocation3 + $0x118] sm:$0xff] }
 0x222   : > { %v1000_v8 = vsel %vm4931_vm5, %v995_v32, %v997_v7  ;;  %1008 = vst.msk [vmem:[#allocation3 + $0x138] sm:$0xff] %vm570_vm2, %v997_v7  ;;  %2114 = vrot.lane.b32.xlu0 %v4466_v49, %s3876_s13  ;;  %2936 = vmatmul.mubr.bf16.vlgmr.msra.gmra.mrb[16].mxu0 %v3773_v61  ;;  %vm2048_vm5 = vcmask 359424  }
 0x223   : > { %2116 = vrot.lane.b32.xlu1 %v4037_v55, %s3876_s13  ;;  %2965 = vmatpush1.bf16.msra.mxu0 %v4261_v6  ;;  %v3781_v6 = vld [vmem:[%s4874_s3 + $0x68] ss:$52 sps:$4 sm:$0xff]  }
 0x224   : > { %3111 = vmatpush1.bf16.msra.mxu1 %v4269_v9  ;;  %v1765_v13 = vpop.permute.xlu0 %1764  ;;  %2966 = vmatprep.subr.bf16.mxu0 %v2528_v11  ;;  %v2486_v9 = vld [vmem:[%s4874_s3 + $0xd0] sm:$0xff] }
 0x225   : > { %v1767_v14 = vpop.permute.xlu1 %1766  ;;  %v2616_v16 = vld [vmem:[#allocation3 + $0x3d8] sm:$0xff]  ;;  %2945 = vmatprep.mubr.bf16.mxu0 %v3779_v36  ;;  %v3592_v0 = vcombine.high %v2486_v9, %v2486_v9  ;;  %v3591_v47 = vcombine.low %v2486_v9, %v2486_v9 }
 0x226   : > { %v1770_v17 = vsel %vm4932_vm6, %v1765_v13, %v1767_v14  ;;  %1778 = vst.msk [vmem:[#allocation3 + $0x3f8] sm:$0xff] %vm570_vm2, %v1767_v14  ;;  %1379 = vrot.lane.b32.xlu0 %v4466_v49, %s3877_s14  ;;  %3112 = vmatprep.subr.bf16.mxu1 %v2616_v16  ;;  %v3794_v13 = vld [vmem:[%s4874_s3 + $0x24] ss:$52 sps:$4 sm:$0xff]   ;;  %vm1313_vm6 = vcmask 752640  }
 0x227   : > { %1381 = vrot.lane.b32.xlu1 %v4037_v55, %s3877_s14  ;;  %2967 = vmatpush1.bf16.msra.mxu0 %v965_v51  ;;  %v3789_v51 = vld [vmem:[%s4874_s3 + $0x80] ss:$52 sps:$4 sm:$0xff]  }
 0x228   : > { %3113 = vmatpush1.bf16.msra.mxu1 %v1735_v3  ;;  %v1030_v19 = vpop.permute.xlu0 %1029  ;;  %2968 = vmatprep.subr.bf16.mxu0 %v2530_v18  ;;  %v3881_v3 = vmov 0.0|0.0  }
 0x229   : > { %3114 = vmatprep.subr.bf16.mxu1 %v2618_v39  ;;  %v1032_v42 = vpop.permute.xlu1 %1031  ;;  %v2532_v23 = vld [vmem:[#allocation3 + $0x138] sm:$0xff] }
 0x22a   : > { %v1035_v21 = vsel %vm4933_vm7, %v1030_v19, %v1032_v42  ;;  %1043 = vst.msk [vmem:[#allocation3 + $0x158] sm:$0xff] %vm570_vm2, %v1032_v42  ;;  %2145 = vrot.lane.b32.xlu0 %v4454_v30, %s3878_s25  ;;  %2946 = vmatmul.mubr.bf16.gmra.mrb[20].mxu0 %v3781_v6  ;;  %vm2083_vm7 = vcmask 351232  }
 0x22b   : > { %2147 = vrot.lane.b32.xlu1 %v4022_v44, %s3878_s25  ;;  %2969 = vmatpush1.bf16.msra.mxu0 %v4277_v12  ;;  %v2534_v12 = vld [vmem:[#allocation3 + $0x148] sm:$0xff] }
 0x22c   : > { %3115 = vmatpush1.bf16.msra.mxu1 %v4285_v15  ;;  %v1800_v24 = vpop.permute.xlu0 %1799  ;;  %2970 = vmatprep.subr.bf16.mxu0 %v2532_v23  ;;  %v2622_v15 = vld [vmem:[#allocation3 + $0x408] sm:$0xff] }
 0x22d   : > { %v1802_v27 = vpop.permute.xlu1 %1801  ;;  %v2620_v28 = vld [vmem:[#allocation3 + $0x3f8] sm:$0xff]  ;;  %2955 = vmatprep.mubr.bf16.mxu0 %v3592_v0 }
 0x22e   : > { %v1805_v43 = vsel %vm4934_vm8, %v1800_v24, %v1802_v27  ;;  %1813 = vst.msk [vmem:[#allocation3 + $0x418] sm:$0xff] %vm570_vm2, %v1802_v27  ;;  %1410 = vrot.lane.b32.xlu0 %v4454_v30, %s3879_s28  ;;  %3116 = vmatprep.subr.bf16.mxu1 %v2620_v28  ;;  %vm1348_vm8 = vcmask 744448  }
 0x22f   : > { %1412 = vrot.lane.b32.xlu1 %v4022_v44, %s3879_s28  ;;  %2971 = vmatpush1.bf16.msra.mxu0 %v1000_v8  ;;  %v2630_v8 = vld [vmem:[#allocation3 + $0x448] sm:$0xff] }
 0x230   : > { %3117 = vmatpush1.bf16.msra.mxu1 %v1770_v17  ;;  %v1065_v50 = vpop.permute.xlu0 %1064  ;;  %2972 = vmatprep.subr.bf16.mxu0 %v2534_v12 }
 0x231   : > { %3147 = vmatprep.subr.bf16.mxu1 %v2622_v15  ;;  %v1067_v34 = vpop.permute.xlu1 %1066  ;;  %v2536_v40 = vld [vmem:[#allocation3 + $0x158] sm:$0xff] }
 0x232   : > { %v1070_v38 = vsel %vm4935_vm9, %v1065_v50, %v1067_v34  ;;  %1078 = vst.msk [vmem:[#allocation3 + $0x178] sm:$0xff] %vm570_vm2, %v1067_v34  ;;  %2149 = vrot.lane.b32.xlu0 %v4466_v49, %s3878_s25  ;;  %2956 = vmatmul.mubr.bf16.gmra.mrb[24].mxu0 %v3591_v47  ;;  %vm2118_vm9 = vcmask 343040  }
 0x233   : > { %2151 = vrot.lane.b32.xlu1 %v4037_v55, %s3878_s25  ;;  %2973 = vmatpush1.bf16.msra.mxu0 %v4300_v20  ;;  %v2489_v20 = vld [vmem:[%s4874_s3 + $0xe8] sm:$0xff] }
 0x234   : > { %3119 = vmatmul.mubr.bf16.vlgmr.msra.gmra.mrb[4].mxu1 %v3776_v31  ;;  %v1835_v45 = vpop.permute.xlu0 %1834  ;;  %2974 = vmatprep.subr.bf16.mxu0 %v2536_v40  ;;  %v3598_v60 = vcombine.high %v2489_v20, %v2489_v20 }
 0x235   : > { %3148 = vmatpush1.bf16.msra.mxu1 %v4308_v22  ;;  %v1837_v54 = vpop.permute.xlu1 %1836  ;;  %v2624_v53 = vld [vmem:[#allocation3 + $0x418] sm:$0xff]  ;;  %2996 = vmatprep.mubr.bf16.mxu0 %v3786_v35  ;;  %v2538_v22 = vld [vmem:[#allocation3 + $0x168] sm:$0xff] }
 0x236   : > { %v1840_v58 = vsel %vm4936_vm10, %v1835_v45, %v1837_v54  ;;  %1848 = vst.msk [vmem:[#allocation3 + $0x438] sm:$0xff] %vm570_vm2, %v1837_v54  ;;  %1414 = vrot.lane.b32.xlu0 %v4466_v49, %s3879_s28  ;;  %3149 = vmatprep.subr.bf16.mxu1 %v2624_v53  ;;  %vm1383_vm10 = vcmask 736256  }
 0x237   : > { %1416 = vrot.lane.b32.xlu1 %v4037_v55, %s3879_s28  ;;  %2975 = vmatpush1.bf16.msra.mxu0 %v1035_v21 }
 0x238   : > { %v1100_v25 = vpop.permute.xlu0 %1099  ;;  %2976 = vmatprep.subr.bf16.mxu0 %v2538_v22  ;;  %3128 = vmatprep.mubr.bf16.mxu1 %v3787_v46  ;;  %v3795_v22 = vld [vmem:[%s4874_s3 + $0x74] ss:$52 sps:$4 sm:$0xff]  }
 0x239   : > { %3150 = vmatpush1.bf16.msra.mxu1 %v1805_v43  ;;  %v1102_v57 = vpop.permute.xlu1 %1101  ;;  %v2540_v61 = vld [vmem:[#allocation3 + $0x178] sm:$0xff] }
 0x23a   : > { %3151 = vmatprep.subr.bf16.mxu1 %v2626_v56  ;;  %v1105_v62 = vsel %vm4937_vm11, %v1100_v25, %v1102_v57  ;;  %1113 = vst.msk [vmem:[#allocation3 + $0x198] sm:$0xff] %vm570_vm2, %v1102_v57  ;;  %2190 = vrot.lane.b32.xlu0 %v4022_v44, %s3880_s18  ;;  %vm1418_vm11 = vcmask 654336  }
 0x23b   : > { %2192 = vrot.lane.b32.xlu1 %v3881_v3, %s3880_s18  ;;  %2977 = vmatpush1.bf16.msra.mxu0 %v4316_v26  ;;  %v2542_v26 = vld [vmem:[#allocation3 + $0x188] sm:$0xff] }
 0x23c   : > { %v1870_v2 = vpop.permute.xlu0 %1869  ;;  %2978 = vmatprep.subr.bf16.mxu0 %v2540_v61  ;;  %3129 = vmatmul.mubr.bf16.gmra.mrb[8].mxu1 %v3789_v51 }
 0x23d   : > { %3152 = vmatpush1.bf16.msra.mxu1 %v4324_v29  ;;  %v1872_v4 = vpop.permute.xlu1 %1871  ;;  %v2628_v32 = vld [vmem:[#allocation3 + $0x438] sm:$0xff]  ;;  %3138 = vmatprep.mubr.bf16.mxu1 %v3598_v60  ;;  %v3597_v29 = vcombine.low %v2489_v20, %v2489_v20  ;;  %v2558_v20 = vld [vmem:[#allocation3 + $0x208] sm:$0xff] }
 0x23e   : > { %v1875_v7 = vsel %vm4938_vm12, %v1870_v2, %v1872_v4  ;;  %1883 = vst.msk [vmem:[#allocation3 + $0x458] sm:$0xff] %vm570_vm2, %v1872_v4  ;;  %2188 = vrot.lane.b32.xlu0 %v4454_v30, %s3880_s18  ;;  %3153 = vmatprep.subr.bf16.mxu1 %v2628_v32  ;;  %v2487_v2 = vld [vmem:[%s4874_s3 + $0xd8] sm:$0xff]  ;;  %v3797_v4 = vld [vmem:[%s4874_s3 + $0x70] ss:$52 sps:$4 sm:$0xff]   ;;  %vm2200_vm12 = vcmask 252928  }
 0x23f   : > { %1445 = vrot.lane.b32.xlu1 %v4454_v30, %s3882_s19  ;;  %2979 = vmatpush1.bf16.msra.mxu0 %v1070_v38  ;;  %v2642_v38 = vld [vmem:[#allocation3 + $0x4a8] sm:$0xff] }
 0x240   : > { %v1135_v36 = vpop.permute.xlu0 %1134  ;;  %2980 = vmatprep.subr.bf16.mxu0 %v2542_v26  ;;  %v3594_v26 = vcombine.high %v2487_v2, %v2487_v2 }
 0x241   : > { %3154 = vmatpush1.bf16.msra.mxu1 %v1840_v58  ;;  %v1137_v11 = vpop.permute.xlu1 %1136  ;;  %v2544_v16 = vld [vmem:[#allocation3 + $0x198] sm:$0xff] }
 0x242   : > { %3155 = vmatprep.subr.bf16.mxu1 %v2630_v8  ;;  %v1140_v14 = vsel %vm4939_vm13, %v1135_v36, %v1137_v11  ;;  %1148 = vst.msk [vmem:[#allocation3 + $0x1b8] sm:$0xff] %vm570_vm2, %v1137_v11  ;;  %1447 = vrot.lane.b32.xlu0 %v4022_v44, %s3882_s19  ;;  %vm1453_vm13 = vcmask 646144  }
 0x243   : > { %2196 = vrot.lane.b32.xlu1 %v4037_v55, %s3880_s18  ;;  %2981 = vmatpush1.bf16.msra.mxu0 %v4332_v33  ;;  %v2546_v33 = vld [vmem:[#allocation3 + $0x1a8] sm:$0xff] }
 0x244   : > { %v1905_v17 = vpop.permute.xlu0 %1904  ;;  %2982 = vmatprep.subr.bf16.mxu0 %v2544_v16  ;;  %3139 = vmatmul.mubr.bf16.gmra.mrb[12].mxu1 %v3597_v29  ;;  %v3593_v16 = vcombine.low %v2487_v2, %v2487_v2 }
 0x245   : > { %3156 = vmatpush1.bf16.msra.mxu1 %v4340_v37  ;;  %v1907_v6 = vpop.permute.xlu1 %1906  ;;  %v2632_v9 = vld [vmem:[#allocation3 + $0x458] sm:$0xff]  ;;  %3179 = vmatprep.mubr.bf16.mxu1 %v3794_v13  ;;  %v2634_v37 = vld [vmem:[#allocation3 + $0x468] sm:$0xff] }
 0x246   : > { %v1910_v18 = vsel %vm4940_vm14, %v1905_v17, %v1907_v6  ;;  %1918 = vst.msk [vmem:[#allocation3 + $0x478] sm:$0xff] %vm570_vm2, %v1907_v6  ;;  %2198 = vrot.lane.b32.xlu0 %v3881_v3, %s3880_s18  ;;  %3157 = vmatprep.subr.bf16.mxu1 %v2632_v9  ;;  %v3802_v9 = vld [vmem:[%s4874_s3 + $0x14] ss:$52 sps:$4 sm:$0xff]   ;;  %vm2249_vm14 = vcmask 244736  }
 0x247   : > { %2194 = vrot.lane.b32.xlu1 %v4466_v49, %s3880_s18  ;;  %2983 = vmatpush1.bf16.msra.mxu0 %v1105_v62  ;;  %s3888_s18 = smov 26  }
 0x248   : > { %v1170_v39 = vpop.permute.xlu0 %1169  ;;  %2984 = vmatprep.subr.bf16.mxu0 %v2546_v33 }
 0x249   : > { %3158 = vmatpush1.bf16.msra.mxu1 %v1875_v7  ;;  %v1172_v19 = vpop.permute.xlu1 %1171  ;;  %v2548_v0 = vld [vmem:[#allocation3 + $0x1b8] sm:$0xff] }
 0x24a   : > { %3159 = vmatprep.subr.bf16.mxu1 %v2634_v37  ;;  %v1175_v42 = vsel %vm4941_vm15, %v1170_v39, %v1172_v19  ;;  %1183 = vst.msk [vmem:[#allocation3 + $0x1d8] sm:$0xff] %vm570_vm2, %v1172_v19  ;;  %1449 = vrot.lane.b32.xlu0 %v4466_v49, %s3882_s19  ;;  %vm1488_vm15 = vcmask 637952  }
 0x24b   : > { %1451 = vrot.lane.b32.xlu1 %v4037_v55, %s3882_s19  ;;  %2985 = vmatpush1.bf16.msra.mxu0 %v4348_v41  ;;  %v2550_v41 = vld [vmem:[#allocation3 + $0x1c8] sm:$0xff] }
 0x24c   : > { %v1940_v21 = vpop.permute.xlu0 %1939  ;;  %2986 = vmatprep.subr.bf16.mxu0 %v2548_v0 }
 0x24d   : > { %3160 = vmatpush1.bf16.msra.mxu1 %v4356_v48  ;;  %v1942_v23 = vpop.permute.xlu1 %1941  ;;  %v2636_v24 = vld [vmem:[#allocation3 + $0x478] sm:$0xff]  ;;  %v2638_v48 = vld [vmem:[#allocation3 + $0x488] sm:$0xff] }
 0x24e   : > { %v1945_v27 = vsel %vm4942_vm3, %v1940_v21, %v1942_v23  ;;  %1953 = vst.msk [vmem:[#allocation3 + $0x498] sm:$0xff] %vm570_vm2, %v1942_v23  ;;  %2239 = vrot.lane.b32.xlu0 %v4022_v44, %s3883_s22  ;;  %3161 = vmatprep.subr.bf16.mxu1 %v2636_v24  ;;  %vm2298_vm3 = vcmask 236544  }
 0x24f   : > { %2241 = vrot.lane.b32.xlu1 %v3881_v3, %s3883_s22  ;;  %2987 = vmatpush1.bf16.msra.mxu0 %v1140_v14 }
 0x250   : > { %v1205_v28 = vpop.permute.xlu0 %1204  ;;  %2988 = vmatprep.subr.bf16.mxu0 %v2550_v41 }
 0x251   : > { %3162 = vmatpush1.bf16.msra.mxu1 %v1910_v18  ;;  %v1207_v43 = vpop.permute.xlu1 %1206  ;;  %v2552_v12 = vld [vmem:[#allocation3 + $0x1d8] sm:$0xff] }
 0x252   : > { %3163 = vmatprep.subr.bf16.mxu1 %v2638_v48  ;;  %v1210_v47 = vsel %vm4943_vm4, %v1205_v28, %v1207_v43  ;;  %1218 = vst.msk [vmem:[#allocation3 + $0x1f8] sm:$0xff] %vm570_vm2, %v1207_v43  ;;  %2237 = vrot.lane.b32.xlu0 %v4454_v30, %s3883_s22  ;;  %v3792_v43 = vld [vmem:[%s4874_s3 + $0x20] ss:$52 sps:$4 sm:$0xff]   ;;  %vm2347_vm4 = vcmask 228352  }
 0x253   : > { %1480 = vrot.lane.b32.xlu1 %v4454_v30, %s3884_s23  ;;  %2989 = vmatpush1.bf16.msra.mxu0 %v4364_v52  ;;  %v2554_v52 = vld [vmem:[#allocation3 + $0x1e8] sm:$0xff] }
 0x254   : > { %v1975_v15 = vpop.permute.xlu0 %1974  ;;  %2990 = vmatprep.subr.bf16.mxu0 %v2552_v12 }
 0x255   : > { %3164 = vmatpush1.bf16.msra.mxu1 %v4372_v59  ;;  %v1977_v50 = vpop.permute.xlu1 %1976  ;;  %v2640_v31 = vld [vmem:[#allocation3 + $0x498] sm:$0xff] }
 0x256   : > { %v1980_v34 = vsel %vm1978_vm1, %v1975_v15, %v1977_v50  ;;  %1988 = vst.msk [vmem:[#allocation3 + $0x4b8] sm:$0xff] %vm570_vm2, %v1977_v50  ;;  %1482 = vrot.lane.b32.xlu0 %v4022_v44, %s3884_s23  ;;  %3165 = vmatprep.subr.bf16.mxu1 %v2640_v31  ;;  %vm2013_vm1 = vcmask 367616   ;;  %v3808_v15 = vld [vmem:[%s4874_s3 + $0x8c] ss:$52 sps:$4 sm:$0xff]  }
 0x257   : > { %2245 = vrot.lane.b32.xlu1 %v4037_v55, %s3883_s22  ;;  %2991 = vmatpush1.bf16.msra.mxu0 %v1175_v42 }
 0x258   : > { %v1240_v35 = vpop.permute.xlu0 %1239  ;;  %2992 = vmatprep.subr.bf16.mxu0 %v2554_v52  ;;  %v2476_v52 = vld [vmem:[%s4874_s3 + $0x88] sm:$0xff] }
 0x259   : > { %3166 = vmatpush1.bf16.msra.mxu1 %v1945_v27  ;;  %v1242_v59 = vpop.permute.xlu1 %1241  ;;  %v2556_v45 = vld [vmem:[#allocation3 + $0x1f8] sm:$0xff] }
 0x25a   : > { %3167 = vmatprep.subr.bf16.mxu1 %v2642_v38  ;;  %v1245_v40 = vsel %vm1243_vm0, %v1240_v35, %v1242_v59  ;;  %1253 = vst.msk [vmem:[#allocation3 + $0x218] sm:$0xff] %vm570_vm2, %v1242_v59  ;;  %2247 = vrot.lane.b32.xlu0 %v3881_v3, %s3883_s22  ;;  %vm1278_vm0 = vcmask 760832   ;;  %v2483_v35 = vld [vmem:[%s4874_s3 + $0xbc] sm:$0xff] }
 0x25b   : > { %2243 = vrot.lane.b32.xlu1 %v4466_v49, %s3883_s22  ;;  %2993 = vmatpush1.bf16.msra.mxu0 %v4380_v63  ;;  %v3784_v63 = vld [vmem:[%s4874_s3 + $0x8] ss:$52 sps:$4 sm:$0xff]  }
 0x25c   : > { %v2006_v46 = vpop.permute.xlu0 %2005  ;;  %2994 = vmatprep.subr.bf16.mxu0 %v2556_v45 }
 0x25d   : > { %3168 = vmatpush1.bf16.msra.mxu1 %v4388_v5  ;;  %v2008_v54 = vpop.permute.xlu1 %2007  ;;  %v2644_v53 = vld [vmem:[#allocation3 + $0x4b8] sm:$0xff] }
 0x25e   : > { %v2014_v58 = vsel %vm2013_vm1, %v2006_v46, %v2008_v54  ;;  %2021 = vst.msk [vmem:[#allocation3 + $0x4c8] sm:$0xff] %vm570_vm2, %v2008_v54  ;;  %1484 = vrot.lane.b32.xlu0 %v4466_v49, %s3884_s23  ;;  %3169 = vmatprep.subr.bf16.mxu1 %v2644_v53 }
 0x25f   : > { %1486 = vrot.lane.b32.xlu1 %v4037_v55, %s3884_s23  ;;  %2995 = vmatpush1.bf16.msra.mxu0 %v1210_v47 }
 0x260   : > { %v1271_v5 = vpop.permute.xlu0 %1270  ;;  %3025 = vmatprep.subr.bf16.mxu0 %v2558_v20 }
 0x261   : > { %3170 = vmatpush1.bf16.msra.mxu1 %v1980_v34  ;;  %v1273_v25 = vpop.permute.xlu1 %1272  ;;  %v2560_v56 = vld [vmem:[#allocation3 + $0x218] sm:$0xff] }
 0x262   : > { %v1279_v51 = vsel %vm1278_vm0, %v1271_v5, %v1273_v25  ;;  %1286 = vst.msk [vmem:[#allocation3 + $0x228] sm:$0xff] %vm570_vm2, %v1273_v25  ;;  %2288 = vrot.lane.b32.xlu0 %v4022_v44, %s3885_s26  ;;  %2997 = vmatmul.mubr.bf16.vlgmr.msra.gmra.mrb[16].mxu0 %v3784_v63 }
 0x263   : > { %2290 = vrot.lane.b32.xlu1 %v3881_v3, %s3885_s26  ;;  %3026 = vmatpush1.bf16.msra.mxu0 %v4396_v10 }
 0x264   : > { %v2010_v57 = vpop.permute.xlu0 %2009  ;;  %3027 = vmatprep.subr.bf16.mxu0 %v2560_v56  ;;  %3006 = vmatprep.mubr.bf16.mxu0 %v3795_v22 }
 0x265   : > { %v2012_v60 = vpop.permute.xlu1 %2011  ;;  %v2646_v62 = vld [vmem:[#allocation3 + $0x4c8] sm:$0xff] }
 0x266   : > { %v2015_v61 = vsel %vm2013_vm1, %v2010_v57, %v2012_v60  ;;  %2023 = vst.msk [vmem:[#allocation3 + $0x4d8] sm:$0xff] %vm570_vm2, %v2012_v60  ;;  %2286 = vrot.lane.b32.xlu0 %v4454_v30, %s3885_s26  ;;  %3171 = vmatprep.subr.bf16.mxu1 %v2646_v62  ;;  %v3813_v57 = vld [vmem:[%s4874_s3 + $0x2c] ss:$52 sps:$4 sm:$0xff]   ;;  %vm2396_vm1 = vcmask 220160  }
 0x267   : > { %2294 = vrot.lane.b32.xlu1 %v4037_v55, %s3885_s26  ;;  %3028 = vmatpush1.bf16.msra.mxu0 %v1245_v40  ;;  %v3586_v40 = vcombine.low %v2476_v52, %v2483_v35 }
 0x268   : > { %3172 = vmatpush1.bf16.msra.mxu1 %v2014_v58  ;;  %v1275_v10 = vpop.permute.xlu0 %1274 }
 0x269   : > { %v1277_v32 = vpop.permute.xlu1 %1276  ;;  %v2562_v7 = vld [vmem:[#allocation3 + $0x228] sm:$0xff] }
 0x26a   : > { %v1280_v36 = vsel %vm1278_vm0, %v1275_v10, %v1277_v32  ;;  %1288 = vst.msk [vmem:[#allocation3 + $0x238] sm:$0xff] %vm570_vm2, %v1277_v32  ;;  %2296 = vrot.lane.b32.xlu0 %v3881_v3, %s3885_s26  ;;  %3029 = vmatprep.subr.bf16.mxu0 %v2562_v7  ;;  %v2691_v10 = vld [vmem:[%s4875_s4 + $0x10] sm:$0xff]  ;;  %vm2445_vm0 = vcmask 211968  }
 0x26b   : > { %2292 = vrot.lane.b32.xlu1 %v4466_v49, %s3885_s26  ;;  %3030 = vmatpush1.bf16.msra.mxu0 %v1279_v51 }
 0x26c   : > { %v2041_v29 = vpop.permute.xlu0 %2040  ;;  %3007 = vmatmul.mubr.bf16.gmra.mrb[20].mxu0 %v3797_v4 }
 0x26d   : > { %v2043_v8 = vpop.permute.xlu1 %2042  ;;  %v2648_v11 = vld [vmem:[#allocation3 + $0x4d8] sm:$0xff]  ;;  %3016 = vmatprep.mubr.bf16.mxu0 %v3594_v26 }
 0x26e   : > { %v2049_v13 = vsel %vm2048_vm5, %v2041_v29, %v2043_v8  ;;  %2056 = vst.msk [vmem:[#allocation3 + $0x4e8] sm:$0xff] %vm570_vm2, %v2043_v8  ;;  %2337 = vrot.lane.b32.xlu0 %v4022_v44, %s3886_s12  ;;  %3173 = vmatprep.subr.bf16.mxu1 %v2648_v11 }
 0x26f   : > { %2339 = vrot.lane.b32.xlu1 %v3881_v3, %s3886_s12  ;;  %3174 = vmatpush1.bf16.msra.mxu1 %v2015_v61 }
 0x270   : > { %v1306_v14 = vpop.permute.xlu0 %1305 }
 0x271   : > { %v1308_v17 = vpop.permute.xlu1 %1307  ;;  %v2564_v6 = vld [vmem:[#allocation3 + $0x238] sm:$0xff] }
 0x272   : > { %v1314_v18 = vsel %vm1313_vm6, %v1306_v14, %v1308_v17  ;;  %1321 = vst.msk [vmem:[#allocation3 + $0x248] sm:$0xff] %vm570_vm2, %v1308_v17  ;;  %2335 = vrot.lane.b32.xlu0 %v4454_v30, %s3886_s12  ;;  %3031 = vmatprep.subr.bf16.mxu0 %v2564_v6  ;;  %v2693_v14 = vld [vmem:[%s4875_s4 + $0x20] sm:$0xff] }
 0x273   : > { %2343 = vrot.lane.b32.xlu1 %v4037_v55, %s3886_s12  ;;  %3032 = vmatpush1.bf16.msra.mxu0 %v1280_v36  ;;  %v2692_v36 = vld [vmem:[%s4875_s4 + $0x18] sm:$0xff] }
 0x274   : > { %v2045_v33 = vpop.permute.xlu0 %2044  ;;  %3017 = vmatmul.mubr.bf16.gmra.mrb[24].mxu0 %v3593_v16 }
 0x275   : > { %v2047_v39 = vpop.permute.xlu1 %2046  ;;  %v2650_v37 = vld [vmem:[#allocation3 + $0x4e8] sm:$0xff]  ;;  %3057 = vmatprep.mubr.bf16.mxu0 %v3802_v9  ;;  %v4739_v9 = vpop.f32.mrb[0].mxu1 }
 0x276   : > { %v2050_v19 = vsel %vm2048_vm5, %v2045_v33, %v2047_v39  ;;  %2058 = vst.msk [vmem:[#allocation3 + $0x4f8] sm:$0xff] %vm570_vm2, %v2047_v39  ;;  %2345 = vrot.lane.b32.xlu0 %v3881_v3, %s3886_s12  ;;  %3175 = vmatprep.subr.bf16.mxu1 %v2650_v37  ;;  %v4743_v33 = vpop.f32.mrb[1].mxu1 }
 0x277   : > { %2341 = vrot.lane.b32.xlu1 %v4466_v49, %s3886_s12  ;;  %3176 = vmatpush1.bf16.msra.mxu1 %v2049_v13  ;;  %s3610_s12 = sshll.u32 %s4945_s10, 5 }
 0x278   : > { %v1310_v42 = vpop.permute.xlu0 %1309 }
 0x279   : > { %v1312_v0 = vpop.permute.xlu1 %1311  ;;  %v2566_v21 = vld [vmem:[#allocation3 + $0x248] sm:$0xff] }
 0x27a   : > { %v1315_v23 = vsel %vm1313_vm6, %v1310_v42, %v1312_v0  ;;  %1323 = vst.msk [vmem:[#allocation3 + $0x258] sm:$0xff] %vm570_vm2, %v1312_v0  ;;  %2386 = vrot.lane.b32.xlu0 %v4022_v44, %s3887_s15  ;;  %3033 = vmatprep.subr.bf16.mxu0 %v2566_v21  ;;  %v4747_v0 = vpop.f32.mrb[2].mxu1 }
 0x27b   : > { %2388 = vrot.lane.b32.xlu1 %v3881_v3, %s3887_s15  ;;  %3034 = vmatpush1.bf16.msra.mxu0 %v1314_v18 }
 0x27c   : > { %v2076_v24 = vpop.permute.xlu0 %2075 }
 0x27d   : > { %v2078_v27 = vpop.permute.xlu1 %2077  ;;  %v2652_v41 = vld [vmem:[#allocation3 + $0x4f8] sm:$0xff] }
 0x27e   : > { %v2084_v28 = vsel %vm2083_vm7, %v2076_v24, %v2078_v27  ;;  %2091 = vst.msk [vmem:[#allocation3 + $0x508] sm:$0xff] %vm570_vm2, %v2078_v27  ;;  %2384 = vrot.lane.b32.xlu0 %v4454_v30, %s3887_s15  ;;  %3177 = vmatprep.subr.bf16.mxu1 %v2652_v41 }
 0x27f   : > { %2435 = vrot.lane.b32.xlu1 %v4022_v44, %s3888_s18  ;;  %3178 = vmatpush1.bf16.msra.mxu1 %v2050_v19 }
 0x280   : > { %v1341_v48 = vpop.permute.xlu0 %1340 }
 0x281   : > { %v1343_v47 = vpop.permute.xlu1 %1342  ;;  %v2568_v12 = vld [vmem:[#allocation3 + $0x258] sm:$0xff] }
 0x282   : > { %v1349_v50 = vsel %vm1348_vm8, %v1341_v48, %v1343_v47  ;;  %1356 = vst.msk [vmem:[#allocation3 + $0x268] sm:$0xff] %vm570_vm2, %v1343_v47  ;;  %2437 = vrot.lane.b32.xlu0 %v3881_v3, %s3888_s18  ;;  %3035 = vmatprep.subr.bf16.mxu0 %v2568_v12 }
 0x283   : > { %2433 = vrot.lane.b32.xlu1 %v4454_v30, %s3888_s18  ;;  %3036 = vmatpush1.bf16.msra.mxu0 %v1315_v23  ;;  %v2490_v30 = vld [vmem:[%s4874_s3 + $0xf0] sm:$0xff]  ;;  %v4749_v23 = vpop.f32.mrb[3].mxu1 }
 0x284   : > { %v2080_v44 = vpop.permute.xlu0 %2079  ;;  %3180 = vmatmul.mubr.bf16.vlgmr.msra.gmra.mrb[4].mxu1 %v3792_v43  ;;  %v3600_v54 = vcombine.high %v2490_v30, %v2490_v30  ;;  %v3599_v25 = vcombine.low %v2490_v30, %v2490_v30 }
 0x285   : > { %v2082_v31 = vpop.permute.xlu1 %2081  ;;  %v2654_v34 = vld [vmem:[#allocation3 + $0x508] sm:$0xff]  ;;  %3189 = vmatprep.mubr.bf16.mxu1 %v3808_v15 }
 0x286   : > { %v2085_v38 = vsel %vm2083_vm7, %v2080_v44, %v2082_v31  ;;  %2093 = vst.msk [vmem:[#allocation3 + $0x518] sm:$0xff] %vm570_vm2, %v2082_v31  ;;  %2392 = vrot.lane.b32.xlu0 %v4037_v55, %s3887_s15  ;;  %3208 = vmatprep.subr.bf16.mxu1 %v2654_v34  ;;  %vm3444_vm7 = vcmask 15360  }
 0x287   : > { %2394 = vrot.lane.b32.xlu1 %v3881_v3, %s3887_s15  ;;  %3209 = vmatpush1.bf16.msra.mxu1 %v2084_v28 }
 0x288   : > { %v1345_v59 = vpop.permute.xlu0 %1344 }
 0x289   : > { %v1347_v45 = vpop.permute.xlu1 %1346  ;;  %v2570_v46 = vld [vmem:[#allocation3 + $0x268] sm:$0xff] }
 0x28a   : > { %v1350_v53 = vsel %vm1348_vm8, %v1345_v59, %v1347_v45  ;;  %1358 = vst.msk [vmem:[#allocation3 + $0x278] sm:$0xff] %vm570_vm2, %v1347_v45  ;;  %2390 = vrot.lane.b32.xlu0 %v4466_v49, %s3887_s15  ;;  %3037 = vmatprep.subr.bf16.mxu0 %v2570_v46  ;;  %s343_s15 = scalar_lea.vmem %s4880_s9, %s3610_s12  ;;  %vm3446_vm8 = vcmask 23552  }
 0x28b   : > { %2441 = vrot.lane.b32.xlu1 %v4037_v55, %s3888_s18  ;;  %3038 = vmatpush1.bf16.msra.mxu0 %v1349_v50  ;;  %v2689_v55 = vld [vmem:[%s4875_s4] sm:$0xff] }
 0x28c   : > { %v2111_v58 = vpop.permute.xlu0 %2110  ;;  %3190 = vmatmul.mubr.bf16.gmra.mrb[8].mxu1 %v3586_v40 }
 0x28d   : > { %v2113_v63 = vpop.permute.xlu1 %2112  ;;  %v2656_v20 = vld [vmem:[#allocation3 + $0x518] sm:$0xff]  ;;  %3199 = vmatprep.mubr.bf16.mxu1 %v3600_v54 }
 0x28e   : > { %v2119_v5 = vsel %vm2118_vm9, %v2111_v58, %v2113_v63  ;;  %2126 = vst.msk [vmem:[#allocation3 + $0x528] sm:$0xff] %vm570_vm2, %v2113_v63  ;;  %2443 = vrot.lane.b32.xlu0 %v3881_v3, %s3888_s18  ;;  %3210 = vmatprep.subr.bf16.mxu1 %v2656_v20 }
 0x28f   : > { %2439 = vrot.lane.b32.xlu1 %v4466_v49, %s3888_s18  ;;  %3211 = vmatpush1.bf16.msra.mxu1 %v2085_v38  ;;  %v2690_v49 = vld [vmem:[%s4875_s4 + $0x8] sm:$0xff]  ;;  %s3550_s18 = sshll.u32 %s4945_s10, 3 }
 0x290   : > { %v1376_v22 = vpop.permute.xlu0 %1375  ;;  %s338_s21 = scalar_lea.vmem %s4879_s8, %s3550_s18 }
 0x291   : > { %v1378_v51 = vpop.permute.xlu1 %1377  ;;  %v2572_v56 = vld [vmem:[#allocation3 + $0x278] sm:$0xff] }
 0x292   : > { %v1384_v3 = vsel %vm1383_vm10, %v1376_v22, %v1378_v51  ;;  %1391 = vst.msk [vmem:[#allocation3 + $0x288] sm:$0xff] %vm570_vm2, %v1378_v51  ;;  %2696 = vperm.xlu0 %3771, %v2689_v55   ;;  %3039 = vmatprep.subr.bf16.mxu0 %v2572_v56 }
 0x293   : > { %3040 = vmatpush1.bf16.msra.mxu0 %v1350_v53 }
 0x294   : > { %v2115_v60 = vpop.permute.xlu0 %2114  ;;  %3200 = vmatmul.mubr.bf16.gmra.mrb[12].mxu1 %v3599_v25 }
 0x295   : > { %v2117_v62 = vpop.permute.xlu1 %2116  ;;  %v2658_v61 = vld [vmem:[#allocation3 + $0x528] sm:$0xff]  ;;  %3240 = vmatprep.mubr.bf16.mxu1 %v3813_v57 }
 0x296   : > { %v2120_v2 = vsel %vm2118_vm9, %v2115_v60, %v2117_v62  ;;  %2128 = vst.msk [vmem:[#allocation3 + $0x538] sm:$0xff] %vm570_vm2, %v2117_v62  ;;  %2701 = vperm.xlu0 %3771, %v2690_v49   ;;  %3212 = vmatprep.subr.bf16.mxu1 %v2658_v61  ;;  %vm3448_vm9 = vcmask 31744  }
 0x297   : > { %3213 = vmatpush1.bf16.msra.mxu1 %v2119_v5 }
 0x298   : > { %v1380_v4 = vpop.permute.xlu0 %1379 }
 0x299   : > { %v1382_v32 = vpop.permute.xlu1 %1381  ;;  %v2574_v7 = vld [vmem:[#allocation3 + $0x288] sm:$0xff] }
 0x29a   : > { %v1385_v26 = vsel %vm1383_vm10, %v1380_v4, %v1382_v32  ;;  %1393 = vst.msk [vmem:[#allocation3 + $0x298] sm:$0xff] %vm570_vm2, %v1382_v32  ;;  %2706 = vperm.xlu0 %3771, %v2691_v10   ;;  %3041 = vmatprep.subr.bf16.mxu0 %v2574_v7  ;;  %vm3450_vm10 = vcmask 39936  }
 0x29b   : > { %3042 = vmatpush1.bf16.msra.mxu0 %v1384_v3 }
 0x29c   : > { %v2146_v29 = vpop.permute.xlu0 %2145 }
 0x29d   : > { %v2148_v8 = vpop.permute.xlu1 %2147  ;;  %v2660_v11 = vld [vmem:[#allocation3 + $0x538] sm:$0xff] }
 0x29e   : > { %v2154_v13 = vsel %vm570_vm2, %v2146_v29, %v2148_v8  ;;  %2161 = vst.msk [vmem:[#allocation3 + $0x548] sm:$0xff] %vm570_vm2, %v2148_v8  ;;  %2711 = vperm.xlu0 %3771, %v2692_v36   ;;  %3214 = vmatprep.subr.bf16.mxu1 %v2660_v11 }
 0x29f   : > { %3215 = vmatpush1.bf16.msra.mxu1 %v2120_v2 }
 0x2a0   : > { %v1411_v16 = vpop.permute.xlu0 %1410 }
 0x2a1   : > { %v1413_v17 = vpop.permute.xlu1 %1412  ;;  %v2576_v6 = vld [vmem:[#allocation3 + $0x298] sm:$0xff] }
 0x2a2   : > { %v1419_v18 = vsel %vm1418_vm11, %v1411_v16, %v1413_v17  ;;  %1426 = vst.msk [vmem:[#allocation3 + $0x2a8] sm:$0xff] %vm570_vm2, %v1413_v17  ;;  %2716 = vperm.xlu0 %3771, %v2693_v14   ;;  %3043 = vmatprep.subr.bf16.mxu0 %v2576_v6  ;;  %v3800_v17 = vld [vmem:[%s4874_s3 + $0x10] ss:$52 sps:$4 sm:$0xff]  }
 0x2a3   : > { %3044 = vmatpush1.bf16.msra.mxu0 %v1385_v26  ;;  %v3803_v6 = vld [vmem:[%s4874_s3 + $0x7c] ss:$52 sps:$4 sm:$0xff]  }
 0x2a4   : > { %v2150_v39 = vpop.permute.xlu0 %2149 }
 0x2a5   : > { %v2152_v37 = vpop.permute.xlu1 %2151  ;;  %v2662_v19 = vld [vmem:[#allocation3 + $0x548] sm:$0xff] }
 0x2a6   : > { %v2155_v42 = vsel %vm570_vm2, %v2150_v39, %v2152_v37  ;;  %2163 = vst.msk [vmem:[#allocation3 + $0x558] sm:$0xff] %vm570_vm2, %v2152_v37  ;;  %3216 = vmatprep.subr.bf16.mxu1 %v2662_v19 }
 0x2a7   : > { %3217 = vmatpush1.bf16.msra.mxu1 %v2154_v13 }
 0x2a8   : > { %v1415_v21 = vpop.permute.xlu0 %1414 }
 0x2a9   : > { %v1417_v24 = vpop.permute.xlu1 %1416  ;;  %v2578_v27 = vld [vmem:[#allocation3 + $0x2a8] sm:$0xff] }
 0x2aa   : > { %v1420_v41 = vsel %vm1418_vm11, %v1415_v21, %v1417_v24  ;;  %1428 = vst.msk [vmem:[#allocation3 + $0x2b8] sm:$0xff] %vm570_vm2, %v1417_v24  ;;  %3045 = vmatprep.subr.bf16.mxu0 %v2578_v27  ;;  %v2488_v24 = vld [vmem:[%s4874_s3 + $0xe0] sm:$0xff]  ;;  %vm3452_vm11 = vcmask 48128  }
 0x2ab   : > { %3046 = vmatpush1.bf16.msra.mxu0 %v1419_v18 }
 0x2ac   : > { %v2191_v28 = vpop.permute.xlu0 %2190 }
 0x2ad   : > { %v2193_v48 = vpop.permute.xlu1 %2192  ;;  %v2664_v43 = vld [vmem:[#allocation3 + $0x558] sm:$0xff] }
 0x2ae   : > { %v2202_v47 = vsel %vm2200_vm12, %v2191_v28, %v2193_v48  ;;  %3218 = vmatprep.subr.bf16.mxu1 %v2664_v43  ;;  %v3596_v48 = vcombine.high %v2488_v24, %v2488_v24 }
 0x2af   : > { %2210 = vst.msk [vmem:[#allocation3 + $0x568] sm:$0xff] %vm570_vm2, %v2202_v47  ;;  %3219 = vmatpush1.bf16.msra.mxu1 %v2155_v42 }
 0x2b0   : > { %v2189_v12 = vpop.permute.xlu0 %2188 }
 0x2b1   : > { %v2201_v15 = vsel %vm2200_vm12, %v2189_v12, %v2191_v28  ;;  %v1446_v50 = vpop.permute.xlu1 %1445  ;;  %v2580_v44 = vld [vmem:[#allocation3 + $0x2b8] sm:$0xff] }
 0x2b2   : > { %3047 = vmatprep.subr.bf16.mxu0 %v2580_v44  ;;  %v3805_v28 = vld [vmem:[%s4874_s3 + $0x78] ss:$52 sps:$4 sm:$0xff]  }
 0x2b3   : > { %3048 = vmatpush1.bf16.msra.mxu0 %v1420_v41 }
 0x2b4   : > { %v1448_v31 = vpop.permute.xlu0 %1447 }
 0x2b5   : > { %v1454_v34 = vsel %vm1453_vm13, %v1446_v50, %v1448_v31  ;;  %1461 = vst.msk [vmem:[#allocation3 + $0x2c8] sm:$0xff] %vm570_vm2, %v1448_v31  ;;  %v2197_v52 = vpop.permute.xlu1 %2196 }
 0x2b6   : > { %v2666_v35 = vld [vmem:[#allocation3 + $0x568] sm:$0xff] }
 0x2b7   : > { %3220 = vmatprep.subr.bf16.mxu1 %v2666_v35  ;;  %v3595_v35 = vcombine.low %v2488_v24, %v2488_v24 }
 0x2b8   : > { %v2199_v38 = vpop.permute.xlu0 %2198  ;;  %3221 = vmatpush1.bf16.msra.mxu1 %v2201_v15 }
 0x2b9   : > { %v2204_v30 = vsel %vm2200_vm12, %v2197_v52, %v2199_v38  ;;  %v2195_v59 = vpop.permute.xlu1 %2194 }
 0x2ba   : > { %2212 = vst.msk [vmem:[#allocation3 + $0x578] sm:$0xff] %vm570_vm2, %v2204_v30  ;;  %v2203_v40 = vsel %vm2200_vm12, %v2195_v59, %v2197_v52  ;;  %vm3456_vm12 = vcmask 64512  }
 0x2bc   : > { %v1450_v45 = vpop.permute.xlu0 %1449  ;;  %v2582_v46 = vld [vmem:[#allocation3 + $0x2c8] sm:$0xff] }
 0x2bd   : > { %v1452_v54 = vpop.permute.xlu1 %1451  ;;  %3049 = vmatprep.subr.bf16.mxu0 %v2582_v46 }
 0x2be   : > { %v1455_v53 = vsel %vm1453_vm13, %v1450_v45, %v1452_v54  ;;  %1463 = vst.msk [vmem:[#allocation3 + $0x2d8] sm:$0xff] %vm570_vm2, %v1452_v54  ;;  %3050 = vmatpush1.bf16.msra.mxu0 %v1454_v34 }
 0x2c0   : > { %v2240_v58 = vpop.permute.xlu0 %2239 }
 0x2c1   : > { %v2242_v63 = vpop.permute.xlu1 %2241  ;;  %v2668_v20 = vld [vmem:[#allocation3 + $0x578] sm:$0xff] }
 0x2c2   : > { %v2251_v5 = vsel %vm2249_vm14, %v2240_v58, %v2242_v63  ;;  %3222 = vmatprep.subr.bf16.mxu1 %v2668_v20 }
 0x2c3   : > { %2259 = vst.msk [vmem:[#allocation3 + $0x588] sm:$0xff] %vm570_vm2, %v2251_v5  ;;  %3223 = vmatpush1.bf16.msra.mxu1 %v2203_v40 }
 0x2c4   : > { %v2238_v55 = vpop.permute.xlu0 %2237 }
 0x2c5   : > { %v2250_v22 = vsel %vm2249_vm14, %v2238_v55, %v2240_v58  ;;  %v1481_v25 = vpop.permute.xlu1 %1480  ;;  %v2584_v51 = vld [vmem:[#allocation3 + $0x2d8] sm:$0xff] }
 0x2c6   : > { %3051 = vmatprep.subr.bf16.mxu0 %v2584_v51 }
 0x2c7   : > { %3052 = vmatpush1.bf16.msra.mxu0 %v1455_v53 }
 0x2c8   : > { %v1483_v56 = vpop.permute.xlu0 %1482 }
 0x2c9   : > { %v1489_v57 = vsel %vm1488_vm15, %v1481_v25, %v1483_v56  ;;  %1496 = vst.msk [vmem:[#allocation3 + $0x2e8] sm:$0xff] %vm570_vm2, %v1483_v56  ;;  %v2246_v3 = vpop.permute.xlu1 %2245 }
 0x2ca   : > { %v2670_v49 = vld [vmem:[#allocation3 + $0x588] sm:$0xff] }
 0x2cb   : > { %3224 = vmatprep.subr.bf16.mxu1 %v2670_v49 }
 0x2cc   : > { %v2248_v60 = vpop.permute.xlu0 %2247  ;;  %3225 = vmatpush1.bf16.msra.mxu1 %v2250_v22 }
 0x2cd   : > { %v2253_v62 = vsel %vm2249_vm14, %v2246_v3, %v2248_v60  ;;  %v2244_v61 = vpop.permute.xlu1 %2243 }
 0x2ce   : > { %2261 = vst.msk [vmem:[#allocation3 + $0x598] sm:$0xff] %vm570_vm2, %v2253_v62  ;;  %v2252_v2 = vsel %vm2249_vm14, %v2244_v61, %v2246_v3 }
 0x2d0   : > { %v1485_v10 = vpop.permute.xlu0 %1484  ;;  %v2586_v4 = vld [vmem:[#allocation3 + $0x2e8] sm:$0xff] }
 0x2d1   : > { %v1487_v32 = vpop.permute.xlu1 %1486  ;;  %3053 = vmatprep.subr.bf16.mxu0 %v2586_v4  ;;  %v3815_v4 = vld [vmem:[%s4874_s3 + $0x94] ss:$52 sps:$4 sm:$0xff]  }
 0x2d2   : > { %v1490_v7 = vsel %vm1488_vm15, %v1485_v10, %v1487_v32  ;;  %1498 = vst.msk [vmem:[#allocation3 + $0x2f8] sm:$0xff] %vm570_vm2, %v1487_v32  ;;  %3054 = vmatpush1.bf16.msra.mxu0 %v1489_v57  ;;  %v3811_v10 = vld [vmem:[%s4874_s3 + $0x28] ss:$52 sps:$4 sm:$0xff]  }
 0x2d4   : > { %v2289_v26 = vpop.permute.xlu0 %2288 }
 0x2d5   : > { %v2291_v36 = vpop.permute.xlu1 %2290  ;;  %v2672_v29 = vld [vmem:[#allocation3 + $0x598] sm:$0xff] }
 0x2d6   : > { %v2300_v8 = vsel %vm2298_vm3, %v2289_v26, %v2291_v36  ;;  %3226 = vmatprep.subr.bf16.mxu1 %v2672_v29  ;;  %v3817_v36 = vld [vmem:[%s4874_s3 + $0x90] ss:$52 sps:$4 sm:$0xff]  }
 0x2d7   : > { %2308 = vst.msk [vmem:[#allocation3 + $0x5a8] sm:$0xff] %vm570_vm2, %v2300_v8  ;;  %3227 = vmatpush1.bf16.msra.mxu1 %v2252_v2 }
 0x2d8   : > { %v2287_v11 = vpop.permute.xlu0 %2286 }
 0x2d9   : > { %v2299_v13 = vsel %vm2298_vm3, %v2287_v11, %v2289_v26  ;;  %v2295_v14 = vpop.permute.xlu1 %2294  ;;  %v2588_v16 = vld [vmem:[#allocation3 + $0x2f8] sm:$0xff]  ;;  %v3814_v26 = vld [vmem:[%s4874_s3 + $0x30] ss:$52 sps:$4 sm:$0xff]  }
 0x2da   : > { %3055 = vmatprep.subr.bf16.mxu0 %v2588_v16  ;;  %v3820_v11 = vld [vmem:[%s4874_s3 + $0x98] ss:$52 sps:$4 sm:$0xff]  }
 0x2db   : > { %3056 = vmatpush1.bf16.msra.mxu0 %v1490_v7  ;;  %v2491_v7 = vld [vmem:[%s4874_s3 + $0xf8] sm:$0xff] }
 0x2dc   : > { %v2297_v18 = vpop.permute.xlu0 %2296  ;;  %v3602_v29 = vcombine.high %v2491_v7, %v2491_v7  ;;  %v3601_v8 = vcombine.low %v2491_v7, %v2491_v7 }
 0x2dd   : > { %v2302_v39 = vsel %vm2298_vm3, %v2295_v14, %v2297_v18  ;;  %v2293_v37 = vpop.permute.xlu1 %2292 }
 0x2de   : > { %2310 = vst.msk [vmem:[#allocation3 + $0x5b8] sm:$0xff] %vm570_vm2, %v2302_v39  ;;  %v2301_v19 = vsel %vm2298_vm3, %v2293_v37, %v2295_v14  ;;  %3058 = vmatmul.mubr.bf16.vlgmr.msra.gmra.mrb[16].mxu0 %v3800_v17  ;;  %v2674_v42 = vld [vmem:[#allocation3 + $0x5a8] sm:$0xff] }
 0x2df   : > { %3228 = vmatprep.subr.bf16.mxu1 %v2674_v42  ;;  %3067 = vmatprep.mubr.bf16.mxu0 %v3803_v6 }
 0x2e0   : > { %v2338_v21 = vpop.permute.xlu0 %2337  ;;  %3229 = vmatpush1.bf16.msra.mxu1 %v2299_v13  ;;  %v3821_v13 = vld [vmem:[%s4874_s3 + $0x100] ss:$0 sps:$4 sm:$0xff]  }
 0x2e1   : > { %v2340_v27 = vpop.permute.xlu1 %2339 }
 0x2e2   : > { %v2349_v41 = vsel %vm2347_vm4, %v2338_v21, %v2340_v27 }
 0x2e3   : > { %2357 = vst.msk [vmem:[#allocation3 + $0x5c8] sm:$0xff] %vm570_vm2, %v2349_v41 }
 0x2e4   : > { %v2336_v43 = vpop.permute.xlu0 %2335 }
 0x2e5   : > { %v2348_v47 = vsel %vm2347_vm4, %v2336_v43, %v2338_v21  ;;  %v2344_v12 = vpop.permute.xlu1 %2343  ;;  %v2676_v15 = vld [vmem:[#allocation3 + $0x5b8] sm:$0xff] }
 0x2e6   : > { %3068 = vmatmul.mubr.bf16.gmra.mrb[20].mxu0 %v3805_v28  ;;  %3230 = vmatprep.subr.bf16.mxu1 %v2676_v15 }
 0x2e7   : > { %3231 = vmatpush1.bf16.msra.mxu1 %v2301_v19  ;;  %3077 = vmatprep.mubr.bf16.mxu0 %v3596_v48 }
 0x2e8   : > { %v2346_v50 = vpop.permute.xlu0 %2345 }
 0x2e9   : > { %v2351_v44 = vsel %vm2347_vm4, %v2344_v12, %v2346_v50  ;;  %v2342_v31 = vpop.permute.xlu1 %2341 }
 0x2ea   : > { %2359 = vst.msk [vmem:[#allocation3 + $0x5d8] sm:$0xff] %vm570_vm2, %v2351_v44  ;;  %v2350_v34 = vsel %vm2347_vm4, %v2342_v31, %v2344_v12  ;;  %v2678_v52 = vld [vmem:[#allocation3 + $0x5c8] sm:$0xff] }
 0x2eb   : > { %3232 = vmatprep.subr.bf16.mxu1 %v2678_v52 }
 0x2ec   : > { %v2387_v38 = vpop.permute.xlu0 %2386  ;;  %3233 = vmatpush1.bf16.msra.mxu1 %v2348_v47 }
 0x2ed   : > { %v2389_v30 = vpop.permute.xlu1 %2388 }
 0x2ee   : > { %v2398_v59 = vsel %vm2396_vm1, %v2387_v38, %v2389_v30  ;;  %3078 = vmatmul.mubr.bf16.gmra.mrb[24].mxu0 %v3595_v35 }
 0x2ef   : > { %2406 = vst.msk [vmem:[#allocation3 + $0x5e8] sm:$0xff] %vm570_vm2, %v2398_v59  ;;  %3301 = vmatprep.mubr.bf16.mxu0 %v3839_v1 }
 0x2f0   : > { %v2385_v40 = vpop.permute.xlu0 %2384 }
 0x2f1   : > { %v2397_v45 = vsel %vm2396_vm1, %v2385_v40, %v2387_v38  ;;  %v2436_v46 = vpop.permute.xlu1 %2435  ;;  %v2680_v54 = vld [vmem:[#allocation3 + $0x5d8] sm:$0xff] }
 0x2f2   : > { %3234 = vmatprep.subr.bf16.mxu1 %v2680_v54 }
 0x2f3   : > { %3235 = vmatpush1.bf16.msra.mxu1 %v2350_v34 }
 0x2f4   : > { %v2438_v53 = vpop.permute.xlu0 %2437 }
 0x2f5   : > { %v2447_v58 = vsel %vm2445_vm0, %v2436_v46, %v2438_v53  ;;  %v2434_v63 = vpop.permute.xlu1 %2433 }
 0x2f6   : > { %2455 = vst.msk [vmem:[#allocation3 + $0x608] sm:$0xff] %vm570_vm2, %v2447_v58  ;;  %v2446_v20 = vsel %vm2445_vm0, %v2434_v63, %v2436_v46  ;;  %v2682_v5 = vld [vmem:[#allocation3 + $0x5e8] sm:$0xff] }
 0x2f7   : > { %3236 = vmatprep.subr.bf16.mxu1 %v2682_v5 }
 0x2f8   : > { %v2393_v55 = vpop.permute.xlu0 %2392  ;;  %3237 = vmatpush1.bf16.msra.mxu1 %v2397_v45 }
 0x2f9   : > { %v2395_v22 = vpop.permute.xlu1 %2394 }
 0x2fa   : > { %v2400_v25 = vsel %vm2396_vm1, %v2393_v55, %v2395_v22 }
 0x2fb   : > { %2408 = vst.msk [vmem:[#allocation3 + $0x5f8] sm:$0xff] %vm570_vm2, %v2400_v25 }
 0x2fc   : > { %v2391_v51 = vpop.permute.xlu0 %2390 }
 0x2fd   : > { %v2399_v56 = vsel %vm2396_vm1, %v2391_v51, %v2393_v55  ;;  %v2442_v57 = vpop.permute.xlu1 %2441  ;;  %v2686_v3 = vld [vmem:[#allocation3 + $0x608] sm:$0xff] }
 0x2fe   : > { %3269 = vmatprep.subr.bf16.mxu0 %v2686_v3 }
 0x2ff   : > { %3270 = vmatpush1.bf16.msra.mxu0 %v2446_v20 }
 0x300   : > { %v2444_v49 = vpop.permute.xlu0 %2443 }
 0x301   : > { %v2449_v60 = vsel %vm2445_vm0, %v2442_v57, %v2444_v49  ;;  %v2440_v62 = vpop.permute.xlu1 %2439 }
 0x302   : > { %2457 = vst.msk [vmem:[#allocation3 + $0x618] sm:$0xff] %vm570_vm2, %v2449_v60  ;;  %v2448_v61 = vsel %vm2445_vm0, %v2440_v62, %v2442_v57  ;;  %v2684_v2 = vld [vmem:[#allocation3 + $0x5f8] sm:$0xff] }
 0x303   : > { %3238 = vmatprep.subr.bf16.mxu1 %v2684_v2 }
 0x304   : > { %3239 = vmatpush1.bf16.msra.mxu1 %v2399_v56 }
 0x305   : > { %3627 = vmatprep.subr.bf16.mxu1 %v2686_v3 }
 0x307   : > { %3241 = vmatmul.mubr.bf16.vlgmr.msra.gmra.mrb[4].mxu1 %v3811_v10 }
 0x308   : > { %3629 = vmatpush1.bf16.msra.mxu1 %v2446_v20  ;;  %3250 = vmatprep.mubr.bf16.mxu1 %v3815_v4 }
 0x309   : > { %v2688_v32 = vld [vmem:[#allocation3 + $0x618] sm:$0xff] }
 0x30a   : > { %3271 = vmatprep.subr.bf16.mxu0 %v2688_v32  ;;  %3628 = vmatprep.subr.bf16.mxu1 %v2688_v32 }
 0x30b   : > { %3272 = vmatpush1.bf16.msra.mxu0 %v2448_v61 }
 0x30c   : > { %3630 = vmatpush1.bf16.msra.mxu1 %v2448_v61 }
 0x30e   : > { %3604 = vmatmul.mubr.msk.bf16.vlgmr.msra.gmra.mrb[28].mxu0 %vm570_vm2, %v3814_v26 }
 0x30f   : > { %3251 = vmatmul.mubr.bf16.gmra.mrb[8].mxu1 %v3817_v36 }
 0x310   : > { %3260 = vmatprep.mubr.bf16.mxu1 %v3602_v29 }
 0x311   : > { %v2697_v41 = vpop.permute.xlu0 %2696 }
 0x315   : > { %v2702_v43 = vpop.permute.xlu0 %2701 }
 0x317   : > { %3261 = vmatmul.mubr.bf16.gmra.mrb[12].mxu1 %v3601_v8 }
 0x318   : > { %3311 = vmatprep.mubr.bf16.mxu1 %v3839_v1 }
 0x319   : > { %v2707_v49 = vpop.permute.xlu0 %2706 }
 0x31d   : > { %v2712_v62 = vpop.permute.xlu0 %2711 }
 0x31f   : > { %3605 = vmatmul.mubr.msk.bf16.vlgmr.msra.gmra.mrb[8].mxu1 %vm570_vm2, %v3820_v11 }
 0x320   : > { %3321 = vmatprep.mubr.bf16.mxu1 %v3839_v1  ;;  %v3330_v1 = vlaneseq }
 0x322   : > { %v3331_v28 = vand.u32 127, %v3330_v1 }
 0x324   : > { %v3332_v35 = vadd.s32 128, %v3331_v28  ;;  %v3337_v46 = vand.u32 15, %v3331_v28 }
 0x326   : > { %v3344_v40 = vand.u32 15, %v3332_v35  ;;  %vm3357_vm6 = vcmp.lt.s32.totalorder %v3337_v46, 10 }
 0x327   : > { %3606 = vmatmul.mubr.msk.bf16.gmra.mrb[12].mxu1 %vm570_vm2, %v3821_v13  ;;  %v2717_v13 = vpop.permute.xlu0 %2716 }
 0x328   : > { %vm3358_vm5 = vcmp.lt.s32.totalorder %v3344_v40, 10 }
 0x3b1   : > { %v3059_v14 = vpop.f32.mrb[16].mxu0 }
 0x3b2   : > { %v3061_v16 = vpop.f32.mrb[17].mxu0  ;;  %v3631_v48 = vadd.f32 %v3059_v14, %v2697_v41 }
 0x3b3   : > { %v3063_v17 = vpop.f32.mrb[18].mxu0  ;;  %v3634_v47 = vadd.f32 %v3061_v16, %v2697_v41 }
 0x3b4   : > { %v3065_v6 = vpop.f32.mrb[19].mxu0  ;;  %v3637_v15 = vadd.f32 %v3063_v17, %v2702_v43 }
 0x3b5   : > { %v3640_v31 = vadd.f32 %v3065_v6, %v2702_v43 }
 0x3b9   : > { %v3069_v18 = vpop.f32.mrb[20].mxu0 }
 0x3ba   : > { %v3071_v39 = vpop.f32.mrb[21].mxu0  ;;  %v3643_v60 = vadd.f32 %v3069_v18, %v2707_v49 }
 0x3bb   : > { %v3073_v37 = vpop.f32.mrb[22].mxu0  ;;  %v3645_v61 = vadd.f32 %v3071_v39, %v2707_v49 }
 0x3bc   : > { %v3075_v19 = vpop.f32.mrb[23].mxu0  ;;  %v3647_v10 = vadd.f32 %v3073_v37, %v2712_v62 }
 0x3bd   : > { %v3649_v7 = vadd.f32 %v3075_v19, %v2712_v62  ;;  %v3386_v19 = vshrl.u32 %v3330_v1, 7 }
 0x3c1   : > { %v3079_v42 = vpop.f32.mrb[24].mxu0 }
 0x3c2   : > { %v3081_v21 = vpop.f32.mrb[25].mxu0  ;;  %v3651_v14 = vadd.f32 %v3079_v42, %v2717_v13  ;;  %v3381_v42 = vld [vmem:[%s4878_s7] ss:$2 sm:$0x3] }
 0x3c3   : > { %v3083_v24 = vpop.f32.mrb[26].mxu0  ;;  %v3653_v16 = vadd.f32 %v3081_v21, %v2717_v13  ;;  %v3391_v21 = vsub.s32 1, %v3386_v19 }
 0x3c4   : > { %v3084_v27 = vpop.f32.mrb[27].mxu0 }
 0x3da   : > { %v3242_v12 = vpop.f32.mrb[4].mxu1 }
 0x3db   : > { %v3632_v50 = vadd.f32 %v3631_v48, %v3242_v12  ;;  %v3244_v44 = vpop.f32.mrb[5].mxu1  ;;  %v3607_v12 = vld [vmem:[%s4878_s7 + $0x1] ss:$2 sm:$0x3] }
 0x3dc   : > { %v3635_v34 = vadd.f32 %v3634_v47, %v3244_v44  ;;  %v3246_v52 = vpop.f32.mrb[6].mxu1  ;;  %v3387_v47 = vsub.s32 0, %v3386_v19  ;;  %v3409_v44 = vrot.slane %v3607_v12, %v3391_v21 }
 0x3dd   : > { %v3638_v38 = vadd.f32 %v3637_v15, %v3246_v52  ;;  %v3248_v30 = vpop.f32.mrb[7].mxu1 }
 0x3de   : > { %v3641_v59 = vadd.f32 %v3640_v31, %v3248_v30  ;;  %v3388_v15 = vrot.slane %v3381_v42, %v3387_v47 }
 0x3e1   : > { %v3303_v45 = vpop.f32.mrb[28].mxu0 }
 0x3e2   : > { %v3633_v54 = vadd.f32 %v3632_v50, %v3303_v45  ;;  %v3305_v53 = vpop.f32.mrb[29].mxu0  ;;  %v3392_v50 = vrot.slane %v3381_v42, %v3391_v21 }
 0x3e3   : > { %v3636_v58 = vadd.f32 %v3635_v34, %v3305_v53  ;;  %v3307_v63 = vpop.f32.mrb[30].mxu0  ;;  %v3405_v34 = vrot.slane %v3607_v12, %v3387_v47 }
 0x3e4   : > { %v3359_v20 = vmul.f32 10.0, %v3633_v54  ;;  %v3639_v5 = vadd.f32 %v3638_v38, %v3307_v63  ;;  %v3309_v55 = vpop.f32.mrb[31].mxu0 }
 0x3e5   : > { %v3360_v22 = vmul.f32 10.0, %v3636_v58  ;;  %v3642_v25 = vadd.f32 %v3641_v59, %v3309_v55 }
 0x3e6   : > { %v3365_v56 = vsel %vm3357_vm6, %v3359_v20, -1e+30 }
 0x3e7   : > { %v3366_v51 = vsel %vm3358_vm5, %v3360_v22, -1e+30 }
 0x3e8   : > { %v3367_v57 = vsel %vm570_vm2, %v3366_v51, -inf }
 0x3e9   : > { %v3368_v3 = vmax.f32 %v3365_v56, %v3367_v57 }
 0x3eb   : > { %3369 = vmax.xlane.f32.xlu1 %v3368_v3 }
 0x3f2   : > { %v3313_v2 = vpop.f32.mrb[8].mxu1 }
 0x3f3   : > { %v3644_v4 = vadd.f32 %v3643_v60, %v3313_v2  ;;  %v3315_v32 = vpop.f32.mrb[9].mxu1 }
 0x3f4   : > { %v3646_v26 = vadd.f32 %v3645_v61, %v3315_v32  ;;  %v3317_v36 = vpop.f32.mrb[10].mxu1 }
 0x3f5   : > { %v3648_v29 = vadd.f32 %v3647_v10, %v3317_v36  ;;  %v3319_v8 = vpop.f32.mrb[11].mxu1  ;;  %v558_v10 = vld [vmem:[%s4877_s6] sm:$0xff] }
 0x3f6   : > { %v3650_v11 = vadd.f32 %v3649_v7, %v3319_v8 }
 0x3fa   : > { %v3323_v17 = vpop.f32.mrb[12].mxu1 }
 0x3fb   : > { %v3652_v6 = vadd.f32 %v3651_v14, %v3323_v17  ;;  %v3325_v24 = vpop.f32.mrb[13].mxu1 }
 0x3fc   : > { %v3654_v27 = vadd.f32 %v3653_v16, %v3325_v24  ;;  %v3327_v18 = vpop.f32.mrb[14].mxu1 }
 0x3fd   : > { %v3328_v41 = vpop.f32.mrb[15].mxu1 }
 0x478   : > { %v3370_v39 = vpop.xlane.xlu1 %3369 }
 0x479   : > { %v3371_v28 = vsub.f32 %v3365_v56, %v3370_v39  ;;  %v3372_v37 = vsub.f32 %v3366_v51, %v3370_v39 }
 0x47b   : > { %v3373_v48 = vmul.f32 1.442695, %v3371_v28  ;;  %v3375_v43 = vmul.f32 1.442695, %v3372_v37 }
 0x47d   : > { %3822 = vpow2.f32 %v3373_v48 }
 0x47e   : > { %3824 = vpow2.f32 %v3375_v43 }
 0x487   : > { %v3823_v31 = vpop.eup %3822 }
 0x488   : > { %v3825_v52 = vpop.eup %3824  ;;  %v3395_v35 = vmul.f32 %v3823_v31, %v3388_v15  ;;  %v3430_v1 = vmul.f32 %v3823_v31, %v3648_v29  ;;  %v3418_v38 = vmul.f32 %v3823_v31, %v3639_v5  ;;  %v3424_v53 = vmul.f32 %v3823_v31, %v3644_v4  ;;  %v559_v4 = vld [vmem:[%s4877_s6 + $0x8] sm:$0x1] }
 0x489   : > { %v3377_v30 = vsel %vm570_vm2, %v3825_v52, 0.0  ;;  %v3396_v59 = vmul.f32 %v3825_v52, %v3392_v50  ;;  %v3431_v40 = vmul.f32 %v3825_v52, %v3650_v11  ;;  %v3413_v45 = vmul.f32 %v3825_v52, %v3409_v44 }
 0x48a   : > { %v3378_v46 = vadd.f32 %v3823_v31, %v3377_v30  ;;  %v3419_v54 = vmul.f32 %v3825_v52, %v3642_v25  ;;  %v3425_v58 = vmul.f32 %v3825_v52, %v3646_v26  ;;  %v3412_v55 = vmul.f32 %v3823_v31, %v3405_v34 }
 0x48b   : > { %v3397_v63 = vsel %vm570_vm2, %v3396_v59, 0.0  ;;  %v3432_v20 = vsel %vm570_vm2, %v3431_v40, 0.0  ;;  %v3436_v5 = vmul.f32 %v3823_v31, %v3652_v6  ;;  %v3414_v57 = vsel %vm570_vm2, %v3413_v45, 0.0 }
 0x48c   : > { %3379 = vadd.xlane.f32.xlu0 %v3378_v46  ;;  %v3398_v22 = vadd.f32 %v3397_v63, %v3395_v35  ;;  %v3433_v51 = vadd.f32 %v3432_v20, %v3430_v1  ;;  %v3420_v56 = vsel %vm570_vm2, %v3419_v54, 0.0  ;;  %v3426_v49 = vsel %vm570_vm2, %v3425_v58, 0.0 }
 0x48d   : > { %v3421_v3 = vadd.f32 %v3420_v56, %v3418_v38  ;;  %v3437_v60 = vmul.f32 %v3825_v52, %v3654_v27  ;;  %v3427_v25 = vadd.f32 %v3426_v49, %v3424_v53  ;;  %v3415_v61 = vadd.f32 %v3414_v57, %v3412_v55 }
 0x48e   : > { %3399 = vadd.xlane.f32.xlu1 %v3398_v22 }
 0x48f   : > { %v3438_v62 = vsel %vm570_vm2, %v3437_v60, 0.0  ;;  %vm3442_vm2 = vcmask 7168  }
 0x490   : > { %3434 = vadd.xlane.f32.xlu0 %v3433_v51  ;;  %v3439_v2 = vadd.f32 %v3438_v62, %v3436_v5 }
 0x492   : > { %3416 = vadd.xlane.f32.xlu1 %v3415_v61 }
 0x496   : > { %3422 = vadd.xlane.f32.xlu1 %v3421_v3 }
 0x49a   : > { %3428 = vadd.xlane.f32.xlu1 %v3427_v25 }
 0x49e   : > { %3440 = vadd.xlane.f32.xlu1 %v3439_v2 }
 0x4a6   : > { %562 = vperm.xlu0 %3771, %v558_v10  }
 0x4af   : > { %567 = vperm.xlu1 %3772, %v559_v4  }
 0x519   : > { %v3380_v32 = vpop.xlane.xlu0 %3379 }
 0x51a   : > { %3826 = vrcp.f32 %v3380_v32 }
 0x51b   : > { %v3400_v7 = vpop.xlane.xlu1 %3399 }
 0x51d   : > { %v3435_v36 = vpop.xlane.xlu0 %3434 }
 0x51f   : > { %v3417_v26 = vpop.xlane.xlu1 %3416 }
 0x520   : > { %v3443_v11 = vsel %vm3442_vm2, %v3400_v7, %v3417_v26 }
 0x523   : > { %v3423_v29 = vpop.xlane.xlu1 %3422 }
 0x524   : > { %v3445_v16 = vsel %vm3444_vm7, %v3443_v11, %v3423_v29  ;;  %v3827_v41 = vpop.eup %3826 }
 0x525   : > { %v563_v8 = vpop.permute.xlu0 %562 }
 0x526   : > { %v644_v13 = vadd.f32 %v4739_v9, %v563_v8  ;;  %v646_v14 = vadd.f32 %v4743_v33, %v563_v8 }
 0x527   : > { %v3429_v17 = vpop.xlane.xlu1 %3428 }
 0x528   : > { %654 = vst [vmem:[%s343_s15] sm:$0xff] %v644_v13  ;;  %655 = vst [vmem:[%s343_s15 + $0x8] sm:$0xff] %v646_v14  ;;  %v3447_v6 = vsel %vm3446_vm8, %v3445_v16, %v3429_v17 }
 0x529   : > { %v3449_v27 = vsel %vm3448_vm9, %v3447_v6, %v3435_v36 }
 0x52b   : > { %v3441_v24 = vpop.xlane.xlu1 %3440 }
 0x52c   : > { %v3451_v18 = vsel %vm3450_vm10, %v3449_v27, %v3441_v24 }
 0x52d   : > { %v3453_v9 = vsel %vm3452_vm11, %v3451_v18, 0.0 }
 0x52e   : > { %v3455_v33 = vmul.f32 %v3827_v41, %v3453_v9 }
 0x52f   : > { %v568_v39 = vpop.permute.xlu1 %567 }
 0x530   : > { %3457 = vst.msk [vmem:[%s338_s21] sm:$0xff] %vm3456_vm12, %v3455_v33  ;;  %v650_v28 = vadd.f32 %v4747_v0, %v568_v39  ;;  %v652_v37 = vadd.f32 %v4749_v23, %v568_v39 }
 0x532   : > { %656 = vst [vmem:[%s343_s15 + $0x10] sm:$0x1] %v650_v28  ;;  %657 = vst [vmem:[%s343_s15 + $0x18] sm:$0x1] %v652_v37 }
 0x533 PF: > { %s20_s30 = sadd.s32 1, %s3836_s30  }
 0x534   : > { %p17_p4 = scmp.ge.s32.totalorder %s20_s30, 4  }
 0x536   :  { %19 = sbr.rel (!%p17_p4) target bundleno = 1 (0x1), region = 95 }

</bundles_post_ra>
